<compile_context>
chip_gen: v7x
topology: tpu7x:2x2x1
jax: 0.10.0
libtpu: 0.0.40
codegen_flags: <defaults>
</compile_context>

<pallas_src>
import jax
import jax.numpy as jnp
import numpy as np
from jax.experimental import pallas as pl
from jax.experimental.pallas import tpu as pltpu

NEG_SLOPE = 0.01     # nn.LeakyReLU() default
B = 108              # positions per phase block (9*12) -- same for both convs
GW = 12              # within-phase grid width          -- same for both convs


def _tap_params(gr, gc, phase_mod):
    """Static (lane_offset, needs_row_mask, needs_col_mask) for the 9 taps of a
    3x3 / stride-2 / pad-1 conv whose input columns are phase-major ordered."""
    params = []
    for kh in range(3):
        for kw in range(3):
            a_r = 2 * gr + kh - 1
            a_c = 2 * gc + kw - 1
            rph, q_r = a_r % phase_mod, (-1 if a_r < 0 else 0)
            cph, q_c = a_c % phase_mod, (-1 if a_c < 0 else 0)
            off = B * (rph * phase_mod + cph) + GW * q_r + q_c
            params.append((off, q_r < 0, q_c < 0))
    return params


# ------------------------------ Pallas kernel -------------------------------
def _conv_encoder_kernel(xt_ref, w1_ref, b1_ref, w2_ref, b2_ref,
                         fcw_ref, fcb_ref, rowok_ref, colok_ref, out_ref):
    row_ok = rowok_ref[...]        # (1,108) f32 {0,1}: zero where top-edge tap is OOB
    col_ok = colok_ref[...]        # (1,108) f32 {0,1}: zero where left-edge tap is OOB

    def conv3x3(src, w_taps_ref, b_ref, params):
        acc = None
        for t, (off, mask_row, mask_col) in enumerate(params):
            blk = src[:, off:off + B]                      # (Cin, 108) shifted tap block
            if mask_row:
                blk = blk * row_ok
            if mask_col:
                blk = blk * col_ok
            part = jnp.dot(w_taps_ref[t], blk,             # (Cout,Cin) @ (Cin,108)
                           preferred_element_type=jnp.float32)
            acc = part if acc is None else acc + part
        acc = acc + b_ref[...]                             # (Cout,1) bias broadcast
        return jnp.where(acc > 0.0, acc, NEG_SLOPE * acc)  # LeakyReLU

    xt = xt_ref[...]                                       # (4, 1728), 16-phase-major cols

    # conv1: four output-parity groups, emitted in (row%2, col%2) order so that
    # h1's columns land exactly in the 2x2-phase-major layout conv2 expects.
    groups = [conv3x3(xt, w1_ref, b1_ref, _tap_params(gr, gc, 4))
              for gr in range(2) for gc in range(2)]       # 4 x (16, 108)
    h1t = jnp.concatenate(groups, axis=1)                  # (16, 432), stays in VMEM

    # conv2: single group over the (9, 12) output grid.
    h2t = conv3x3(h1t, w2_ref, b2_ref, _tap_params(0, 0, 2))   # (32, 108)

    # FC: fcw pre-permuted to (32,108,64) matching torch.flatten's NCHW order,
    # so the flatten is free; 32 accumulating (1,108)@(108,64) dots.
    acc = fcb_ref[...]                                     # (1, 64)
    for co in range(32):
        acc = acc + jnp.dot(h2t[co:co + 1, :], fcw_ref[co],
                            preferred_element_type=jnp.float32)
    out_ref[...] = acc


# --------------------------------- wrapper ----------------------------------
def _pallas_forward(xt, params):
    w1t, b1c, w2t, b2c, fcw_q, fcb_r, row_ok, col_ok = params
    vmem = pl.BlockSpec(memory_space=pltpu.MemorySpace.VMEM)
    return pl.pallas_call(
        _conv_encoder_kernel,
        out_shape=jax.ShapeDtypeStruct((1, 64), jnp.float32),
        in_specs=[vmem] * 9,
        out_specs=vmem,
    )(xt, w1t, b1c, w2t, b2c, fcw_q, fcb_r, row_ok, col_ok)


def conv_encoder_forward(x, params):
    """x: (1, 4, 36, 48) NCHW float32 -> (64,) float32."""
    # Only per-call XLA glue: reorder x into (row%4, col%4)-phase-major columns
    # so every conv1 tap is a contiguous 108-column block inside the kernel.
    xt = jnp.transpose(x.reshape(4, 9, 4, 12, 4), (0, 2, 4, 1, 3)).reshape(4, 16 * B)
    return _pallas_forward(xt, params)[0]


# ---------------------------- params & reference ----------------------------
def init_params(key):
    """Raw PyTorch-layout parameters (Conv2d OIHW, Linear (out,in))."""
    ks = jax.random.split(key, 6)

    def u(k, shape, fan_in):
        bound = 1.0 / float(np.sqrt(fan_in))
        return jax.random.uniform(k, shape, jnp.float32, -bound, bound)

    w1 = u(ks[0], (16, 4, 3, 3), 4 * 9)
    b1 = u(ks[1], (16,), 4 * 9)
    w2 = u(ks[2], (32, 16, 3, 3), 16 * 9)
    b2 = u(ks[3], (32,), 16 * 9)
    fcw = u(ks[4], (64, 3456), 3456)
    fcb = u(ks[5], (64,), 3456)
    return w1, b1, w2, b2, fcw, fcb


def prepare_params(raw):
    """Hoist every weight-layout transform out of the forward pass (done once)."""
    w1, b1, w2, b2, fcw, fcb = raw
    w1t = jnp.transpose(w1, (2, 3, 0, 1)).reshape(9, 16, 4)     # [tap, co, ci]
    w2t = jnp.transpose(w2, (2, 3, 0, 1)).reshape(9, 32, 16)    # [tap, co, ci]
    b1c = b1.reshape(16, 1)
    b2c = b2.reshape(32, 1)
    # torch.flatten on (1,32,9,12) is channel-major then (oh,ow); permute fcw
    # once so the kernel's (co, p=oh*12+ow) layout needs no runtime transpose.
    fcw_q = jnp.transpose(fcw.reshape(64, 32, 108), (1, 2, 0))  # (32, 108, 64)
    fcb_r = fcb.reshape(1, 64)
    p = np.arange(108)
    row_ok = jnp.asarray((p >= 12).astype(np.float32)).reshape(1, 108)
    col_ok = jnp.asarray((p % 12 != 0).astype(np.float32)).reshape(1, 108)
    return w1t, b1c, w2t, b2c, fcw_q, fcb_r, row_ok, col_ok


def reference_forward(x, raw):
    """Pure-XLA reference mirroring the PyTorch module (f32, highest precision)."""
    w1, b1, w2, b2, fcw, fcb = raw

    def conv(xx, w, b):
        y = jax.lax.conv_general_dilated(
            xx, w, window_strides=(2, 2), padding=((1, 1), (1, 1)),
            dimension_numbers=("NCHW", "OIHW", "NCHW"),
            precision=jax.lax.Precision.HIGHEST)
        return y + b[None, :, None, None]

    h = jax.nn.leaky_relu(conv(x, w1, b1), NEG_SLOPE)
    h = jax.nn.leaky_relu(conv(h, w2, b2), NEG_SLOPE)
    flat = h.reshape(-1)
    return jnp.dot(flat, fcw.T, precision=jax.lax.Precision.HIGHEST) + fcb


# ----------------------------------- main ------------------------------------
if __name__ == "__main__":
    key = jax.random.PRNGKey(0)
    kx, kp = jax.random.split(key)
    # Module hard-codes feature_dim = 3456 => input must be (1, 4, 36, 48).
    x = jax.random.normal(kx, (1, 4, 36, 48), jnp.float32)
    raw = init_params(kp)
    params = prepare_params(raw)

    fwd = jax.jit(conv_encoder_forward)
    out = jax.block_until_ready(fwd(x, params))
    assert out.shape == (64,)

    ref = jax.block_until_ready(reference_forward(x, raw))
    np.testing.assert_allclose(np.asarray(out), np.asarray(ref),
                               rtol=1e-4, atol=1e-4)
    print("KERNEL_OK")
</pallas_src>

<mosaic_0001>
module attributes {stable_mosaic.version = 11 : i64} {
  func.func @_conv_encoder_kernel(%arg0: memref<4x1728xf32, #tpu.memory_space<vmem>>, %arg1: memref<9x16x4xf32, #tpu.memory_space<vmem>>, %arg2: memref<16x1xf32, #tpu.memory_space<vmem>>, %arg3: memref<9x32x16xf32, #tpu.memory_space<vmem>>, %arg4: memref<32x1xf32, #tpu.memory_space<vmem>>, %arg5: memref<32x108x64xf32, #tpu.memory_space<vmem>>, %arg6: memref<1x64xf32, #tpu.memory_space<vmem>>, %arg7: memref<1x108xf32, #tpu.memory_space<vmem>>, %arg8: memref<1x108xf32, #tpu.memory_space<vmem>>, %arg9: memref<1x64xf32, #tpu.memory_space<vmem>>) attributes {dimension_semantics = [], scalar_prefetch = 0 : i64, scratch_operands = 0 : i64, tpu.core_type = #tpu.core_type<tc>} {
    %c0 = arith.constant 0 : index
    %c0_0 = arith.constant 0 : index
    %0 = vector.load %arg7[%c0, %c0_0] : memref<1x108xf32, #tpu.memory_space<vmem>>, vector<1x108xf32>
    %c0_1 = arith.constant 0 : index
    %c0_2 = arith.constant 0 : index
    %1 = vector.load %arg8[%c0_1, %c0_2] : memref<1x108xf32, #tpu.memory_space<vmem>>, vector<1x108xf32>
    %c0_3 = arith.constant 0 : index
    %c0_4 = arith.constant 0 : index
    %2 = vector.load %arg0[%c0_3, %c0_4] : memref<4x1728xf32, #tpu.memory_space<vmem>>, vector<4x1728xf32>
    %3 = vector.extract_strided_slice %2 {offsets = [0, 1607], sizes = [4, 108], strides = [1, 1]} : vector<4x1728xf32> to vector<4x108xf32>
    %4 = vector.broadcast %0 : vector<1x108xf32> to vector<4x108xf32>
    %5 = arith.mulf %3, %4 : vector<4x108xf32>
    %6 = vector.broadcast %1 : vector<1x108xf32> to vector<4x108xf32>
    %7 = arith.mulf %5, %6 : vector<4x108xf32>
    %c0_5 = arith.constant 0 : index
    %c0_6 = arith.constant 0 : index
    %c0_7 = arith.constant 0 : index
    %8 = vector.load %arg1[%c0_5, %c0_6, %c0_7] : memref<9x16x4xf32, #tpu.memory_space<vmem>>, vector<1x16x4xf32>
    %9 = vector.shape_cast %8 : vector<1x16x4xf32> to vector<16x4xf32>
    %cst = arith.constant dense<0.000000e+00> : vector<16x108xf32>
    %10 = tpu.matmul %9, %7, %cst {dimension_numbers = #tpu.dot_dimension_numbers<[1], [0], [0], [1], [0, 0, 1, 1], [], []>} : vector<16x4xf32>, vector<4x108xf32>, vector<16x108xf32> -> vector<16x108xf32>
    %11 = vector.extract_strided_slice %2 {offsets = [0, 1284], sizes = [4, 108], strides = [1, 1]} : vector<4x1728xf32> to vector<4x108xf32>
    %12 = vector.broadcast %0 : vector<1x108xf32> to vector<4x108xf32>
    %13 = arith.mulf %11, %12 : vector<4x108xf32>
    %c1 = arith.constant 1 : index
    %c0_8 = arith.constant 0 : index
    %c0_9 = arith.constant 0 : index
    %14 = vector.load %arg1[%c1, %c0_8, %c0_9] : memref<9x16x4xf32, #tpu.memory_space<vmem>>, vector<1x16x4xf32>
    %15 = vector.shape_cast %14 : vector<1x16x4xf32> to vector<16x4xf32>
    %cst_10 = arith.constant dense<0.000000e+00> : vector<16x108xf32>
    %16 = tpu.matmul %15, %13, %cst_10 {dimension_numbers = #tpu.dot_dimension_numbers<[1], [0], [0], [1], [0, 0, 1, 1], [], []>} : vector<16x4xf32>, vector<4x108xf32>, vector<16x108xf32> -> vector<16x108xf32>
    %17 = arith.addf %10, %16 : vector<16x108xf32>
    %18 = vector.extract_strided_slice %2 {offsets = [0, 1392], sizes = [4, 108], strides = [1, 1]} : vector<4x1728xf32> to vector<4x108xf32>
    %19 = vector.broadcast %0 : vector<1x108xf32> to vector<4x108xf32>
    %20 = arith.mulf %18, %19 : vector<4x108xf32>
    %c2 = arith.constant 2 : index
    %c0_11 = arith.constant 0 : index
    %c0_12 = arith.constant 0 : index
    %21 = vector.load %arg1[%c2, %c0_11, %c0_12] : memref<9x16x4xf32, #tpu.memory_space<vmem>>, vector<1x16x4xf32>
    %22 = vector.shape_cast %21 : vector<1x16x4xf32> to vector<16x4xf32>
    %cst_13 = arith.constant dense<0.000000e+00> : vector<16x108xf32>
    %23 = tpu.matmul %22, %20, %cst_13 {dimension_numbers = #tpu.dot_dimension_numbers<[1], [0], [0], [1], [0, 0, 1, 1], [], []>} : vector<16x4xf32>, vector<4x108xf32>, vector<16x108xf32> -> vector<16x108xf32>
    %24 = arith.addf %17, %23 : vector<16x108xf32>
    %25 = vector.extract_strided_slice %2 {offsets = [0, 323], sizes = [4, 108], strides = [1, 1]} : vector<4x1728xf32> to vector<4x108xf32>
    %26 = vector.broadcast %1 : vector<1x108xf32> to vector<4x108xf32>
    %27 = arith.mulf %25, %26 : vector<4x108xf32>
    %c3 = arith.constant 3 : index
    %c0_14 = arith.constant 0 : index
    %c0_15 = arith.constant 0 : index
    %28 = vector.load %arg1[%c3, %c0_14, %c0_15] : memref<9x16x4xf32, #tpu.memory_space<vmem>>, vector<1x16x4xf32>
    %29 = vector.shape_cast %28 : vector<1x16x4xf32> to vector<16x4xf32>
    %cst_16 = arith.constant dense<0.000000e+00> : vector<16x108xf32>
    %30 = tpu.matmul %29, %27, %cst_16 {dimension_numbers = #tpu.dot_dimension_numbers<[1], [0], [0], [1], [0, 0, 1, 1], [], []>} : vector<16x4xf32>, vector<4x108xf32>, vector<16x108xf32> -> vector<16x108xf32>
    %31 = arith.addf %24, %30 : vector<16x108xf32>
    %32 = vector.extract_strided_slice %2 {offsets = [0, 0], sizes = [4, 108], strides = [1, 1]} : vector<4x1728xf32> to vector<4x108xf32>
    %c4 = arith.constant 4 : index
    %c0_17 = arith.constant 0 : index
    %c0_18 = arith.constant 0 : index
    %33 = vector.load %arg1[%c4, %c0_17, %c0_18] : memref<9x16x4xf32, #tpu.memory_space<vmem>>, vector<1x16x4xf32>
    %34 = vector.shape_cast %33 : vector<1x16x4xf32> to vector<16x4xf32>
    %cst_19 = arith.constant dense<0.000000e+00> : vector<16x108xf32>
    %35 = tpu.matmul %34, %32, %cst_19 {dimension_numbers = #tpu.dot_dimension_numbers<[1], [0], [0], [1], [0, 0, 1, 1], [], []>} : vector<16x4xf32>, vector<4x108xf32>, vector<16x108xf32> -> vector<16x108xf32>
    %36 = arith.addf %31, %35 : vector<16x108xf32>
    %37 = vector.extract_strided_slice %2 {offsets = [0, 108], sizes = [4, 108], strides = [1, 1]} : vector<4x1728xf32> to vector<4x108xf32>
    %c5 = arith.constant 5 : index
    %c0_20 = arith.constant 0 : index
    %c0_21 = arith.constant 0 : index
    %38 = vector.load %arg1[%c5, %c0_20, %c0_21] : memref<9x16x4xf32, #tpu.memory_space<vmem>>, vector<1x16x4xf32>
    %39 = vector.shape_cast %38 : vector<1x16x4xf32> to vector<16x4xf32>
    %cst_22 = arith.constant dense<0.000000e+00> : vector<16x108xf32>
    %40 = tpu.matmul %39, %37, %cst_22 {dimension_numbers = #tpu.dot_dimension_numbers<[1], [0], [0], [1], [0, 0, 1, 1], [], []>} : vector<16x4xf32>, vector<4x108xf32>, vector<16x108xf32> -> vector<16x108xf32>
    %41 = arith.addf %36, %40 : vector<16x108xf32>
    %42 = vector.extract_strided_slice %2 {offsets = [0, 755], sizes = [4, 108], strides = [1, 1]} : vector<4x1728xf32> to vector<4x108xf32>
    %43 = vector.broadcast %1 : vector<1x108xf32> to vector<4x108xf32>
    %44 = arith.mulf %42, %43 : vector<4x108xf32>
    %c6 = arith.constant 6 : index
    %c0_23 = arith.constant 0 : index
    %c0_24 = arith.constant 0 : index
    %45 = vector.load %arg1[%c6, %c0_23, %c0_24] : memref<9x16x4xf32, #tpu.memory_space<vmem>>, vector<1x16x4xf32>
    %46 = vector.shape_cast %45 : vector<1x16x4xf32> to vector<16x4xf32>
    %cst_25 = arith.constant dense<0.000000e+00> : vector<16x108xf32>
    %47 = tpu.matmul %46, %44, %cst_25 {dimension_numbers = #tpu.dot_dimension_numbers<[1], [0], [0], [1], [0, 0, 1, 1], [], []>} : vector<16x4xf32>, vector<4x108xf32>, vector<16x108xf32> -> vector<16x108xf32>
    %48 = arith.addf %41, %47 : vector<16x108xf32>
    %49 = vector.extract_strided_slice %2 {offsets = [0, 432], sizes = [4, 108], strides = [1, 1]} : vector<4x1728xf32> to vector<4x108xf32>
    %c7 = arith.constant 7 : index
    %c0_26 = arith.constant 0 : index
    %c0_27 = arith.constant 0 : index
    %50 = vector.load %arg1[%c7, %c0_26, %c0_27] : memref<9x16x4xf32, #tpu.memory_space<vmem>>, vector<1x16x4xf32>
    %51 = vector.shape_cast %50 : vector<1x16x4xf32> to vector<16x4xf32>
    %cst_28 = arith.constant dense<0.000000e+00> : vector<16x108xf32>
    %52 = tpu.matmul %51, %49, %cst_28 {dimension_numbers = #tpu.dot_dimension_numbers<[1], [0], [0], [1], [0, 0, 1, 1], [], []>} : vector<16x4xf32>, vector<4x108xf32>, vector<16x108xf32> -> vector<16x108xf32>
    %53 = arith.addf %48, %52 : vector<16x108xf32>
    %54 = vector.extract_strided_slice %2 {offsets = [0, 540], sizes = [4, 108], strides = [1, 1]} : vector<4x1728xf32> to vector<4x108xf32>
    %c8 = arith.constant 8 : index
    %c0_29 = arith.constant 0 : index
    %c0_30 = arith.constant 0 : index
    %55 = vector.load %arg1[%c8, %c0_29, %c0_30] : memref<9x16x4xf32, #tpu.memory_space<vmem>>, vector<1x16x4xf32>
    %56 = vector.shape_cast %55 : vector<1x16x4xf32> to vector<16x4xf32>
    %cst_31 = arith.constant dense<0.000000e+00> : vector<16x108xf32>
    %57 = tpu.matmul %56, %54, %cst_31 {dimension_numbers = #tpu.dot_dimension_numbers<[1], [0], [0], [1], [0, 0, 1, 1], [], []>} : vector<16x4xf32>, vector<4x108xf32>, vector<16x108xf32> -> vector<16x108xf32>
    %58 = arith.addf %53, %57 : vector<16x108xf32>
    %c0_32 = arith.constant 0 : index
    %c0_33 = arith.constant 0 : index
    %59 = vector.load %arg2[%c0_32, %c0_33] : memref<16x1xf32, #tpu.memory_space<vmem>>, vector<16x1xf32>
    %60 = vector.broadcast %59 : vector<16x1xf32> to vector<16x108xf32>
    %61 = arith.addf %58, %60 : vector<16x108xf32>
    %cst_34 = arith.constant 0.000000e+00 : f32
    %62 = vector.broadcast %cst_34 : f32 to vector<16x108xf32>
    %63 = arith.cmpf ogt, %61, %62 : vector<16x108xf32>
    %cst_35 = arith.constant 0.00999999977 : f32
    %64 = vector.broadcast %cst_35 : f32 to vector<16x108xf32>
    %65 = arith.mulf %64, %61 : vector<16x108xf32>
    %66 = arith.select %63, %61, %65 : vector<16x108xi1>, vector<16x108xf32>
    %67 = vector.extract_strided_slice %2 {offsets = [0, 1392], sizes = [4, 108], strides = [1, 1]} : vector<4x1728xf32> to vector<4x108xf32>
    %68 = vector.broadcast %0 : vector<1x108xf32> to vector<4x108xf32>
    %69 = arith.mulf %67, %68 : vector<4x108xf32>
    %c0_36 = arith.constant 0 : index
    %c0_37 = arith.constant 0 : index
    %c0_38 = arith.constant 0 : index
    %70 = vector.load %arg1[%c0_36, %c0_37, %c0_38] : memref<9x16x4xf32, #tpu.memory_space<vmem>>, vector<1x16x4xf32>
    %71 = vector.shape_cast %70 : vector<1x16x4xf32> to vector<16x4xf32>
    %cst_39 = arith.constant dense<0.000000e+00> : vector<16x108xf32>
    %72 = tpu.matmul %71, %69, %cst_39 {dimension_numbers = #tpu.dot_dimension_numbers<[1], [0], [0], [1], [0, 0, 1, 1], [], []>} : vector<16x4xf32>, vector<4x108xf32>, vector<16x108xf32> -> vector<16x108xf32>
    %73 = vector.extract_strided_slice %2 {offsets = [0, 1500], sizes = [4, 108], strides = [1, 1]} : vector<4x1728xf32> to vector<4x108xf32>
    %74 = vector.broadcast %0 : vector<1x108xf32> to vector<4x108xf32>
    %75 = arith.mulf %73, %74 : vector<4x108xf32>
    %c1_40 = arith.constant 1 : index
    %c0_41 = arith.constant 0 : index
    %c0_42 = arith.constant 0 : index
    %76 = vector.load %arg1[%c1_40, %c0_41, %c0_42] : memref<9x16x4xf32, #tpu.memory_space<vmem>>, vector<1x16x4xf32>
    %77 = vector.shape_cast %76 : vector<1x16x4xf32> to vector<16x4xf32>
    %cst_43 = arith.constant dense<0.000000e+00> : vector<16x108xf32>
    %78 = tpu.matmul %77, %75, %cst_43 {dimension_numbers = #tpu.dot_dimension_numbers<[1], [0], [0], [1], [0, 0, 1, 1], [], []>} : vector<16x4xf32>, vector<4x108xf32>, vector<16x108xf32> -> vector<16x108xf32>
    %79 = arith.addf %72, %78 : vector<16x108xf32>
    %80 = vector.extract_strided_slice %2 {offsets = [0, 1608], sizes = [4, 108], strides = [1, 1]} : vector<4x1728xf32> to vector<4x108xf32>
    %81 = vector.broadcast %0 : vector<1x108xf32> to vector<4x108xf32>
    %82 = arith.mulf %80, %81 : vector<4x108xf32>
    %c2_44 = arith.constant 2 : index
    %c0_45 = arith.constant 0 : index
    %c0_46 = arith.constant 0 : index
    %83 = vector.load %arg1[%c2_44, %c0_45, %c0_46] : memref<9x16x4xf32, #tpu.memory_space<vmem>>, vector<1x16x4xf32>
    %84 = vector.shape_cast %83 : vector<1x16x4xf32> to vector<16x4xf32>
    %cst_47 = arith.constant dense<0.000000e+00> : vector<16x108xf32>
    %85 = tpu.matmul %84, %82, %cst_47 {dimension_numbers = #tpu.dot_dimension_numbers<[1], [0], [0], [1], [0, 0, 1, 1], [], []>} : vector<16x4xf32>, vector<4x108xf32>, vector<16x108xf32> -> vector<16x108xf32>
    %86 = arith.addf %79, %85 : vector<16x108xf32>
    %87 = vector.extract_strided_slice %2 {offsets = [0, 108], sizes = [4, 108], strides = [1, 1]} : vector<4x1728xf32> to vector<4x108xf32>
    %c3_48 = arith.constant 3 : index
    %c0_49 = arith.constant 0 : index
    %c0_50 = arith.constant 0 : index
    %88 = vector.load %arg1[%c3_48, %c0_49, %c0_50] : memref<9x16x4xf32, #tpu.memory_space<vmem>>, vector<1x16x4xf32>
    %89 = vector.shape_cast %88 : vector<1x16x4xf32> to vector<16x4xf32>
    %cst_51 = arith.constant dense<0.000000e+00> : vector<16x108xf32>
    %90 = tpu.matmul %89, %87, %cst_51 {dimension_numbers = #tpu.dot_dimension_numbers<[1], [0], [0], [1], [0, 0, 1, 1], [], []>} : vector<16x4xf32>, vector<4x108xf32>, vector<16x108xf32> -> vector<16x108xf32>
    %91 = arith.addf %86, %90 : vector<16x108xf32>
    %92 = vector.extract_strided_slice %2 {offsets = [0, 216], sizes = [4, 108], strides = [1, 1]} : vector<4x1728xf32> to vector<4x108xf32>
    %c4_52 = arith.constant 4 : index
    %c0_53 = arith.constant 0 : index
    %c0_54 = arith.constant 0 : index
    %93 = vector.load %arg1[%c4_52, %c0_53, %c0_54] : memref<9x16x4xf32, #tpu.memory_space<vmem>>, vector<1x16x4xf32>
    %94 = vector.shape_cast %93 : vector<1x16x4xf32> to vector<16x4xf32>
    %cst_55 = arith.constant dense<0.000000e+00> : vector<16x108xf32>
    %95 = tpu.matmul %94, %92, %cst_55 {dimension_numbers = #tpu.dot_dimension_numbers<[1], [0], [0], [1], [0, 0, 1, 1], [], []>} : vector<16x4xf32>, vector<4x108xf32>, vector<16x108xf32> -> vector<16x108xf32>
    %96 = arith.addf %91, %95 : vector<16x108xf32>
    %97 = vector.extract_strided_slice %2 {offsets = [0, 324], sizes = [4, 108], strides = [1, 1]} : vector<4x1728xf32> to vector<4x108xf32>
    %c5_56 = arith.constant 5 : index
    %c0_57 = arith.constant 0 : index
    %c0_58 = arith.constant 0 : index
    %98 = vector.load %arg1[%c5_56, %c0_57, %c0_58] : memref<9x16x4xf32, #tpu.memory_space<vmem>>, vector<1x16x4xf32>
    %99 = vector.shape_cast %98 : vector<1x16x4xf32> to vector<16x4xf32>
    %cst_59 = arith.constant dense<0.000000e+00> : vector<16x108xf32>
    %100 = tpu.matmul %99, %97, %cst_59 {dimension_numbers = #tpu.dot_dimension_numbers<[1], [0], [0], [1], [0, 0, 1, 1], [], []>} : vector<16x4xf32>, vector<4x108xf32>, vector<16x108xf32> -> vector<16x108xf32>
    %101 = arith.addf %96, %100 : vector<16x108xf32>
    %102 = vector.extract_strided_slice %2 {offsets = [0, 540], sizes = [4, 108], strides = [1, 1]} : vector<4x1728xf32> to vector<4x108xf32>
    %c6_60 = arith.constant 6 : index
    %c0_61 = arith.constant 0 : index
    %c0_62 = arith.constant 0 : index
    %103 = vector.load %arg1[%c6_60, %c0_61, %c0_62] : memref<9x16x4xf32, #tpu.memory_space<vmem>>, vector<1x16x4xf32>
    %104 = vector.shape_cast %103 : vector<1x16x4xf32> to vector<16x4xf32>
    %cst_63 = arith.constant dense<0.000000e+00> : vector<16x108xf32>
    %105 = tpu.matmul %104, %102, %cst_63 {dimension_numbers = #tpu.dot_dimension_numbers<[1], [0], [0], [1], [0, 0, 1, 1], [], []>} : vector<16x4xf32>, vector<4x108xf32>, vector<16x108xf32> -> vector<16x108xf32>
    %106 = arith.addf %101, %105 : vector<16x108xf32>
    %107 = vector.extract_strided_slice %2 {offsets = [0, 648], sizes = [4, 108], strides = [1, 1]} : vector<4x1728xf32> to vector<4x108xf32>
    %c7_64 = arith.constant 7 : index
    %c0_65 = arith.constant 0 : index
    %c0_66 = arith.constant 0 : index
    %108 = vector.load %arg1[%c7_64, %c0_65, %c0_66] : memref<9x16x4xf32, #tpu.memory_space<vmem>>, vector<1x16x4xf32>
    %109 = vector.shape_cast %108 : vector<1x16x4xf32> to vector<16x4xf32>
    %cst_67 = arith.constant dense<0.000000e+00> : vector<16x108xf32>
    %110 = tpu.matmul %109, %107, %cst_67 {dimension_numbers = #tpu.dot_dimension_numbers<[1], [0], [0], [1], [0, 0, 1, 1], [], []>} : vector<16x4xf32>, vector<4x108xf32>, vector<16x108xf32> -> vector<16x108xf32>
    %111 = arith.addf %106, %110 : vector<16x108xf32>
    %112 = vector.extract_strided_slice %2 {offsets = [0, 756], sizes = [4, 108], strides = [1, 1]} : vector<4x1728xf32> to vector<4x108xf32>
    %c8_68 = arith.constant 8 : index
    %c0_69 = arith.constant 0 : index
    %c0_70 = arith.constant 0 : index
    %113 = vector.load %arg1[%c8_68, %c0_69, %c0_70] : memref<9x16x4xf32, #tpu.memory_space<vmem>>, vector<1x16x4xf32>
    %114 = vector.shape_cast %113 : vector<1x16x4xf32> to vector<16x4xf32>
    %cst_71 = arith.constant dense<0.000000e+00> : vector<16x108xf32>
    %115 = tpu.matmul %114, %112, %cst_71 {dimension_numbers = #tpu.dot_dimension_numbers<[1], [0], [0], [1], [0, 0, 1, 1], [], []>} : vector<16x4xf32>, vector<4x108xf32>, vector<16x108xf32> -> vector<16x108xf32>
    %116 = arith.addf %111, %115 : vector<16x108xf32>
    %c0_72 = arith.constant 0 : index
    %c0_73 = arith.constant 0 : index
    %117 = vector.load %arg2[%c0_72, %c0_73] : memref<16x1xf32, #tpu.memory_space<vmem>>, vector<16x1xf32>
    %118 = vector.broadcast %117 : vector<16x1xf32> to vector<16x108xf32>
    %119 = arith.addf %116, %118 : vector<16x108xf32>
    %cst_74 = arith.constant 0.000000e+00 : f32
    %120 = vector.broadcast %cst_74 : f32 to vector<16x108xf32>
    %121 = arith.cmpf ogt, %119, %120 : vector<16x108xf32>
    %cst_75 = arith.constant 0.00999999977 : f32
    %122 = vector.broadcast %cst_75 : f32 to vector<16x108xf32>
    %123 = arith.mulf %122, %119 : vector<16x108xf32>
    %124 = arith.select %121, %119, %123 : vector<16x108xi1>, vector<16x108xf32>
    %125 = vector.extract_strided_slice %2 {offsets = [0, 755], sizes = [4, 108], strides = [1, 1]} : vector<4x1728xf32> to vector<4x108xf32>
    %126 = vector.broadcast %1 : vector<1x108xf32> to vector<4x108xf32>
    %127 = arith.mulf %125, %126 : vector<4x108xf32>
    %c0_76 = arith.constant 0 : index
    %c0_77 = arith.constant 0 : index
    %c0_78 = arith.constant 0 : index
    %128 = vector.load %arg1[%c0_76, %c0_77, %c0_78] : memref<9x16x4xf32, #tpu.memory_space<vmem>>, vector<1x16x4xf32>
    %129 = vector.shape_cast %128 : vector<1x16x4xf32> to vector<16x4xf32>
    %cst_79 = arith.constant dense<0.000000e+00> : vector<16x108xf32>
    %130 = tpu.matmul %129, %127, %cst_79 {dimension_numbers = #tpu.dot_dimension_numbers<[1], [0], [0], [1], [0, 0, 1, 1], [], []>} : vector<16x4xf32>, vector<4x108xf32>, vector<16x108xf32> -> vector<16x108xf32>
    %131 = vector.extract_strided_slice %2 {offsets = [0, 432], sizes = [4, 108], strides = [1, 1]} : vector<4x1728xf32> to vector<4x108xf32>
    %c1_80 = arith.constant 1 : index
    %c0_81 = arith.constant 0 : index
    %c0_82 = arith.constant 0 : index
    %132 = vector.load %arg1[%c1_80, %c0_81, %c0_82] : memref<9x16x4xf32, #tpu.memory_space<vmem>>, vector<1x16x4xf32>
    %133 = vector.shape_cast %132 : vector<1x16x4xf32> to vector<16x4xf32>
    %cst_83 = arith.constant dense<0.000000e+00> : vector<16x108xf32>
    %134 = tpu.matmul %133, %131, %cst_83 {dimension_numbers = #tpu.dot_dimension_numbers<[1], [0], [0], [1], [0, 0, 1, 1], [], []>} : vector<16x4xf32>, vector<4x108xf32>, vector<16x108xf32> -> vector<16x108xf32>
    %135 = arith.addf %130, %134 : vector<16x108xf32>
    %136 = vector.extract_strided_slice %2 {offsets = [0, 540], sizes = [4, 108], strides = [1, 1]} : vector<4x1728xf32> to vector<4x108xf32>
    %c2_84 = arith.constant 2 : index
    %c0_85 = arith.constant 0 : index
    %c0_86 = arith.constant 0 : index
    %137 = vector.load %arg1[%c2_84, %c0_85, %c0_86] : memref<9x16x4xf32, #tpu.memory_space<vmem>>, vector<1x16x4xf32>
    %138 = vector.shape_cast %137 : vector<1x16x4xf32> to vector<16x4xf32>
    %cst_87 = arith.constant dense<0.000000e+00> : vector<16x108xf32>
    %139 = tpu.matmul %138, %136, %cst_87 {dimension_numbers = #tpu.dot_dimension_numbers<[1], [0], [0], [1], [0, 0, 1, 1], [], []>} : vector<16x4xf32>, vector<4x108xf32>, vector<16x108xf32> -> vector<16x108xf32>
    %140 = arith.addf %135, %139 : vector<16x108xf32>
    %141 = vector.extract_strided_slice %2 {offsets = [0, 1187], sizes = [4, 108], strides = [1, 1]} : vector<4x1728xf32> to vector<4x108xf32>
    %142 = vector.broadcast %1 : vector<1x108xf32> to vector<4x108xf32>
    %143 = arith.mulf %141, %142 : vector<4x108xf32>
    %c3_88 = arith.constant 3 : index
    %c0_89 = arith.constant 0 : index
    %c0_90 = arith.constant 0 : index
    %144 = vector.load %arg1[%c3_88, %c0_89, %c0_90] : memref<9x16x4xf32, #tpu.memory_space<vmem>>, vector<1x16x4xf32>
    %145 = vector.shape_cast %144 : vector<1x16x4xf32> to vector<16x4xf32>
    %cst_91 = arith.constant dense<0.000000e+00> : vector<16x108xf32>
    %146 = tpu.matmul %145, %143, %cst_91 {dimension_numbers = #tpu.dot_dimension_numbers<[1], [0], [0], [1], [0, 0, 1, 1], [], []>} : vector<16x4xf32>, vector<4x108xf32>, vector<16x108xf32> -> vector<16x108xf32>
    %147 = arith.addf %140, %146 : vector<16x108xf32>
    %148 = vector.extract_strided_slice %2 {offsets = [0, 864], sizes = [4, 108], strides = [1, 1]} : vector<4x1728xf32> to vector<4x108xf32>
    %c4_92 = arith.constant 4 : index
    %c0_93 = arith.constant 0 : index
    %c0_94 = arith.constant 0 : index
    %149 = vector.load %arg1[%c4_92, %c0_93, %c0_94] : memref<9x16x4xf32, #tpu.memory_space<vmem>>, vector<1x16x4xf32>
    %150 = vector.shape_cast %149 : vector<1x16x4xf32> to vector<16x4xf32>
    %cst_95 = arith.constant dense<0.000000e+00> : vector<16x108xf32>
    %151 = tpu.matmul %150, %148, %cst_95 {dimension_numbers = #tpu.dot_dimension_numbers<[1], [0], [0], [1], [0, 0, 1, 1], [], []>} : vector<16x4xf32>, vector<4x108xf32>, vector<16x108xf32> -> vector<16x108xf32>
    %152 = arith.addf %147, %151 : vector<16x108xf32>
    %153 = vector.extract_strided_slice %2 {offsets = [0, 972], sizes = [4, 108], strides = [1, 1]} : vector<4x1728xf32> to vector<4x108xf32>
    %c5_96 = arith.constant 5 : index
    %c0_97 = arith.constant 0 : index
    %c0_98 = arith.constant 0 : index
    %154 = vector.load %arg1[%c5_96, %c0_97, %c0_98] : memref<9x16x4xf32, #tpu.memory_space<vmem>>, vector<1x16x4xf32>
    %155 = vector.shape_cast %154 : vector<1x16x4xf32> to vector<16x4xf32>
    %cst_99 = arith.constant dense<0.000000e+00> : vector<16x108xf32>
    %156 = tpu.matmul %155, %153, %cst_99 {dimension_numbers = #tpu.dot_dimension_numbers<[1], [0], [0], [1], [0, 0, 1, 1], [], []>} : vector<16x4xf32>, vector<4x108xf32>, vector<16x108xf32> -> vector<16x108xf32>
    %157 = arith.addf %152, %156 : vector<16x108xf32>
    %158 = vector.extract_strided_slice %2 {offsets = [0, 1619], sizes = [4, 108], strides = [1, 1]} : vector<4x1728xf32> to vector<4x108xf32>
    %159 = vector.broadcast %1 : vector<1x108xf32> to vector<4x108xf32>
    %160 = arith.mulf %158, %159 : vector<4x108xf32>
    %c6_100 = arith.constant 6 : index
    %c0_101 = arith.constant 0 : index
    %c0_102 = arith.constant 0 : index
    %161 = vector.load %arg1[%c6_100, %c0_101, %c0_102] : memref<9x16x4xf32, #tpu.memory_space<vmem>>, vector<1x16x4xf32>
    %162 = vector.shape_cast %161 : vector<1x16x4xf32> to vector<16x4xf32>
    %cst_103 = arith.constant dense<0.000000e+00> : vector<16x108xf32>
    %163 = tpu.matmul %162, %160, %cst_103 {dimension_numbers = #tpu.dot_dimension_numbers<[1], [0], [0], [1], [0, 0, 1, 1], [], []>} : vector<16x4xf32>, vector<4x108xf32>, vector<16x108xf32> -> vector<16x108xf32>
    %164 = arith.addf %157, %163 : vector<16x108xf32>
    %165 = vector.extract_strided_slice %2 {offsets = [0, 1296], sizes = [4, 108], strides = [1, 1]} : vector<4x1728xf32> to vector<4x108xf32>
    %c7_104 = arith.constant 7 : index
    %c0_105 = arith.constant 0 : index
    %c0_106 = arith.constant 0 : index
    %166 = vector.load %arg1[%c7_104, %c0_105, %c0_106] : memref<9x16x4xf32, #tpu.memory_space<vmem>>, vector<1x16x4xf32>
    %167 = vector.shape_cast %166 : vector<1x16x4xf32> to vector<16x4xf32>
    %cst_107 = arith.constant dense<0.000000e+00> : vector<16x108xf32>
    %168 = tpu.matmul %167, %165, %cst_107 {dimension_numbers = #tpu.dot_dimension_numbers<[1], [0], [0], [1], [0, 0, 1, 1], [], []>} : vector<16x4xf32>, vector<4x108xf32>, vector<16x108xf32> -> vector<16x108xf32>
    %169 = arith.addf %164, %168 : vector<16x108xf32>
    %170 = vector.extract_strided_slice %2 {offsets = [0, 1404], sizes = [4, 108], strides = [1, 1]} : vector<4x1728xf32> to vector<4x108xf32>
    %c8_108 = arith.constant 8 : index
    %c0_109 = arith.constant 0 : index
    %c0_110 = arith.constant 0 : index
    %171 = vector.load %arg1[%c8_108, %c0_109, %c0_110] : memref<9x16x4xf32, #tpu.memory_space<vmem>>, vector<1x16x4xf32>
    %172 = vector.shape_cast %171 : vector<1x16x4xf32> to vector<16x4xf32>
    %cst_111 = arith.constant dense<0.000000e+00> : vector<16x108xf32>
    %173 = tpu.matmul %172, %170, %cst_111 {dimension_numbers = #tpu.dot_dimension_numbers<[1], [0], [0], [1], [0, 0, 1, 1], [], []>} : vector<16x4xf32>, vector<4x108xf32>, vector<16x108xf32> -> vector<16x108xf32>
    %174 = arith.addf %169, %173 : vector<16x108xf32>
    %c0_112 = arith.constant 0 : index
    %c0_113 = arith.constant 0 : index
    %175 = vector.load %arg2[%c0_112, %c0_113] : memref<16x1xf32, #tpu.memory_space<vmem>>, vector<16x1xf32>
    %176 = vector.broadcast %175 : vector<16x1xf32> to vector<16x108xf32>
    %177 = arith.addf %174, %176 : vector<16x108xf32>
    %cst_114 = arith.constant 0.000000e+00 : f32
    %178 = vector.broadcast %cst_114 : f32 to vector<16x108xf32>
    %179 = arith.cmpf ogt, %177, %178 : vector<16x108xf32>
    %cst_115 = arith.constant 0.00999999977 : f32
    %180 = vector.broadcast %cst_115 : f32 to vector<16x108xf32>
    %181 = arith.mulf %180, %177 : vector<16x108xf32>
    %182 = arith.select %179, %177, %181 : vector<16x108xi1>, vector<16x108xf32>
    %183 = vector.extract_strided_slice %2 {offsets = [0, 540], sizes = [4, 108], strides = [1, 1]} : vector<4x1728xf32> to vector<4x108xf32>
    %c0_116 = arith.constant 0 : index
    %c0_117 = arith.constant 0 : index
    %c0_118 = arith.constant 0 : index
    %184 = vector.load %arg1[%c0_116, %c0_117, %c0_118] : memref<9x16x4xf32, #tpu.memory_space<vmem>>, vector<1x16x4xf32>
    %185 = vector.shape_cast %184 : vector<1x16x4xf32> to vector<16x4xf32>
    %cst_119 = arith.constant dense<0.000000e+00> : vector<16x108xf32>
    %186 = tpu.matmul %185, %183, %cst_119 {dimension_numbers = #tpu.dot_dimension_numbers<[1], [0], [0], [1], [0, 0, 1, 1], [], []>} : vector<16x4xf32>, vector<4x108xf32>, vector<16x108xf32> -> vector<16x108xf32>
    %187 = vector.extract_strided_slice %2 {offsets = [0, 648], sizes = [4, 108], strides = [1, 1]} : vector<4x1728xf32> to vector<4x108xf32>
    %c1_120 = arith.constant 1 : index
    %c0_121 = arith.constant 0 : index
    %c0_122 = arith.constant 0 : index
    %188 = vector.load %arg1[%c1_120, %c0_121, %c0_122] : memref<9x16x4xf32, #tpu.memory_space<vmem>>, vector<1x16x4xf32>
    %189 = vector.shape_cast %188 : vector<1x16x4xf32> to vector<16x4xf32>
    %cst_123 = arith.constant dense<0.000000e+00> : vector<16x108xf32>
    %190 = tpu.matmul %189, %187, %cst_123 {dimension_numbers = #tpu.dot_dimension_numbers<[1], [0], [0], [1], [0, 0, 1, 1], [], []>} : vector<16x4xf32>, vector<4x108xf32>, vector<16x108xf32> -> vector<16x108xf32>
    %191 = arith.addf %186, %190 : vector<16x108xf32>
    %192 = vector.extract_strided_slice %2 {offsets = [0, 756], sizes = [4, 108], strides = [1, 1]} : vector<4x1728xf32> to vector<4x108xf32>
    %c2_124 = arith.constant 2 : index
    %c0_125 = arith.constant 0 : index
    %c0_126 = arith.constant 0 : index
    %193 = vector.load %arg1[%c2_124, %c0_125, %c0_126] : memref<9x16x4xf32, #tpu.memory_space<vmem>>, vector<1x16x4xf32>
    %194 = vector.shape_cast %193 : vector<1x16x4xf32> to vector<16x4xf32>
    %cst_127 = arith.constant dense<0.000000e+00> : vector<16x108xf32>
    %195 = tpu.matmul %194, %192, %cst_127 {dimension_numbers = #tpu.dot_dimension_numbers<[1], [0], [0], [1], [0, 0, 1, 1], [], []>} : vector<16x4xf32>, vector<4x108xf32>, vector<16x108xf32> -> vector<16x108xf32>
    %196 = arith.addf %191, %195 : vector<16x108xf32>
    %197 = vector.extract_strided_slice %2 {offsets = [0, 972], sizes = [4, 108], strides = [1, 1]} : vector<4x1728xf32> to vector<4x108xf32>
    %c3_128 = arith.constant 3 : index
    %c0_129 = arith.constant 0 : index
    %c0_130 = arith.constant 0 : index
    %198 = vector.load %arg1[%c3_128, %c0_129, %c0_130] : memref<9x16x4xf32, #tpu.memory_space<vmem>>, vector<1x16x4xf32>
    %199 = vector.shape_cast %198 : vector<1x16x4xf32> to vector<16x4xf32>
    %cst_131 = arith.constant dense<0.000000e+00> : vector<16x108xf32>
    %200 = tpu.matmul %199, %197, %cst_131 {dimension_numbers = #tpu.dot_dimension_numbers<[1], [0], [0], [1], [0, 0, 1, 1], [], []>} : vector<16x4xf32>, vector<4x108xf32>, vector<16x108xf32> -> vector<16x108xf32>
    %201 = arith.addf %196, %200 : vector<16x108xf32>
    %202 = vector.extract_strided_slice %2 {offsets = [0, 1080], sizes = [4, 108], strides = [1, 1]} : vector<4x1728xf32> to vector<4x108xf32>
    %c4_132 = arith.constant 4 : index
    %c0_133 = arith.constant 0 : index
    %c0_134 = arith.constant 0 : index
    %203 = vector.load %arg1[%c4_132, %c0_133, %c0_134] : memref<9x16x4xf32, #tpu.memory_space<vmem>>, vector<1x16x4xf32>
    %204 = vector.shape_cast %203 : vector<1x16x4xf32> to vector<16x4xf32>
    %cst_135 = arith.constant dense<0.000000e+00> : vector<16x108xf32>
    %205 = tpu.matmul %204, %202, %cst_135 {dimension_numbers = #tpu.dot_dimension_numbers<[1], [0], [0], [1], [0, 0, 1, 1], [], []>} : vector<16x4xf32>, vector<4x108xf32>, vector<16x108xf32> -> vector<16x108xf32>
    %206 = arith.addf %201, %205 : vector<16x108xf32>
    %207 = vector.extract_strided_slice %2 {offsets = [0, 1188], sizes = [4, 108], strides = [1, 1]} : vector<4x1728xf32> to vector<4x108xf32>
    %c5_136 = arith.constant 5 : index
    %c0_137 = arith.constant 0 : index
    %c0_138 = arith.constant 0 : index
    %208 = vector.load %arg1[%c5_136, %c0_137, %c0_138] : memref<9x16x4xf32, #tpu.memory_space<vmem>>, vector<1x16x4xf32>
    %209 = vector.shape_cast %208 : vector<1x16x4xf32> to vector<16x4xf32>
    %cst_139 = arith.constant dense<0.000000e+00> : vector<16x108xf32>
    %210 = tpu.matmul %209, %207, %cst_139 {dimension_numbers = #tpu.dot_dimension_numbers<[1], [0], [0], [1], [0, 0, 1, 1], [], []>} : vector<16x4xf32>, vector<4x108xf32>, vector<16x108xf32> -> vector<16x108xf32>
    %211 = arith.addf %206, %210 : vector<16x108xf32>
    %212 = vector.extract_strided_slice %2 {offsets = [0, 1404], sizes = [4, 108], strides = [1, 1]} : vector<4x1728xf32> to vector<4x108xf32>
    %c6_140 = arith.constant 6 : index
    %c0_141 = arith.constant 0 : index
    %c0_142 = arith.constant 0 : index
    %213 = vector.load %arg1[%c6_140, %c0_141, %c0_142] : memref<9x16x4xf32, #tpu.memory_space<vmem>>, vector<1x16x4xf32>
    %214 = vector.shape_cast %213 : vector<1x16x4xf32> to vector<16x4xf32>
    %cst_143 = arith.constant dense<0.000000e+00> : vector<16x108xf32>
    %215 = tpu.matmul %214, %212, %cst_143 {dimension_numbers = #tpu.dot_dimension_numbers<[1], [0], [0], [1], [0, 0, 1, 1], [], []>} : vector<16x4xf32>, vector<4x108xf32>, vector<16x108xf32> -> vector<16x108xf32>
    %216 = arith.addf %211, %215 : vector<16x108xf32>
    %217 = vector.extract_strided_slice %2 {offsets = [0, 1512], sizes = [4, 108], strides = [1, 1]} : vector<4x1728xf32> to vector<4x108xf32>
    %c7_144 = arith.constant 7 : index
    %c0_145 = arith.constant 0 : index
    %c0_146 = arith.constant 0 : index
    %218 = vector.load %arg1[%c7_144, %c0_145, %c0_146] : memref<9x16x4xf32, #tpu.memory_space<vmem>>, vector<1x16x4xf32>
    %219 = vector.shape_cast %218 : vector<1x16x4xf32> to vector<16x4xf32>
    %cst_147 = arith.constant dense<0.000000e+00> : vector<16x108xf32>
    %220 = tpu.matmul %219, %217, %cst_147 {dimension_numbers = #tpu.dot_dimension_numbers<[1], [0], [0], [1], [0, 0, 1, 1], [], []>} : vector<16x4xf32>, vector<4x108xf32>, vector<16x108xf32> -> vector<16x108xf32>
    %221 = arith.addf %216, %220 : vector<16x108xf32>
    %222 = vector.extract_strided_slice %2 {offsets = [0, 1620], sizes = [4, 108], strides = [1, 1]} : vector<4x1728xf32> to vector<4x108xf32>
    %c8_148 = arith.constant 8 : index
    %c0_149 = arith.constant 0 : index
    %c0_150 = arith.constant 0 : index
    %223 = vector.load %arg1[%c8_148, %c0_149, %c0_150] : memref<9x16x4xf32, #tpu.memory_space<vmem>>, vector<1x16x4xf32>
    %224 = vector.shape_cast %223 : vector<1x16x4xf32> to vector<16x4xf32>
    %cst_151 = arith.constant dense<0.000000e+00> : vector<16x108xf32>
    %225 = tpu.matmul %224, %222, %cst_151 {dimension_numbers = #tpu.dot_dimension_numbers<[1], [0], [0], [1], [0, 0, 1, 1], [], []>} : vector<16x4xf32>, vector<4x108xf32>, vector<16x108xf32> -> vector<16x108xf32>
    %226 = arith.addf %221, %225 : vector<16x108xf32>
    %c0_152 = arith.constant 0 : index
    %c0_153 = arith.constant 0 : index
    %227 = vector.load %arg2[%c0_152, %c0_153] : memref<16x1xf32, #tpu.memory_space<vmem>>, vector<16x1xf32>
    %228 = vector.broadcast %227 : vector<16x1xf32> to vector<16x108xf32>
    %229 = arith.addf %226, %228 : vector<16x108xf32>
    %cst_154 = arith.constant 0.000000e+00 : f32
    %230 = vector.broadcast %cst_154 : f32 to vector<16x108xf32>
    %231 = arith.cmpf ogt, %229, %230 : vector<16x108xf32>
    %cst_155 = arith.constant 0.00999999977 : f32
    %232 = vector.broadcast %cst_155 : f32 to vector<16x108xf32>
    %233 = arith.mulf %232, %229 : vector<16x108xf32>
    %234 = arith.select %231, %229, %233 : vector<16x108xi1>, vector<16x108xf32>
    %235 = tpu.concatenate %66, %124, %182, %234 in 1 : vector<16x108xf32>, vector<16x108xf32>, vector<16x108xf32>, vector<16x108xf32> -> vector<16x432xf32>
    %236 = vector.extract_strided_slice %235 {offsets = [0, 311], sizes = [16, 108], strides = [1, 1]} : vector<16x432xf32> to vector<16x108xf32>
    %237 = vector.broadcast %0 : vector<1x108xf32> to vector<16x108xf32>
    %238 = arith.mulf %236, %237 : vector<16x108xf32>
    %239 = vector.broadcast %1 : vector<1x108xf32> to vector<16x108xf32>
    %240 = arith.mulf %238, %239 : vector<16x108xf32>
    %c0_156 = arith.constant 0 : index
    %c0_157 = arith.constant 0 : index
    %c0_158 = arith.constant 0 : index
    %241 = vector.load %arg3[%c0_156, %c0_157, %c0_158] : memref<9x32x16xf32, #tpu.memory_space<vmem>>, vector<1x32x16xf32>
    %242 = vector.shape_cast %241 : vector<1x32x16xf32> to vector<32x16xf32>
    %cst_159 = arith.constant dense<0.000000e+00> : vector<32x108xf32>
    %243 = tpu.matmul %242, %240, %cst_159 {dimension_numbers = #tpu.dot_dimension_numbers<[1], [0], [0], [1], [0, 0, 1, 1], [], []>} : vector<32x16xf32>, vector<16x108xf32>, vector<32x108xf32> -> vector<32x108xf32>
    %244 = vector.extract_strided_slice %235 {offsets = [0, 204], sizes = [16, 108], strides = [1, 1]} : vector<16x432xf32> to vector<16x108xf32>
    %245 = vector.broadcast %0 : vector<1x108xf32> to vector<16x108xf32>
    %246 = arith.mulf %244, %245 : vector<16x108xf32>
    %c1_160 = arith.constant 1 : index
    %c0_161 = arith.constant 0 : index
    %c0_162 = arith.constant 0 : index
    %247 = vector.load %arg3[%c1_160, %c0_161, %c0_162] : memref<9x32x16xf32, #tpu.memory_space<vmem>>, vector<1x32x16xf32>
    %248 = vector.shape_cast %247 : vector<1x32x16xf32> to vector<32x16xf32>
    %cst_163 = arith.constant dense<0.000000e+00> : vector<32x108xf32>
    %249 = tpu.matmul %248, %246, %cst_163 {dimension_numbers = #tpu.dot_dimension_numbers<[1], [0], [0], [1], [0, 0, 1, 1], [], []>} : vector<32x16xf32>, vector<16x108xf32>, vector<32x108xf32> -> vector<32x108xf32>
    %250 = arith.addf %243, %249 : vector<32x108xf32>
    %251 = vector.extract_strided_slice %235 {offsets = [0, 312], sizes = [16, 108], strides = [1, 1]} : vector<16x432xf32> to vector<16x108xf32>
    %252 = vector.broadcast %0 : vector<1x108xf32> to vector<16x108xf32>
    %253 = arith.mulf %251, %252 : vector<16x108xf32>
    %c2_164 = arith.constant 2 : index
    %c0_165 = arith.constant 0 : index
    %c0_166 = arith.constant 0 : index
    %254 = vector.load %arg3[%c2_164, %c0_165, %c0_166] : memref<9x32x16xf32, #tpu.memory_space<vmem>>, vector<1x32x16xf32>
    %255 = vector.shape_cast %254 : vector<1x32x16xf32> to vector<32x16xf32>
    %cst_167 = arith.constant dense<0.000000e+00> : vector<32x108xf32>
    %256 = tpu.matmul %255, %253, %cst_167 {dimension_numbers = #tpu.dot_dimension_numbers<[1], [0], [0], [1], [0, 0, 1, 1], [], []>} : vector<32x16xf32>, vector<16x108xf32>, vector<32x108xf32> -> vector<32x108xf32>
    %257 = arith.addf %250, %256 : vector<32x108xf32>
    %258 = vector.extract_strided_slice %235 {offsets = [0, 107], sizes = [16, 108], strides = [1, 1]} : vector<16x432xf32> to vector<16x108xf32>
    %259 = vector.broadcast %1 : vector<1x108xf32> to vector<16x108xf32>
    %260 = arith.mulf %258, %259 : vector<16x108xf32>
    %c3_168 = arith.constant 3 : index
    %c0_169 = arith.constant 0 : index
    %c0_170 = arith.constant 0 : index
    %261 = vector.load %arg3[%c3_168, %c0_169, %c0_170] : memref<9x32x16xf32, #tpu.memory_space<vmem>>, vector<1x32x16xf32>
    %262 = vector.shape_cast %261 : vector<1x32x16xf32> to vector<32x16xf32>
    %cst_171 = arith.constant dense<0.000000e+00> : vector<32x108xf32>
    %263 = tpu.matmul %262, %260, %cst_171 {dimension_numbers = #tpu.dot_dimension_numbers<[1], [0], [0], [1], [0, 0, 1, 1], [], []>} : vector<32x16xf32>, vector<16x108xf32>, vector<32x108xf32> -> vector<32x108xf32>
    %264 = arith.addf %257, %263 : vector<32x108xf32>
    %265 = vector.extract_strided_slice %235 {offsets = [0, 0], sizes = [16, 108], strides = [1, 1]} : vector<16x432xf32> to vector<16x108xf32>
    %c4_172 = arith.constant 4 : index
    %c0_173 = arith.constant 0 : index
    %c0_174 = arith.constant 0 : index
    %266 = vector.load %arg3[%c4_172, %c0_173, %c0_174] : memref<9x32x16xf32, #tpu.memory_space<vmem>>, vector<1x32x16xf32>
    %267 = vector.shape_cast %266 : vector<1x32x16xf32> to vector<32x16xf32>
    %cst_175 = arith.constant dense<0.000000e+00> : vector<32x108xf32>
    %268 = tpu.matmul %267, %265, %cst_175 {dimension_numbers = #tpu.dot_dimension_numbers<[1], [0], [0], [1], [0, 0, 1, 1], [], []>} : vector<32x16xf32>, vector<16x108xf32>, vector<32x108xf32> -> vector<32x108xf32>
    %269 = arith.addf %264, %268 : vector<32x108xf32>
    %270 = vector.extract_strided_slice %235 {offsets = [0, 108], sizes = [16, 108], strides = [1, 1]} : vector<16x432xf32> to vector<16x108xf32>
    %c5_176 = arith.constant 5 : index
    %c0_177 = arith.constant 0 : index
    %c0_178 = arith.constant 0 : index
    %271 = vector.load %arg3[%c5_176, %c0_177, %c0_178] : memref<9x32x16xf32, #tpu.memory_space<vmem>>, vector<1x32x16xf32>
    %272 = vector.shape_cast %271 : vector<1x32x16xf32> to vector<32x16xf32>
    %cst_179 = arith.constant dense<0.000000e+00> : vector<32x108xf32>
    %273 = tpu.matmul %272, %270, %cst_179 {dimension_numbers = #tpu.dot_dimension_numbers<[1], [0], [0], [1], [0, 0, 1, 1], [], []>} : vector<32x16xf32>, vector<16x108xf32>, vector<32x108xf32> -> vector<32x108xf32>
    %274 = arith.addf %269, %273 : vector<32x108xf32>
    %275 = vector.extract_strided_slice %235 {offsets = [0, 323], sizes = [16, 108], strides = [1, 1]} : vector<16x432xf32> to vector<16x108xf32>
    %276 = vector.broadcast %1 : vector<1x108xf32> to vector<16x108xf32>
    %277 = arith.mulf %275, %276 : vector<16x108xf32>
    %c6_180 = arith.constant 6 : index
    %c0_181 = arith.constant 0 : index
    %c0_182 = arith.constant 0 : index
    %278 = vector.load %arg3[%c6_180, %c0_181, %c0_182] : memref<9x32x16xf32, #tpu.memory_space<vmem>>, vector<1x32x16xf32>
    %279 = vector.shape_cast %278 : vector<1x32x16xf32> to vector<32x16xf32>
    %cst_183 = arith.constant dense<0.000000e+00> : vector<32x108xf32>
    %280 = tpu.matmul %279, %277, %cst_183 {dimension_numbers = #tpu.dot_dimension_numbers<[1], [0], [0], [1], [0, 0, 1, 1], [], []>} : vector<32x16xf32>, vector<16x108xf32>, vector<32x108xf32> -> vector<32x108xf32>
    %281 = arith.addf %274, %280 : vector<32x108xf32>
    %282 = vector.extract_strided_slice %235 {offsets = [0, 216], sizes = [16, 108], strides = [1, 1]} : vector<16x432xf32> to vector<16x108xf32>
    %c7_184 = arith.constant 7 : index
    %c0_185 = arith.constant 0 : index
    %c0_186 = arith.constant 0 : index
    %283 = vector.load %arg3[%c7_184, %c0_185, %c0_186] : memref<9x32x16xf32, #tpu.memory_space<vmem>>, vector<1x32x16xf32>
    %284 = vector.shape_cast %283 : vector<1x32x16xf32> to vector<32x16xf32>
    %cst_187 = arith.constant dense<0.000000e+00> : vector<32x108xf32>
    %285 = tpu.matmul %284, %282, %cst_187 {dimension_numbers = #tpu.dot_dimension_numbers<[1], [0], [0], [1], [0, 0, 1, 1], [], []>} : vector<32x16xf32>, vector<16x108xf32>, vector<32x108xf32> -> vector<32x108xf32>
    %286 = arith.addf %281, %285 : vector<32x108xf32>
    %287 = vector.extract_strided_slice %235 {offsets = [0, 324], sizes = [16, 108], strides = [1, 1]} : vector<16x432xf32> to vector<16x108xf32>
    %c8_188 = arith.constant 8 : index
    %c0_189 = arith.constant 0 : index
    %c0_190 = arith.constant 0 : index
    %288 = vector.load %arg3[%c8_188, %c0_189, %c0_190] : memref<9x32x16xf32, #tpu.memory_space<vmem>>, vector<1x32x16xf32>
    %289 = vector.shape_cast %288 : vector<1x32x16xf32> to vector<32x16xf32>
    %cst_191 = arith.constant dense<0.000000e+00> : vector<32x108xf32>
    %290 = tpu.matmul %289, %287, %cst_191 {dimension_numbers = #tpu.dot_dimension_numbers<[1], [0], [0], [1], [0, 0, 1, 1], [], []>} : vector<32x16xf32>, vector<16x108xf32>, vector<32x108xf32> -> vector<32x108xf32>
    %291 = arith.addf %286, %290 : vector<32x108xf32>
    %c0_192 = arith.constant 0 : index
    %c0_193 = arith.constant 0 : index
    %292 = vector.load %arg4[%c0_192, %c0_193] : memref<32x1xf32, #tpu.memory_space<vmem>>, vector<32x1xf32>
    %293 = vector.broadcast %292 : vector<32x1xf32> to vector<32x108xf32>
    %294 = arith.addf %291, %293 : vector<32x108xf32>
    %cst_194 = arith.constant 0.000000e+00 : f32
    %295 = vector.broadcast %cst_194 : f32 to vector<32x108xf32>
    %296 = arith.cmpf ogt, %294, %295 : vector<32x108xf32>
    %cst_195 = arith.constant 0.00999999977 : f32
    %297 = vector.broadcast %cst_195 : f32 to vector<32x108xf32>
    %298 = arith.mulf %297, %294 : vector<32x108xf32>
    %299 = arith.select %296, %294, %298 : vector<32x108xi1>, vector<32x108xf32>
    %c0_196 = arith.constant 0 : index
    %c0_197 = arith.constant 0 : index
    %300 = vector.load %arg6[%c0_196, %c0_197] : memref<1x64xf32, #tpu.memory_space<vmem>>, vector<1x64xf32>
    %301 = vector.extract_strided_slice %299 {offsets = [0, 0], sizes = [1, 108], strides = [1, 1]} : vector<32x108xf32> to vector<1x108xf32>
    %c0_198 = arith.constant 0 : index
    %c0_199 = arith.constant 0 : index
    %c0_200 = arith.constant 0 : index
    %302 = vector.load %arg5[%c0_198, %c0_199, %c0_200] : memref<32x108x64xf32, #tpu.memory_space<vmem>>, vector<1x108x64xf32>
    %303 = vector.shape_cast %302 : vector<1x108x64xf32> to vector<108x64xf32>
    %cst_201 = arith.constant dense<0.000000e+00> : vector<1x64xf32>
    %304 = tpu.matmul %301, %303, %cst_201 {dimension_numbers = #tpu.dot_dimension_numbers<[1], [0], [0], [1], [0, 0, 1, 1], [], []>} : vector<1x108xf32>, vector<108x64xf32>, vector<1x64xf32> -> vector<1x64xf32>
    %305 = arith.addf %300, %304 : vector<1x64xf32>
    %306 = vector.extract_strided_slice %299 {offsets = [1, 0], sizes = [1, 108], strides = [1, 1]} : vector<32x108xf32> to vector<1x108xf32>
    %c1_202 = arith.constant 1 : index
    %c0_203 = arith.constant 0 : index
    %c0_204 = arith.constant 0 : index
    %307 = vector.load %arg5[%c1_202, %c0_203, %c0_204] : memref<32x108x64xf32, #tpu.memory_space<vmem>>, vector<1x108x64xf32>
    %308 = vector.shape_cast %307 : vector<1x108x64xf32> to vector<108x64xf32>
    %cst_205 = arith.constant dense<0.000000e+00> : vector<1x64xf32>
    %309 = tpu.matmul %306, %308, %cst_205 {dimension_numbers = #tpu.dot_dimension_numbers<[1], [0], [0], [1], [0, 0, 1, 1], [], []>} : vector<1x108xf32>, vector<108x64xf32>, vector<1x64xf32> -> vector<1x64xf32>
    %310 = arith.addf %305, %309 : vector<1x64xf32>
    %311 = vector.extract_strided_slice %299 {offsets = [2, 0], sizes = [1, 108], strides = [1, 1]} : vector<32x108xf32> to vector<1x108xf32>
    %c2_206 = arith.constant 2 : index
    %c0_207 = arith.constant 0 : index
    %c0_208 = arith.constant 0 : index
    %312 = vector.load %arg5[%c2_206, %c0_207, %c0_208] : memref<32x108x64xf32, #tpu.memory_space<vmem>>, vector<1x108x64xf32>
    %313 = vector.shape_cast %312 : vector<1x108x64xf32> to vector<108x64xf32>
    %cst_209 = arith.constant dense<0.000000e+00> : vector<1x64xf32>
    %314 = tpu.matmul %311, %313, %cst_209 {dimension_numbers = #tpu.dot_dimension_numbers<[1], [0], [0], [1], [0, 0, 1, 1], [], []>} : vector<1x108xf32>, vector<108x64xf32>, vector<1x64xf32> -> vector<1x64xf32>
    %315 = arith.addf %310, %314 : vector<1x64xf32>
    %316 = vector.extract_strided_slice %299 {offsets = [3, 0], sizes = [1, 108], strides = [1, 1]} : vector<32x108xf32> to vector<1x108xf32>
    %c3_210 = arith.constant 3 : index
    %c0_211 = arith.constant 0 : index
    %c0_212 = arith.constant 0 : index
    %317 = vector.load %arg5[%c3_210, %c0_211, %c0_212] : memref<32x108x64xf32, #tpu.memory_space<vmem>>, vector<1x108x64xf32>
    %318 = vector.shape_cast %317 : vector<1x108x64xf32> to vector<108x64xf32>
    %cst_213 = arith.constant dense<0.000000e+00> : vector<1x64xf32>
    %319 = tpu.matmul %316, %318, %cst_213 {dimension_numbers = #tpu.dot_dimension_numbers<[1], [0], [0], [1], [0, 0, 1, 1], [], []>} : vector<1x108xf32>, vector<108x64xf32>, vector<1x64xf32> -> vector<1x64xf32>
    %320 = arith.addf %315, %319 : vector<1x64xf32>
    %321 = vector.extract_strided_slice %299 {offsets = [4, 0], sizes = [1, 108], strides = [1, 1]} : vector<32x108xf32> to vector<1x108xf32>
    %c4_214 = arith.constant 4 : index
    %c0_215 = arith.constant 0 : index
    %c0_216 = arith.constant 0 : index
    %322 = vector.load %arg5[%c4_214, %c0_215, %c0_216] : memref<32x108x64xf32, #tpu.memory_space<vmem>>, vector<1x108x64xf32>
    %323 = vector.shape_cast %322 : vector<1x108x64xf32> to vector<108x64xf32>
    %cst_217 = arith.constant dense<0.000000e+00> : vector<1x64xf32>
    %324 = tpu.matmul %321, %323, %cst_217 {dimension_numbers = #tpu.dot_dimension_numbers<[1], [0], [0], [1], [0, 0, 1, 1], [], []>} : vector<1x108xf32>, vector<108x64xf32>, vector<1x64xf32> -> vector<1x64xf32>
    %325 = arith.addf %320, %324 : vector<1x64xf32>
    %326 = vector.extract_strided_slice %299 {offsets = [5, 0], sizes = [1, 108], strides = [1, 1]} : vector<32x108xf32> to vector<1x108xf32>
    %c5_218 = arith.constant 5 : index
    %c0_219 = arith.constant 0 : index
    %c0_220 = arith.constant 0 : index
    %327 = vector.load %arg5[%c5_218, %c0_219, %c0_220] : memref<32x108x64xf32, #tpu.memory_space<vmem>>, vector<1x108x64xf32>
    %328 = vector.shape_cast %327 : vector<1x108x64xf32> to vector<108x64xf32>
    %cst_221 = arith.constant dense<0.000000e+00> : vector<1x64xf32>
    %329 = tpu.matmul %326, %328, %cst_221 {dimension_numbers = #tpu.dot_dimension_numbers<[1], [0], [0], [1], [0, 0, 1, 1], [], []>} : vector<1x108xf32>, vector<108x64xf32>, vector<1x64xf32> -> vector<1x64xf32>
    %330 = arith.addf %325, %329 : vector<1x64xf32>
    %331 = vector.extract_strided_slice %299 {offsets = [6, 0], sizes = [1, 108], strides = [1, 1]} : vector<32x108xf32> to vector<1x108xf32>
    %c6_222 = arith.constant 6 : index
    %c0_223 = arith.constant 0 : index
    %c0_224 = arith.constant 0 : index
    %332 = vector.load %arg5[%c6_222, %c0_223, %c0_224] : memref<32x108x64xf32, #tpu.memory_space<vmem>>, vector<1x108x64xf32>
    %333 = vector.shape_cast %332 : vector<1x108x64xf32> to vector<108x64xf32>
    %cst_225 = arith.constant dense<0.000000e+00> : vector<1x64xf32>
    %334 = tpu.matmul %331, %333, %cst_225 {dimension_numbers = #tpu.dot_dimension_numbers<[1], [0], [0], [1], [0, 0, 1, 1], [], []>} : vector<1x108xf32>, vector<108x64xf32>, vector<1x64xf32> -> vector<1x64xf32>
    %335 = arith.addf %330, %334 : vector<1x64xf32>
    %336 = vector.extract_strided_slice %299 {offsets = [7, 0], sizes = [1, 108], strides = [1, 1]} : vector<32x108xf32> to vector<1x108xf32>
    %c7_226 = arith.constant 7 : index
    %c0_227 = arith.constant 0 : index
    %c0_228 = arith.constant 0 : index
    %337 = vector.load %arg5[%c7_226, %c0_227, %c0_228] : memref<32x108x64xf32, #tpu.memory_space<vmem>>, vector<1x108x64xf32>
    %338 = vector.shape_cast %337 : vector<1x108x64xf32> to vector<108x64xf32>
    %cst_229 = arith.constant dense<0.000000e+00> : vector<1x64xf32>
    %339 = tpu.matmul %336, %338, %cst_229 {dimension_numbers = #tpu.dot_dimension_numbers<[1], [0], [0], [1], [0, 0, 1, 1], [], []>} : vector<1x108xf32>, vector<108x64xf32>, vector<1x64xf32> -> vector<1x64xf32>
    %340 = arith.addf %335, %339 : vector<1x64xf32>
    %341 = vector.extract_strided_slice %299 {offsets = [8, 0], sizes = [1, 108], strides = [1, 1]} : vector<32x108xf32> to vector<1x108xf32>
    %c8_230 = arith.constant 8 : index
    %c0_231 = arith.constant 0 : index
    %c0_232 = arith.constant 0 : index
    %342 = vector.load %arg5[%c8_230, %c0_231, %c0_232] : memref<32x108x64xf32, #tpu.memory_space<vmem>>, vector<1x108x64xf32>
    %343 = vector.shape_cast %342 : vector<1x108x64xf32> to vector<108x64xf32>
    %cst_233 = arith.constant dense<0.000000e+00> : vector<1x64xf32>
    %344 = tpu.matmul %341, %343, %cst_233 {dimension_numbers = #tpu.dot_dimension_numbers<[1], [0], [0], [1], [0, 0, 1, 1], [], []>} : vector<1x108xf32>, vector<108x64xf32>, vector<1x64xf32> -> vector<1x64xf32>
    %345 = arith.addf %340, %344 : vector<1x64xf32>
    %346 = vector.extract_strided_slice %299 {offsets = [9, 0], sizes = [1, 108], strides = [1, 1]} : vector<32x108xf32> to vector<1x108xf32>
    %c9 = arith.constant 9 : index
    %c0_234 = arith.constant 0 : index
    %c0_235 = arith.constant 0 : index
    %347 = vector.load %arg5[%c9, %c0_234, %c0_235] : memref<32x108x64xf32, #tpu.memory_space<vmem>>, vector<1x108x64xf32>
    %348 = vector.shape_cast %347 : vector<1x108x64xf32> to vector<108x64xf32>
    %cst_236 = arith.constant dense<0.000000e+00> : vector<1x64xf32>
    %349 = tpu.matmul %346, %348, %cst_236 {dimension_numbers = #tpu.dot_dimension_numbers<[1], [0], [0], [1], [0, 0, 1, 1], [], []>} : vector<1x108xf32>, vector<108x64xf32>, vector<1x64xf32> -> vector<1x64xf32>
    %350 = arith.addf %345, %349 : vector<1x64xf32>
    %351 = vector.extract_strided_slice %299 {offsets = [10, 0], sizes = [1, 108], strides = [1, 1]} : vector<32x108xf32> to vector<1x108xf32>
    %c10 = arith.constant 10 : index
    %c0_237 = arith.constant 0 : index
    %c0_238 = arith.constant 0 : index
    %352 = vector.load %arg5[%c10, %c0_237, %c0_238] : memref<32x108x64xf32, #tpu.memory_space<vmem>>, vector<1x108x64xf32>
    %353 = vector.shape_cast %352 : vector<1x108x64xf32> to vector<108x64xf32>
    %cst_239 = arith.constant dense<0.000000e+00> : vector<1x64xf32>
    %354 = tpu.matmul %351, %353, %cst_239 {dimension_numbers = #tpu.dot_dimension_numbers<[1], [0], [0], [1], [0, 0, 1, 1], [], []>} : vector<1x108xf32>, vector<108x64xf32>, vector<1x64xf32> -> vector<1x64xf32>
    %355 = arith.addf %350, %354 : vector<1x64xf32>
    %356 = vector.extract_strided_slice %299 {offsets = [11, 0], sizes = [1, 108], strides = [1, 1]} : vector<32x108xf32> to vector<1x108xf32>
    %c11 = arith.constant 11 : index
    %c0_240 = arith.constant 0 : index
    %c0_241 = arith.constant 0 : index
    %357 = vector.load %arg5[%c11, %c0_240, %c0_241] : memref<32x108x64xf32, #tpu.memory_space<vmem>>, vector<1x108x64xf32>
    %358 = vector.shape_cast %357 : vector<1x108x64xf32> to vector<108x64xf32>
    %cst_242 = arith.constant dense<0.000000e+00> : vector<1x64xf32>
    %359 = tpu.matmul %356, %358, %cst_242 {dimension_numbers = #tpu.dot_dimension_numbers<[1], [0], [0], [1], [0, 0, 1, 1], [], []>} : vector<1x108xf32>, vector<108x64xf32>, vector<1x64xf32> -> vector<1x64xf32>
    %360 = arith.addf %355, %359 : vector<1x64xf32>
    %361 = vector.extract_strided_slice %299 {offsets = [12, 0], sizes = [1, 108], strides = [1, 1]} : vector<32x108xf32> to vector<1x108xf32>
    %c12 = arith.constant 12 : index
    %c0_243 = arith.constant 0 : index
    %c0_244 = arith.constant 0 : index
    %362 = vector.load %arg5[%c12, %c0_243, %c0_244] : memref<32x108x64xf32, #tpu.memory_space<vmem>>, vector<1x108x64xf32>
    %363 = vector.shape_cast %362 : vector<1x108x64xf32> to vector<108x64xf32>
    %cst_245 = arith.constant dense<0.000000e+00> : vector<1x64xf32>
    %364 = tpu.matmul %361, %363, %cst_245 {dimension_numbers = #tpu.dot_dimension_numbers<[1], [0], [0], [1], [0, 0, 1, 1], [], []>} : vector<1x108xf32>, vector<108x64xf32>, vector<1x64xf32> -> vector<1x64xf32>
    %365 = arith.addf %360, %364 : vector<1x64xf32>
    %366 = vector.extract_strided_slice %299 {offsets = [13, 0], sizes = [1, 108], strides = [1, 1]} : vector<32x108xf32> to vector<1x108xf32>
    %c13 = arith.constant 13 : index
    %c0_246 = arith.constant 0 : index
    %c0_247 = arith.constant 0 : index
    %367 = vector.load %arg5[%c13, %c0_246, %c0_247] : memref<32x108x64xf32, #tpu.memory_space<vmem>>, vector<1x108x64xf32>
    %368 = vector.shape_cast %367 : vector<1x108x64xf32> to vector<108x64xf32>
    %cst_248 = arith.constant dense<0.000000e+00> : vector<1x64xf32>
    %369 = tpu.matmul %366, %368, %cst_248 {dimension_numbers = #tpu.dot_dimension_numbers<[1], [0], [0], [1], [0, 0, 1, 1], [], []>} : vector<1x108xf32>, vector<108x64xf32>, vector<1x64xf32> -> vector<1x64xf32>
    %370 = arith.addf %365, %369 : vector<1x64xf32>
    %371 = vector.extract_strided_slice %299 {offsets = [14, 0], sizes = [1, 108], strides = [1, 1]} : vector<32x108xf32> to vector<1x108xf32>
    %c14 = arith.constant 14 : index
    %c0_249 = arith.constant 0 : index
    %c0_250 = arith.constant 0 : index
    %372 = vector.load %arg5[%c14, %c0_249, %c0_250] : memref<32x108x64xf32, #tpu.memory_space<vmem>>, vector<1x108x64xf32>
    %373 = vector.shape_cast %372 : vector<1x108x64xf32> to vector<108x64xf32>
    %cst_251 = arith.constant dense<0.000000e+00> : vector<1x64xf32>
    %374 = tpu.matmul %371, %373, %cst_251 {dimension_numbers = #tpu.dot_dimension_numbers<[1], [0], [0], [1], [0, 0, 1, 1], [], []>} : vector<1x108xf32>, vector<108x64xf32>, vector<1x64xf32> -> vector<1x64xf32>
    %375 = arith.addf %370, %374 : vector<1x64xf32>
    %376 = vector.extract_strided_slice %299 {offsets = [15, 0], sizes = [1, 108], strides = [1, 1]} : vector<32x108xf32> to vector<1x108xf32>
    %c15 = arith.constant 15 : index
    %c0_252 = arith.constant 0 : index
    %c0_253 = arith.constant 0 : index
    %377 = vector.load %arg5[%c15, %c0_252, %c0_253] : memref<32x108x64xf32, #tpu.memory_space<vmem>>, vector<1x108x64xf32>
    %378 = vector.shape_cast %377 : vector<1x108x64xf32> to vector<108x64xf32>
    %cst_254 = arith.constant dense<0.000000e+00> : vector<1x64xf32>
    %379 = tpu.matmul %376, %378, %cst_254 {dimension_numbers = #tpu.dot_dimension_numbers<[1], [0], [0], [1], [0, 0, 1, 1], [], []>} : vector<1x108xf32>, vector<108x64xf32>, vector<1x64xf32> -> vector<1x64xf32>
    %380 = arith.addf %375, %379 : vector<1x64xf32>
    %381 = vector.extract_strided_slice %299 {offsets = [16, 0], sizes = [1, 108], strides = [1, 1]} : vector<32x108xf32> to vector<1x108xf32>
    %c16 = arith.constant 16 : index
    %c0_255 = arith.constant 0 : index
    %c0_256 = arith.constant 0 : index
    %382 = vector.load %arg5[%c16, %c0_255, %c0_256] : memref<32x108x64xf32, #tpu.memory_space<vmem>>, vector<1x108x64xf32>
    %383 = vector.shape_cast %382 : vector<1x108x64xf32> to vector<108x64xf32>
    %cst_257 = arith.constant dense<0.000000e+00> : vector<1x64xf32>
    %384 = tpu.matmul %381, %383, %cst_257 {dimension_numbers = #tpu.dot_dimension_numbers<[1], [0], [0], [1], [0, 0, 1, 1], [], []>} : vector<1x108xf32>, vector<108x64xf32>, vector<1x64xf32> -> vector<1x64xf32>
    %385 = arith.addf %380, %384 : vector<1x64xf32>
    %386 = vector.extract_strided_slice %299 {offsets = [17, 0], sizes = [1, 108], strides = [1, 1]} : vector<32x108xf32> to vector<1x108xf32>
    %c17 = arith.constant 17 : index
    %c0_258 = arith.constant 0 : index
    %c0_259 = arith.constant 0 : index
    %387 = vector.load %arg5[%c17, %c0_258, %c0_259] : memref<32x108x64xf32, #tpu.memory_space<vmem>>, vector<1x108x64xf32>
    %388 = vector.shape_cast %387 : vector<1x108x64xf32> to vector<108x64xf32>
    %cst_260 = arith.constant dense<0.000000e+00> : vector<1x64xf32>
    %389 = tpu.matmul %386, %388, %cst_260 {dimension_numbers = #tpu.dot_dimension_numbers<[1], [0], [0], [1], [0, 0, 1, 1], [], []>} : vector<1x108xf32>, vector<108x64xf32>, vector<1x64xf32> -> vector<1x64xf32>
    %390 = arith.addf %385, %389 : vector<1x64xf32>
    %391 = vector.extract_strided_slice %299 {offsets = [18, 0], sizes = [1, 108], strides = [1, 1]} : vector<32x108xf32> to vector<1x108xf32>
    %c18 = arith.constant 18 : index
    %c0_261 = arith.constant 0 : index
    %c0_262 = arith.constant 0 : index
    %392 = vector.load %arg5[%c18, %c0_261, %c0_262] : memref<32x108x64xf32, #tpu.memory_space<vmem>>, vector<1x108x64xf32>
    %393 = vector.shape_cast %392 : vector<1x108x64xf32> to vector<108x64xf32>
    %cst_263 = arith.constant dense<0.000000e+00> : vector<1x64xf32>
    %394 = tpu.matmul %391, %393, %cst_263 {dimension_numbers = #tpu.dot_dimension_numbers<[1], [0], [0], [1], [0, 0, 1, 1], [], []>} : vector<1x108xf32>, vector<108x64xf32>, vector<1x64xf32> -> vector<1x64xf32>
    %395 = arith.addf %390, %394 : vector<1x64xf32>
    %396 = vector.extract_strided_slice %299 {offsets = [19, 0], sizes = [1, 108], strides = [1, 1]} : vector<32x108xf32> to vector<1x108xf32>
    %c19 = arith.constant 19 : index
    %c0_264 = arith.constant 0 : index
    %c0_265 = arith.constant 0 : index
    %397 = vector.load %arg5[%c19, %c0_264, %c0_265] : memref<32x108x64xf32, #tpu.memory_space<vmem>>, vector<1x108x64xf32>
    %398 = vector.shape_cast %397 : vector<1x108x64xf32> to vector<108x64xf32>
    %cst_266 = arith.constant dense<0.000000e+00> : vector<1x64xf32>
    %399 = tpu.matmul %396, %398, %cst_266 {dimension_numbers = #tpu.dot_dimension_numbers<[1], [0], [0], [1], [0, 0, 1, 1], [], []>} : vector<1x108xf32>, vector<108x64xf32>, vector<1x64xf32> -> vector<1x64xf32>
    %400 = arith.addf %395, %399 : vector<1x64xf32>
    %401 = vector.extract_strided_slice %299 {offsets = [20, 0], sizes = [1, 108], strides = [1, 1]} : vector<32x108xf32> to vector<1x108xf32>
    %c20 = arith.constant 20 : index
    %c0_267 = arith.constant 0 : index
    %c0_268 = arith.constant 0 : index
    %402 = vector.load %arg5[%c20, %c0_267, %c0_268] : memref<32x108x64xf32, #tpu.memory_space<vmem>>, vector<1x108x64xf32>
    %403 = vector.shape_cast %402 : vector<1x108x64xf32> to vector<108x64xf32>
    %cst_269 = arith.constant dense<0.000000e+00> : vector<1x64xf32>
    %404 = tpu.matmul %401, %403, %cst_269 {dimension_numbers = #tpu.dot_dimension_numbers<[1], [0], [0], [1], [0, 0, 1, 1], [], []>} : vector<1x108xf32>, vector<108x64xf32>, vector<1x64xf32> -> vector<1x64xf32>
    %405 = arith.addf %400, %404 : vector<1x64xf32>
    %406 = vector.extract_strided_slice %299 {offsets = [21, 0], sizes = [1, 108], strides = [1, 1]} : vector<32x108xf32> to vector<1x108xf32>
    %c21 = arith.constant 21 : index
    %c0_270 = arith.constant 0 : index
    %c0_271 = arith.constant 0 : index
    %407 = vector.load %arg5[%c21, %c0_270, %c0_271] : memref<32x108x64xf32, #tpu.memory_space<vmem>>, vector<1x108x64xf32>
    %408 = vector.shape_cast %407 : vector<1x108x64xf32> to vector<108x64xf32>
    %cst_272 = arith.constant dense<0.000000e+00> : vector<1x64xf32>
    %409 = tpu.matmul %406, %408, %cst_272 {dimension_numbers = #tpu.dot_dimension_numbers<[1], [0], [0], [1], [0, 0, 1, 1], [], []>} : vector<1x108xf32>, vector<108x64xf32>, vector<1x64xf32> -> vector<1x64xf32>
    %410 = arith.addf %405, %409 : vector<1x64xf32>
    %411 = vector.extract_strided_slice %299 {offsets = [22, 0], sizes = [1, 108], strides = [1, 1]} : vector<32x108xf32> to vector<1x108xf32>
    %c22 = arith.constant 22 : index
    %c0_273 = arith.constant 0 : index
    %c0_274 = arith.constant 0 : index
    %412 = vector.load %arg5[%c22, %c0_273, %c0_274] : memref<32x108x64xf32, #tpu.memory_space<vmem>>, vector<1x108x64xf32>
    %413 = vector.shape_cast %412 : vector<1x108x64xf32> to vector<108x64xf32>
    %cst_275 = arith.constant dense<0.000000e+00> : vector<1x64xf32>
    %414 = tpu.matmul %411, %413, %cst_275 {dimension_numbers = #tpu.dot_dimension_numbers<[1], [0], [0], [1], [0, 0, 1, 1], [], []>} : vector<1x108xf32>, vector<108x64xf32>, vector<1x64xf32> -> vector<1x64xf32>
    %415 = arith.addf %410, %414 : vector<1x64xf32>
    %416 = vector.extract_strided_slice %299 {offsets = [23, 0], sizes = [1, 108], strides = [1, 1]} : vector<32x108xf32> to vector<1x108xf32>
    %c23 = arith.constant 23 : index
    %c0_276 = arith.constant 0 : index
    %c0_277 = arith.constant 0 : index
    %417 = vector.load %arg5[%c23, %c0_276, %c0_277] : memref<32x108x64xf32, #tpu.memory_space<vmem>>, vector<1x108x64xf32>
    %418 = vector.shape_cast %417 : vector<1x108x64xf32> to vector<108x64xf32>
    %cst_278 = arith.constant dense<0.000000e+00> : vector<1x64xf32>
    %419 = tpu.matmul %416, %418, %cst_278 {dimension_numbers = #tpu.dot_dimension_numbers<[1], [0], [0], [1], [0, 0, 1, 1], [], []>} : vector<1x108xf32>, vector<108x64xf32>, vector<1x64xf32> -> vector<1x64xf32>
    %420 = arith.addf %415, %419 : vector<1x64xf32>
    %421 = vector.extract_strided_slice %299 {offsets = [24, 0], sizes = [1, 108], strides = [1, 1]} : vector<32x108xf32> to vector<1x108xf32>
    %c24 = arith.constant 24 : index
    %c0_279 = arith.constant 0 : index
    %c0_280 = arith.constant 0 : index
    %422 = vector.load %arg5[%c24, %c0_279, %c0_280] : memref<32x108x64xf32, #tpu.memory_space<vmem>>, vector<1x108x64xf32>
    %423 = vector.shape_cast %422 : vector<1x108x64xf32> to vector<108x64xf32>
    %cst_281 = arith.constant dense<0.000000e+00> : vector<1x64xf32>
    %424 = tpu.matmul %421, %423, %cst_281 {dimension_numbers = #tpu.dot_dimension_numbers<[1], [0], [0], [1], [0, 0, 1, 1], [], []>} : vector<1x108xf32>, vector<108x64xf32>, vector<1x64xf32> -> vector<1x64xf32>
    %425 = arith.addf %420, %424 : vector<1x64xf32>
    %426 = vector.extract_strided_slice %299 {offsets = [25, 0], sizes = [1, 108], strides = [1, 1]} : vector<32x108xf32> to vector<1x108xf32>
    %c25 = arith.constant 25 : index
    %c0_282 = arith.constant 0 : index
    %c0_283 = arith.constant 0 : index
    %427 = vector.load %arg5[%c25, %c0_282, %c0_283] : memref<32x108x64xf32, #tpu.memory_space<vmem>>, vector<1x108x64xf32>
    %428 = vector.shape_cast %427 : vector<1x108x64xf32> to vector<108x64xf32>
    %cst_284 = arith.constant dense<0.000000e+00> : vector<1x64xf32>
    %429 = tpu.matmul %426, %428, %cst_284 {dimension_numbers = #tpu.dot_dimension_numbers<[1], [0], [0], [1], [0, 0, 1, 1], [], []>} : vector<1x108xf32>, vector<108x64xf32>, vector<1x64xf32> -> vector<1x64xf32>
    %430 = arith.addf %425, %429 : vector<1x64xf32>
    %431 = vector.extract_strided_slice %299 {offsets = [26, 0], sizes = [1, 108], strides = [1, 1]} : vector<32x108xf32> to vector<1x108xf32>
    %c26 = arith.constant 26 : index
    %c0_285 = arith.constant 0 : index
    %c0_286 = arith.constant 0 : index
    %432 = vector.load %arg5[%c26, %c0_285, %c0_286] : memref<32x108x64xf32, #tpu.memory_space<vmem>>, vector<1x108x64xf32>
    %433 = vector.shape_cast %432 : vector<1x108x64xf32> to vector<108x64xf32>
    %cst_287 = arith.constant dense<0.000000e+00> : vector<1x64xf32>
    %434 = tpu.matmul %431, %433, %cst_287 {dimension_numbers = #tpu.dot_dimension_numbers<[1], [0], [0], [1], [0, 0, 1, 1], [], []>} : vector<1x108xf32>, vector<108x64xf32>, vector<1x64xf32> -> vector<1x64xf32>
    %435 = arith.addf %430, %434 : vector<1x64xf32>
    %436 = vector.extract_strided_slice %299 {offsets = [27, 0], sizes = [1, 108], strides = [1, 1]} : vector<32x108xf32> to vector<1x108xf32>
    %c27 = arith.constant 27 : index
    %c0_288 = arith.constant 0 : index
    %c0_289 = arith.constant 0 : index
    %437 = vector.load %arg5[%c27, %c0_288, %c0_289] : memref<32x108x64xf32, #tpu.memory_space<vmem>>, vector<1x108x64xf32>
    %438 = vector.shape_cast %437 : vector<1x108x64xf32> to vector<108x64xf32>
    %cst_290 = arith.constant dense<0.000000e+00> : vector<1x64xf32>
    %439 = tpu.matmul %436, %438, %cst_290 {dimension_numbers = #tpu.dot_dimension_numbers<[1], [0], [0], [1], [0, 0, 1, 1], [], []>} : vector<1x108xf32>, vector<108x64xf32>, vector<1x64xf32> -> vector<1x64xf32>
    %440 = arith.addf %435, %439 : vector<1x64xf32>
    %441 = vector.extract_strided_slice %299 {offsets = [28, 0], sizes = [1, 108], strides = [1, 1]} : vector<32x108xf32> to vector<1x108xf32>
    %c28 = arith.constant 28 : index
    %c0_291 = arith.constant 0 : index
    %c0_292 = arith.constant 0 : index
    %442 = vector.load %arg5[%c28, %c0_291, %c0_292] : memref<32x108x64xf32, #tpu.memory_space<vmem>>, vector<1x108x64xf32>
    %443 = vector.shape_cast %442 : vector<1x108x64xf32> to vector<108x64xf32>
    %cst_293 = arith.constant dense<0.000000e+00> : vector<1x64xf32>
    %444 = tpu.matmul %441, %443, %cst_293 {dimension_numbers = #tpu.dot_dimension_numbers<[1], [0], [0], [1], [0, 0, 1, 1], [], []>} : vector<1x108xf32>, vector<108x64xf32>, vector<1x64xf32> -> vector<1x64xf32>
    %445 = arith.addf %440, %444 : vector<1x64xf32>
    %446 = vector.extract_strided_slice %299 {offsets = [29, 0], sizes = [1, 108], strides = [1, 1]} : vector<32x108xf32> to vector<1x108xf32>
    %c29 = arith.constant 29 : index
    %c0_294 = arith.constant 0 : index
    %c0_295 = arith.constant 0 : index
    %447 = vector.load %arg5[%c29, %c0_294, %c0_295] : memref<32x108x64xf32, #tpu.memory_space<vmem>>, vector<1x108x64xf32>
    %448 = vector.shape_cast %447 : vector<1x108x64xf32> to vector<108x64xf32>
    %cst_296 = arith.constant dense<0.000000e+00> : vector<1x64xf32>
    %449 = tpu.matmul %446, %448, %cst_296 {dimension_numbers = #tpu.dot_dimension_numbers<[1], [0], [0], [1], [0, 0, 1, 1], [], []>} : vector<1x108xf32>, vector<108x64xf32>, vector<1x64xf32> -> vector<1x64xf32>
    %450 = arith.addf %445, %449 : vector<1x64xf32>
    %451 = vector.extract_strided_slice %299 {offsets = [30, 0], sizes = [1, 108], strides = [1, 1]} : vector<32x108xf32> to vector<1x108xf32>
    %c30 = arith.constant 30 : index
    %c0_297 = arith.constant 0 : index
    %c0_298 = arith.constant 0 : index
    %452 = vector.load %arg5[%c30, %c0_297, %c0_298] : memref<32x108x64xf32, #tpu.memory_space<vmem>>, vector<1x108x64xf32>
    %453 = vector.shape_cast %452 : vector<1x108x64xf32> to vector<108x64xf32>
    %cst_299 = arith.constant dense<0.000000e+00> : vector<1x64xf32>
    %454 = tpu.matmul %451, %453, %cst_299 {dimension_numbers = #tpu.dot_dimension_numbers<[1], [0], [0], [1], [0, 0, 1, 1], [], []>} : vector<1x108xf32>, vector<108x64xf32>, vector<1x64xf32> -> vector<1x64xf32>
    %455 = arith.addf %450, %454 : vector<1x64xf32>
    %456 = vector.extract_strided_slice %299 {offsets = [31, 0], sizes = [1, 108], strides = [1, 1]} : vector<32x108xf32> to vector<1x108xf32>
    %c31 = arith.constant 31 : index
    %c0_300 = arith.constant 0 : index
    %c0_301 = arith.constant 0 : index
    %457 = vector.load %arg5[%c31, %c0_300, %c0_301] : memref<32x108x64xf32, #tpu.memory_space<vmem>>, vector<1x108x64xf32>
    %458 = vector.shape_cast %457 : vector<1x108x64xf32> to vector<108x64xf32>
    %cst_302 = arith.constant dense<0.000000e+00> : vector<1x64xf32>
    %459 = tpu.matmul %456, %458, %cst_302 {dimension_numbers = #tpu.dot_dimension_numbers<[1], [0], [0], [1], [0, 0, 1, 1], [], []>} : vector<1x108xf32>, vector<108x64xf32>, vector<1x64xf32> -> vector<1x64xf32>
    %460 = arith.addf %455, %459 : vector<1x64xf32>
    %c0_303 = arith.constant 0 : index
    %c0_304 = arith.constant 0 : index
    %461 = vector.load %arg9[%c0_303, %c0_304] : memref<1x64xf32, #tpu.memory_space<vmem>>, vector<1x64xf32>
    tpu.vector_store %arg9[%c0_303, %c0_304], %460 {strides = array<i32>} : memref<1x64xf32, #tpu.memory_space<vmem>>, vector<1x64xf32>,
    return
  }
}

</mosaic_0001>

<bundles_post_ra>
// kernel: conv_encoder_forward.1
= control target key start
LH: loop header
LB: loop body
LE: loop exit
PB: predicated region body
PF: predicated region fallthrough
CT: control target
= control target key end

     0   :  { %s10988_s13 = smov 71   ;;  %s13540_s0 = inlined_call_operand.vmem [shape: f32[4,1728], index: 0, kind: input, shape index: {}]   ;;  %s13541_s1 = inlined_call_operand.vmem [shape: f32[9,16,4], index: 1, kind: input, shape index: {}]   ;;  %s13542_s2 = inlined_call_operand.vmem [shape: f32[16,1], index: 2, kind: input, shape index: {}]   ;;  %s13543_s3 = inlined_call_operand.vmem [shape: f32[9,32,16], index: 3, kind: input, shape index: {}]   ;;  %s13544_s4 = inlined_call_operand.vmem [shape: f32[32,1], index: 4, kind: input, shape index: {}]   ;;  %s13545_s5 = inlined_call_operand.vmem [shape: f32[32,108,64], index: 5, kind: input, shape index: {}]   ;;  %s13546_s6 = inlined_call_operand.vmem [shape: f32[1,64], index: 6, kind: input, shape index: {}]   ;;  %s13547_s7 = inlined_call_operand.vmem [shape: f32[1,108], index: 7, kind: input, shape index: {}]   ;;  %s13548_s8 = inlined_call_operand.vmem [shape: f32[1,108], index: 8, kind: input, shape index: {}]   ;;  %s13549_s9 = inlined_call_operand.hbm [shape: f32[1,64], index: 9, kind: output, shape index: {}]  }
   0x1   :  { %v11082_v0 = vld [vmem:[%s13548_s8] ss:$0 sm:$0xff] }
   0x2   :  { %v11087_v1 = vld [vmem:[%s13547_s7] ss:$0 sm:$0xff]  ;;  %61 = vrot.lane.b32.xlu1 %v11082_v0, %s10988_s13 }
   0x3   :  { %48 = vrot.lane.b32.xlu0 %v11087_v1, %s10988_s13 }
   0x4   :  { %14 = vsyncpa [#allocation3], 0  ;;  %s10989_s14 = smov 112   ;;  %s10990_s15 = smov 4   ;;  %v11101_v2 = vld [vmem:[%s13540_s0 + $0x30] sm:$0xff]  ;;  %v11106_v3 = vld [vmem:[%s13540_s0 + $0x28] sm:$0xff] }
   0x5   :  { %s10991_s8 = smov 72   ;;  %s10992_s7 = smov 67   ;;  %v11113_v4 = vld [vmem:[%s13541_s1 + $0x10] sm:$0xff]  ;;  %vm79_vm0 = vcmask 31744   ;;  %vm51_vm1 = vcmask 580608   ;;  %vm258_vm2 = vcmask 916480  }
   0x6   :  { %255 = vrot.lane.b32.xlu1 %v11087_v1, %s10989_s14  ;;  %s10993_s20 = smov 36   ;;  %8676 = vmatprep.mubr.msk.f32.mxu0 %vm79_vm0, %v11113_v4  ;;  %s10994_s23 = smov 124   ;;  %vm1123_vm3 = vcmask 588800   ;;  %vm361_vm4 = vcmask 547840   ;;  %vm963_vm5 = vcmask 293888   ;;  %v36_v30 = vld [vmem:[%s13540_s0 + $0x8] sm:$0xff] }
   0x7   :  { %69 = vrot.lane.b32.xlu0 %v11087_v1, %s10990_s15  ;;  %8721 = vmatprep.mubr.msk.f32.mxu1 %vm79_vm0, %v11113_v4  ;;  %s10995_s24 = smov 57   ;;  %s10996_s25 = smov 16   ;;  %vm86_vm6 = vcmask 1043456   ;;  %v11136_v36 = vld [vmem:[%s13541_s1 + $0x18] sm:$0xff]  ;;  %v11142_v37 = vld [vmem:[%s13541_s1] sm:$0xff]  ;;  %v749_v41 = vcombine.high %v36_v30, %v36_v30  ;;  %v37_v42 = vld [vmem:[%s13540_s0 + $0x10] sm:$0xff] }
   0x8   :  { %s10997_s28 = smov 56   ;;  %s10998_s12 = smov 61   ;;  %v11150_v38 = vld [vmem:[%s13540_s0] sm:$0xff]  ;;  %v38_v43 = vld [vmem:[%s13540_s0 + $0x18] sm:$0xff]  ;;  %v844_v44 = vcombine.high %v37_v42, %v37_v42  ;;  %v11012_v48 = vmov 0   ;;  %vm170_vm7 = vcmask 465920  }
   0x9   :  { %v553_v40 = vcombine.high %v11150_v38, %v11150_v38  ;;  %s10999_s16 = smov 20   ;;  %s11000_s17 = smov 40   ;;  %v39_v45 = vld [vmem:[%s13540_s0 + $0x20] sm:$0xff]  ;;  %v2029_v46 = vcombine.high %v38_v43, %v38_v43  ;;  %10876 = vset.pattern.permute.xlu1 %v11012_v48  ;;  %10875 = vset.pattern.permute.xlu0 %v11012_v48  ;;  %vm271_vm8 = vcmask 130048   ;;  %v11193_v55 = vld [vmem:[%s13541_s1 + $0x8] sm:$0xff]  ;;  %vm1133_vm9 = vcmask 457728  }
   0xa   :  { %358 = vrot.lane.b32.xlu1 %v11082_v0, %s10992_s7  ;;  %s11001_s18 = smov 60   ;;  %s11002_s21 = smov 13   ;;  %v2772_v47 = vcombine.high %v39_v45, %v39_v45  ;;  %v11201_v58 = vld [vmem:[%s13541_s1 + $0x20] sm:$0xff]  ;;  %vm374_vm10 = vcmask 498688   ;;  %v11218_v63 = vld [vmem:[%s13541_s1 + $0x28] sm:$0xff]  ;;  %vm558_vm11 = vcmask 162816   ;;  %v3104_v48 = vcombine.high %v11101_v2, %v11101_v2 }
   0xb   :  { %1120 = vrot.lane.b32.xlu0 %v11087_v1, %s10991_s8  ;;  %s11005_s26 = smov 80   ;;  %s11006_s27 = smov 120   ;;  %vm1295_vm12 = vcmask 326656   ;;  %vm1380_vm13 = vcmask 490496   ;;  %vm652_vm14 = vcmask 105472   ;;  %vm849_vm15 = vcmask 818176  }
   0xc   :  { %s11007_s29 = smov 12   ;;  %s11008_s11 = smov 93  }
   0xd   :  { %s11009_s13 = smov 52   ;;  %s11010_s7 = smov 32  }
   0xe   :  { %960 = vrot.lane.b32.xlu1 %v11101_v2, %s10993_s20  ;;  %s11011_s0 = smov 92   ;;  %s11013_s22 = smov 45  }
   0xf   :  { %958 = vrot.lane.b32.xlu0 %v11106_v3, %s10993_s20  ;;  %s11022_s30 = smov 73  }
  0x74   :  { %v62_v5 = vpop.permute.xlu1 %61 }
  0x75   :  { %v49_v6 = vpop.permute.xlu0 %48  ;;  %v63_v7 = vrot.slane %v62_v5, 4 }
  0x76   :  { %v50_v8 = vrot.slane %v49_v6, 4 }
  0x77   :  { %v64_v13 = vsel %vm51_vm1, %v63_v7, %v62_v5  ;;  %v11225_v7 = vld [vmem:[%s13541_s1 + $0x30] sm:$0xff] }
  0x78   :  { %v52_v9 = vsel %vm51_vm1, %v50_v8, %v49_v6  ;;  %v256_v11 = vpop.permute.xlu1 %255  ;;  %vm2203_vm1 = vcmask 678912  }
  0x79   :  { %v54_v10 = vmul.f32 %v52_v9, %v11101_v2  ;;  %v70_v12 = vpop.permute.xlu0 %69  ;;  %v257_v14 = vrot.slane %v256_v11, 4 }
  0x7a   :  { %v72_v15 = vmul.f32 %v70_v12, %v11106_v3  ;;  %v11244_v12 = vld [vmem:[%s13541_s1 + $0x38] sm:$0xff] }
  0x7b   :  { %v66_v16 = vmul.f32 %v64_v13, %v54_v10  ;;  %v259_v17 = vsel %vm258_vm2, %v257_v14, %v256_v11  ;;  %vm754_vm2 = vcmask 654336  }
  0x7c   :  { %77 = vrot.lane.b32.xlu0 %v72_v15, %s10994_s23  ;;  %v11121_v20 = vpop.permute.xlu1 %358  ;;  %v261_v21 = vmul.f32 %v259_v17, %v11106_v3  ;;  %v11253_v15 = vld [vmem:[%s13541_s1 + $0x40] sm:$0xff] }
  0x7d   :  { %166 = vrot.lane.b32.xlu1 %v66_v16, %s10995_s24  ;;  %v1121_v18 = vpop.permute.xlu0 %1120  ;;  %v165_v19 = vcombine.high %v66_v16, %v66_v16  ;;  %v360_v23 = vrot.slane %v11121_v20, 4 }
  0x7e   :  { %v1122_v22 = vrot.slane %v1121_v18, 4  ;;  %v266_v28 = vcombine.high %v261_v21, %v261_v21 }
  0x7f   :  { %v362_v31 = vsel %vm361_vm4, %v360_v23, %v11121_v20  ;;  %vm1623_vm4 = vcmask 97280  }
  0x80   :  { %v1124_v24 = vsel %vm1123_vm3, %v1122_v22, %v1121_v18  ;;  %168 = vrot.lane.b32.xlu0 %v165_v19, %s10995_s24  ;;  %v961_v26 = vpop.permute.xlu1 %960  ;;  %v364_v35 = vmul.f32 %v362_v31, %v36_v30  ;;  %s11003_s24 = smov 100   ;;  %v11270_v22 = vld [vmem:[%s13541_s1 + $0x48] sm:$0xff] }
  0x81   :  { %267 = vrot.lane.b32.xlu1 %v261_v21, %s10996_s25  ;;  %v959_v25 = vpop.permute.xlu0 %958  ;;  %v1126_v27 = vmul.f32 %v1124_v24, %v11101_v2 }
  0x82   :  { %v962_v29 = vrot.slane %v959_v25, 4  ;;  %v369_v39 = vcombine.high %v364_v35, %v364_v35 }
  0x83   :  { %v1128_v34 = vcombine.high %v1126_v27, %v1126_v27 }
  0x84   :  { %269 = vrot.lane.b32.xlu0 %v266_v28, %s10996_s25  ;;  %v964_v32 = vsel %vm963_vm5, %v962_v29, %v961_v26  ;;  %s11004_s25 = smov 83   ;;  %v11280_v26 = vld [vmem:[%s13541_s1 + $0x50] sm:$0xff]  ;;  %vm1945_vm5 = vcmask 760832  }
  0x85   :  { %1129 = vrot.lane.b32.xlu1 %v1126_v27, %s10997_s28  ;;  %v966_v33 = vmul.f32 %v11087_v1, %v964_v32  ;;  %v11299_v32 = vld [vmem:[%s13541_s1 + $0x58] sm:$0xff] }
  0x87   :  { %8719 = vmatprep.subr.msk.mxu1 %vm86_vm6, %v966_v33 }
  0x88   :  { %1131 = vrot.lane.b32.xlu0 %v1128_v34, %s10997_s28  ;;  %8720 = vmatpush3.msk.msra.mxu1 %vm86_vm6, %v966_v33 }
  0x89   :  { %370 = vrot.lane.b32.xlu1 %v364_v35, %s10998_s12  ;;  %8722 = vmatmul.mubr.msk.f32.vlgmr.msra.gmra.mrb[0].mxu1 %vm79_vm0, %v11136_v36 }
  0x8a   :  { %8726 = vmatprep.mubr.msk.f32.mxu1 %vm79_vm0, %v11142_v37 }
  0x8c   :  { %372 = vrot.lane.b32.xlu0 %v369_v39, %s10998_s12 }
  0x8d   :  { %554 = vrot.lane.b32.xlu1 %v11150_v38, %s10999_s16 }
  0x90   :  { %556 = vrot.lane.b32.xlu0 %v553_v40, %s10999_s16 }
  0x91   :  { %1291 = vrot.lane.b32.xlu1 %v553_v40, %s11000_s17  ;;  %v11307_v40 = vld [vmem:[%s13541_s1 + $0x60] sm:$0xff] }
  0x94   :  { %1293 = vrot.lane.b32.xlu0 %v36_v30, %s11000_s17 }
  0x95   :  { %1376 = vrot.lane.b32.xlu1 %v36_v30, %s11001_s18 }
  0x98   :  { %1378 = vrot.lane.b32.xlu0 %v749_v41, %s11001_s18 }
  0x99   :  { %647 = vrot.lane.b32.xlu1 %v37_v42, %s11002_s21 }
  0x9c   :  { %649 = vrot.lane.b32.xlu0 %v38_v43, %s11002_s21 }
  0x9d   :  { %845 = vrot.lane.b32.xlu1 %v37_v42, %s11003_s24 }
  0xa0   :  { %847 = vrot.lane.b32.xlu0 %v844_v44, %s11003_s24  ;;  %s11018_s24 = smov 55  }
  0xa1   :  { %2200 = vrot.lane.b32.xlu1 %v11082_v0, %s11004_s25  ;;  %s11019_s25 = smov 108  }
  0xa4   :  { %750 = vrot.lane.b32.xlu0 %v749_v41, %s11005_s26  ;;  %v2375_v41 = vcombine.high %v11106_v3, %v11106_v3 }
  0xa5   :  { %752 = vrot.lane.b32.xlu1 %v37_v42, %s11005_s26  ;;  %s11020_s26 = smov 107  }
  0xa8   :  { %1538 = vrot.lane.b32.xlu0 %v844_v44, %s11006_s27  ;;  %s11014_s27 = smov 24  }
  0xa9   :  { %1619 = vrot.lane.b32.xlu1 %v844_v44, %s11007_s29 }
  0xac   :  { %1621 = vrot.lane.b32.xlu0 %v38_v43, %s11007_s29 }
  0xad   :  { %1940 = vrot.lane.b32.xlu1 %v39_v45, %s11008_s11 }
  0xb0   :  { %1942 = vrot.lane.b32.xlu0 %v11106_v3, %s11008_s11  ;;  %s11015_s11 = smov 44  }
  0xb1   :  { %2115 = vrot.lane.b32.xlu1 %v2029_v46, %s11009_s13 }
  0xb4   :  { %2117 = vrot.lane.b32.xlu0 %v39_v45, %s11009_s13 }
  0xb5   :  { %2030 = vrot.lane.b32.xlu1 %v38_v43, %s11010_s7  ;;  %v11327_v43 = vld [vmem:[%s13541_s1 + $0x68] sm:$0xff] }
  0xb8   :  { %2032 = vrot.lane.b32.xlu0 %v2029_v46, %s11010_s7  ;;  %v11336_v46 = vld [vmem:[%s13541_s1 + $0x70] sm:$0xff] }
  0xb9   :  { %2773 = vrot.lane.b32.xlu1 %v39_v45, %s10991_s8 }
  0xbc   :  { %2775 = vrot.lane.b32.xlu0 %v2772_v47, %s10991_s8 }
  0xbd   :  { %2857 = vrot.lane.b32.xlu1 %v2772_v47, %s11011_s0 }
  0xc0   :  { %2859 = vrot.lane.b32.xlu0 %v11106_v3, %s11011_s0 }
  0xee   :  { %v78_v49 = vpop.permute.xlu0 %77 }
  0xef   :  { %v167_v50 = vpop.permute.xlu1 %166  ;;  %8674 = vmatprep.subr.msk.mxu0 %vm86_vm6, %v78_v49 }
  0xf0   :  { %8675 = vmatpush3.msk.msra.mxu0 %vm86_vm6, %v78_v49  ;;  %v11356_v49 = vld [vmem:[%s13541_s1 + $0x78] sm:$0xff] }
  0xf1   :  { %8677 = vmatmul.mubr.msk.f32.vlgmr.msra.gmra.mrb[0].mxu0 %vm79_vm0, %v11136_v36 }
  0xf2   :  { %v169_v51 = vpop.permute.xlu0 %168  ;;  %8681 = vmatprep.mubr.msk.f32.mxu0 %vm79_vm0, %v11142_v37 }
  0xf3   :  { %v171_v52 = vsel %vm170_vm7, %v167_v50, %v169_v51  ;;  %v268_v53 = vpop.permute.xlu1 %267  ;;  %v937_v50 = vld [vmem:[%s13542_s2 + $0x8] sm:$0xff]  ;;  %vm2119_vm7 = vcmask 424960  }
  0xf4   :  { %8679 = vmatprep.subr.msk.mxu0 %vm86_vm6, %v171_v52  ;;  %v11387_v51 = vld [vmem:[%s13541_s1 + $0x88] sm:$0xff] }
  0xf5   :  { %8680 = vmatpush3.msk.msra.mxu0 %vm86_vm6, %v171_v52 }
  0xf6   :  { %v270_v54 = vpop.permute.xlu0 %269 }
  0xf7   :  { %v272_v56 = vsel %vm271_vm8, %v268_v53, %v270_v54  ;;  %v1130_v57 = vpop.permute.xlu1 %1129 }
  0xf8   :  { %8684 = vmatprep.subr.msk.mxu0 %vm86_vm6, %v272_v56  ;;  %8724 = vmatprep.subr.msk.mxu1 %vm86_vm6, %v272_v56 }
  0xf9   :  { %8682 = vmatmul.mubr.msk.f32.vlgmr.msra.gmra.mrb[0].mxu0 %vm79_vm0, %v11193_v55  ;;  %8725 = vmatpush3.msk.msra.mxu1 %vm86_vm6, %v272_v56 }
  0xfa   :  { %8685 = vmatpush3.msk.msra.mxu0 %vm86_vm6, %v272_v56  ;;  %8727 = vmatmul.mubr.msk.f32.vlgmr.msra.gmra.mrb[0].mxu1 %vm79_vm0, %v11193_v55  ;;  %v1132_v59 = vpop.permute.xlu0 %1131 }
  0xfb   :  { %v1134_v60 = vsel %vm1133_vm9, %v1130_v57, %v1132_v59  ;;  %v371_v61 = vpop.permute.xlu1 %370  ;;  %8686 = vmatprep.mubr.msk.f32.mxu0 %vm79_vm0, %v11201_v58  ;;  %8731 = vmatprep.mubr.msk.f32.mxu1 %vm79_vm0, %v11201_v58  ;;  %vm2034_vm9 = vcmask 261120  }
  0xfc   :  { %8729 = vmatprep.subr.msk.mxu1 %vm86_vm6, %v1134_v60 }
  0xfd   :  { %8730 = vmatpush3.msk.msra.mxu1 %vm86_vm6, %v1134_v60 }
  0xfe   :  { %v373_v62 = vpop.permute.xlu0 %372 }
  0xff   :  { %v375_v5 = vsel %vm374_vm10, %v371_v61, %v373_v62  ;;  %v555_v6 = vpop.permute.xlu1 %554 }
 0x100   :  { %8689 = vmatprep.subr.msk.mxu0 %vm86_vm6, %v375_v5 }
 0x101   :  { %8687 = vmatmul.mubr.msk.f32.vlgmr.msra.gmra.mrb[0].mxu0 %vm79_vm0, %v11218_v63 }
 0x102   :  { %8690 = vmatpush3.msk.msra.mxu0 %vm86_vm6, %v375_v5  ;;  %8732 = vmatmul.mubr.msk.f32.vlgmr.msra.gmra.mrb[0].mxu1 %vm79_vm0, %v11218_v63  ;;  %v557_v8 = vpop.permute.xlu0 %556 }
 0x103   :  { %v559_v9 = vsel %vm558_vm11, %v555_v6, %v557_v8  ;;  %v1292_v10 = vpop.permute.xlu1 %1291  ;;  %8691 = vmatprep.mubr.msk.f32.mxu0 %vm79_vm0, %v11225_v7  ;;  %8694 = vmatprep.subr.msk.mxu0 %vm86_vm6, %v11150_v38 }
 0x104   :  { %8734 = vmatprep.subr.msk.mxu1 %vm86_vm6, %v559_v9  ;;  %8736 = vmatprep.mubr.msk.f32.mxu1 %vm79_vm0, %v11225_v7 }
 0x105   :  { %8735 = vmatpush3.msk.msra.mxu1 %vm86_vm6, %v559_v9 }
 0x106   :  { %v1294_v11 = vpop.permute.xlu0 %1293 }
 0x107   :  { %v1296_v13 = vsel %vm1295_vm12, %v1292_v10, %v1294_v11  ;;  %v1377_v14 = vpop.permute.xlu1 %1376 }
 0x108   :  { %8739 = vmatprep.subr.msk.mxu1 %vm86_vm6, %v1296_v13 }
 0x109   :  { %8692 = vmatmul.mubr.msk.f32.vlgmr.msra.gmra.mrb[0].mxu0 %vm79_vm0, %v11244_v12 }
 0x10a   :  { %8695 = vmatpush3.msk.msra.mxu0 %vm86_vm6, %v11150_v38  ;;  %8737 = vmatmul.mubr.msk.f32.vlgmr.msra.gmra.mrb[0].mxu1 %vm79_vm0, %v11244_v12  ;;  %v1379_v16 = vpop.permute.xlu0 %1378 }
 0x10b   :  { %8699 = vmatprep.subr.msk.mxu0 %vm86_vm6, %v559_v9  ;;  %8740 = vmatpush3.msk.msra.mxu1 %vm86_vm6, %v1296_v13  ;;  %v1381_v17 = vsel %vm1380_vm13, %v1377_v14, %v1379_v16  ;;  %v648_v18 = vpop.permute.xlu1 %647 }
 0x10c   :  { %v651_v19 = vrot.slane %v648_v18, 4  ;;  %8744 = vmatprep.subr.msk.mxu1 %vm86_vm6, %v1381_v17  ;;  %8696 = vmatprep.mubr.msk.f32.mxu0 %vm79_vm0, %v11253_v15 }
 0x10d   :  { %8741 = vmatprep.mubr.msk.f32.mxu1 %vm79_vm0, %v11253_v15 }
 0x10e   :  { %v650_v21 = vpop.permute.xlu0 %649 }
 0x10f   :  { %v653_v23 = vsel %vm652_vm14, %v651_v19, %v650_v21  ;;  %v846_v24 = vpop.permute.xlu1 %845  ;;  %vm2861_vm14 = vcmask 752640  }
 0x110   :  { %v11273_v25 = vmul.f32 %v11082_v0, %v653_v23 }
 0x111   :  { %8697 = vmatmul.mubr.msk.f32.vlgmr.msra.gmra.mrb[0].mxu0 %vm79_vm0, %v11270_v22 }
 0x112   :  { %8700 = vmatpush3.msk.msra.mxu0 %vm86_vm6, %v559_v9  ;;  %8742 = vmatmul.mubr.msk.f32.vlgmr.msra.gmra.mrb[0].mxu1 %vm79_vm0, %v11270_v22  ;;  %v848_v27 = vpop.permute.xlu0 %847 }
 0x113   :  { %8704 = vmatprep.subr.msk.mxu0 %vm86_vm6, %v11273_v25  ;;  %8745 = vmatpush3.msk.msra.mxu1 %vm86_vm6, %v1381_v17  ;;  %v11288_v28 = vsel %vm849_vm15, %v846_v24, %v848_v27  ;;  %v2201_v29 = vpop.permute.xlu1 %2200  ;;  %vm2213_vm15 = vcmask 367616  }
 0x114   :  { %v2202_v30 = vrot.slane %v2201_v29, 4  ;;  %8749 = vmatprep.subr.msk.mxu1 %vm86_vm6, %v11288_v28  ;;  %8701 = vmatprep.mubr.msk.f32.mxu0 %vm79_vm0, %v11280_v26 }
 0x115   :  { %8746 = vmatprep.mubr.msk.f32.mxu1 %vm79_vm0, %v11280_v26 }
 0x116   :  { %v2204_v31 = vsel %vm2203_vm1, %v2202_v30, %v2201_v29  ;;  %v751_v33 = vpop.permute.xlu0 %750  ;;  %vm3023_vm1 = vcmask 195584  }
 0x117   :  { %v2206_v34 = vmul.f32 %v2204_v31, %v11101_v2  ;;  %v753_v35 = vpop.permute.xlu1 %752 }
 0x118   :  { %v755_v39 = vsel %vm754_vm2, %v751_v33, %v753_v35  ;;  %vm3109_vm2 = vcmask 359424  }
 0x119   :  { %2209 = vrot.lane.b32.xlu1 %v2206_v34, %s11013_s22  ;;  %8702 = vmatmul.mubr.msk.f32.vlgmr.msra.gmra.mrb[0].mxu0 %vm79_vm0, %v11299_v32  ;;  %v2208_v38 = vcombine.high %v2206_v34, %v2206_v34 }
 0x11a   :  { %8705 = vmatpush3.msk.msra.mxu0 %vm86_vm6, %v11273_v25  ;;  %8747 = vmatmul.mubr.msk.f32.vlgmr.msra.gmra.mrb[0].mxu1 %vm79_vm0, %v11299_v32  ;;  %v1539_v42 = vpop.permute.xlu0 %1538 }
 0x11b   :  { %8750 = vmatpush3.msk.msra.mxu1 %vm86_vm6, %v11288_v28  ;;  %2211 = vrot.lane.b32.xlu0 %v2208_v38, %s11013_s22  ;;  %v1620_v44 = vpop.permute.xlu1 %1619 }
 0x11c   :  { %8706 = vmatprep.mubr.msk.f32.mxu0 %vm79_vm0, %v11307_v40  ;;  %8709 = vmatprep.subr.msk.mxu0 %vm86_vm6, %v755_v39 }
 0x11d   :  { %2376 = vrot.lane.b32.xlu1 %v11106_v3, %s10990_s15  ;;  %8751 = vmatprep.mubr.msk.f32.mxu1 %vm79_vm0, %v11307_v40 }
 0x11e   :  { %8754 = vmatprep.subr.msk.mxu1 %vm86_vm6, %v1539_v42  ;;  %v1622_v45 = vpop.permute.xlu0 %1621 }
 0x11f   :  { %2378 = vrot.lane.b32.xlu0 %v2375_v41, %s10990_s15  ;;  %v1624_v47 = vsel %vm1623_vm4, %v1620_v44, %v1622_v45  ;;  %v1941_v52 = vpop.permute.xlu1 %1940  ;;  %s11023_s15 = smov 21  }
 0x120   :  { %v1944_v54 = vrot.slane %v1941_v52, 4 }
 0x121   :  { %3019 = vrot.lane.b32.xlu1 %v2375_v41, %s11014_s27  ;;  %8707 = vmatmul.mubr.msk.f32.vlgmr.msra.gmra.mrb[0].mxu0 %vm79_vm0, %v11327_v43 }
 0x122   :  { %8710 = vmatpush3.msk.msra.mxu0 %vm86_vm6, %v755_v39  ;;  %8752 = vmatmul.mubr.msk.f32.vlgmr.msra.gmra.mrb[0].mxu1 %vm79_vm0, %v11327_v43  ;;  %v1943_v53 = vpop.permute.xlu0 %1942 }
 0x123   :  { %8714 = vmatprep.subr.msk.mxu0 %vm86_vm6, %v11288_v28  ;;  %3021 = vrot.lane.b32.xlu0 %v11101_v2, %s11014_s27  ;;  %v2116_v56 = vpop.permute.xlu1 %2115  ;;  %s11021_s27 = smov 76  }
 0x124   :  { %8711 = vmatprep.mubr.msk.f32.mxu0 %vm79_vm0, %v11336_v46  ;;  %8755 = vmatpush3.msk.msra.mxu1 %vm86_vm6, %v1539_v42 }
 0x125   :  { %2294 = vrot.lane.b32.xlu1 %v11106_v3, %s10989_s14  ;;  %8756 = vmatprep.mubr.msk.f32.mxu1 %vm79_vm0, %v11336_v46  ;;  %v11363_v3 = vld [vmem:[%s13541_s1 + $0x80] sm:$0xff]  ;;  %s11016_s1 = smov 68  }
 0x126   :  { %8759 = vmatprep.subr.msk.mxu1 %vm86_vm6, %v1624_v47  ;;  %v2118_v57 = vpop.permute.xlu0 %2117 }
 0x127   :  { %3105 = vrot.lane.b32.xlu0 %v11101_v2, %s11015_s11  ;;  %v936_v2 = vld [vmem:[%s13542_s2] sm:$0xff]  ;;  %v2120_v59 = vsel %vm2119_vm7, %v2116_v56, %v2118_v57  ;;  %s11017_s2 = smov 88  }
 0x129   :  { %8712 = vmatmul.mubr.msk.f32.vlgmr.msra.gmra.mrb[0].mxu0 %vm79_vm0, %v11356_v49  ;;  %3107 = vrot.lane.b32.xlu1 %v3104_v48, %s11015_s11 }
 0x12a   :  { %8715 = vmatpush3.msk.msra.mxu0 %vm86_vm6, %v11288_v28  ;;  %8757 = vmatmul.mubr.msk.f32.vlgmr.msra.gmra.mrb[0].mxu1 %vm79_vm0, %v11356_v49  ;;  %v2033_v60 = vpop.permute.xlu0 %2032 }
 0x12b   :  { %8716 = vmatprep.mubr.msk.f32.mxu0 %vm79_vm0, %v11363_v3  ;;  %8760 = vmatpush3.msk.msra.mxu1 %vm86_vm6, %v1624_v47 }
 0x12c   :  { %8764 = vmatprep.subr.msk.mxu0 %vm86_vm6, %v755_v39  ;;  %8761 = vmatprep.mubr.msk.f32.mxu1 %vm79_vm0, %v11363_v3 }
 0x12d   :  { %8809 = vmatprep.subr.msk.mxu1 %vm86_vm6, %v1539_v42  ;;  %945 = vperm.xlu1 %10876, %v937_v50  }
 0x12e   :  { %940 = vperm.xlu0 %10875, %v936_v2   ;;  %v2776_v62 = vpop.permute.xlu0 %2775 }
 0x131   :  { %8717 = vmatmul.mubr.msk.f32.vlgmr.msra.gmra.mrb[0].mxu0 %vm79_vm0, %v11387_v51 }
 0x132   :  { %8765 = vmatpush3.msk.msra.mxu0 %vm86_vm6, %v755_v39  ;;  %8762 = vmatmul.mubr.msk.f32.vlgmr.msra.gmra.mrb[0].mxu1 %vm79_vm0, %v11387_v51  ;;  %v2860_v6 = vpop.permute.xlu0 %2859 }
 0x133   :  { %8769 = vmatprep.subr.msk.mxu0 %vm86_vm6, %v11273_v25  ;;  %8810 = vmatpush3.msk.msra.mxu1 %vm86_vm6, %v1539_v42 }
 0x134   :  { %8814 = vmatprep.subr.msk.mxu1 %vm86_vm6, %v11288_v28  ;;  %8766 = vmatprep.mubr.msk.f32.mxu0 %vm79_vm0, %v11113_v4 }
 0x135   :  { %8767 = vmatmul.mubr.msk.f32.vlgmr.msra.gmra.mrb[2].mxu0 %vm79_vm0, %v11136_v36  ;;  %8811 = vmatprep.mubr.msk.f32.mxu1 %vm79_vm0, %v11113_v4  ;;  %v1946_v4 = vsel %vm1945_vm5, %v1944_v54, %v1943_v53 }
 0x136   :  { %8770 = vmatpush3.msk.msra.mxu0 %vm86_vm6, %v11273_v25  ;;  %8812 = vmatmul.mubr.msk.f32.vlgmr.msra.gmra.mrb[2].mxu1 %vm79_vm0, %v11136_v36  ;;  %v1948_v36 = vmul.f32 %v11082_v0, %v1946_v4 }
 0x137   :  { %8774 = vmatprep.subr.msk.mxu0 %vm86_vm6, %v11288_v28  ;;  %8815 = vmatpush3.msk.msra.mxu1 %vm86_vm6, %v11288_v28 }
 0x138   :  { %8771 = vmatprep.mubr.msk.f32.mxu0 %vm79_vm0, %v11142_v37  ;;  %8816 = vmatprep.mubr.msk.f32.mxu1 %vm79_vm0, %v11142_v37  ;;  %v2031_v37 = vpop.permute.xlu1 %2030 }
 0x139   :  { %8819 = vmatprep.subr.msk.mxu1 %vm86_vm6, %v1624_v47 }
 0x13c   :  { %v2774_v61 = vpop.permute.xlu1 %2773 }
 0x13d   :  { %8772 = vmatmul.mubr.msk.f32.vlgmr.msra.gmra.mrb[2].mxu0 %vm79_vm0, %v11193_v55  ;;  %v2777_v5 = vsel %vm1123_vm3, %v2774_v61, %v2776_v62  ;;  %v3245_v61 = vld [vmem:[%s13543_s3] sm:$0xff] }
 0x13e   :  { %8775 = vmatpush3.msk.msra.mxu0 %vm86_vm6, %v11288_v28  ;;  %8817 = vmatmul.mubr.msk.f32.vlgmr.msra.gmra.mrb[2].mxu1 %vm79_vm0, %v11193_v55  ;;  %v2035_v55 = vsel %vm2034_vm9, %v2031_v37, %v2033_v60 }
 0x13f   :  { %8820 = vmatpush3.msk.msra.mxu1 %vm86_vm6, %v1624_v47  ;;  %8776 = vmatprep.mubr.msk.f32.mxu0 %vm79_vm0, %v11201_v58 }
 0x140   :  { %8779 = vmatprep.subr.msk.mxu0 %vm86_vm6, %v1948_v36  ;;  %8821 = vmatprep.mubr.msk.f32.mxu1 %vm79_vm0, %v11201_v58  ;;  %v2858_v58 = vpop.permute.xlu1 %2857 }
 0x141   :  { %8824 = vmatprep.subr.msk.mxu1 %vm86_vm6, %v2120_v59 }
 0x145   :  { %8777 = vmatmul.mubr.msk.f32.vlgmr.msra.gmra.mrb[2].mxu0 %vm79_vm0, %v11218_v63 }
 0x146   :  { %8780 = vmatpush3.msk.msra.mxu0 %vm86_vm6, %v1948_v36  ;;  %8781 = vmatprep.mubr.msk.f32.mxu0 %vm79_vm0, %v11225_v7 }
 0x147   :  { %8822 = vmatmul.mubr.msk.f32.vlgmr.msra.gmra.mrb[2].mxu1 %vm79_vm0, %v11218_v63  ;;  %8784 = vmatprep.subr.msk.mxu0 %vm86_vm6, %v2035_v55  ;;  %v2862_v63 = vsel %vm2861_vm14, %v2858_v58, %v2860_v6 }
 0x148   :  { %8825 = vmatpush3.msk.msra.mxu1 %vm86_vm6, %v2120_v59  ;;  %8826 = vmatprep.mubr.msk.f32.mxu1 %vm79_vm0, %v11225_v7 }
 0x149   :  { %8829 = vmatprep.subr.msk.mxu1 %vm86_vm6, %v2777_v5 }
 0x14d   :  { %8782 = vmatmul.mubr.msk.f32.vlgmr.msra.gmra.mrb[2].mxu0 %vm79_vm0, %v11244_v12 }
 0x14e   :  { %8785 = vmatpush3.msk.msra.mxu0 %vm86_vm6, %v2035_v55  ;;  %8786 = vmatprep.mubr.msk.f32.mxu0 %vm79_vm0, %v11253_v15 }
 0x14f   :  { %8789 = vmatprep.subr.msk.mxu0 %vm86_vm6, %v2120_v59  ;;  %8827 = vmatmul.mubr.msk.f32.vlgmr.msra.gmra.mrb[2].mxu1 %vm79_vm0, %v11244_v12 }
 0x150   :  { %8830 = vmatpush3.msk.msra.mxu1 %vm86_vm6, %v2777_v5  ;;  %8831 = vmatprep.mubr.msk.f32.mxu1 %vm79_vm0, %v11253_v15 }
 0x151   :  { %8834 = vmatprep.subr.msk.mxu1 %vm86_vm6, %v2862_v63 }
 0x155   :  { %8787 = vmatmul.mubr.msk.f32.vlgmr.msra.gmra.mrb[2].mxu0 %vm79_vm0, %v11270_v22 }
 0x156   :  { %8790 = vmatpush3.msk.msra.mxu0 %vm86_vm6, %v2120_v59  ;;  %8791 = vmatprep.mubr.msk.f32.mxu0 %vm79_vm0, %v11280_v26 }
 0x157   :  { %8832 = vmatmul.mubr.msk.f32.vlgmr.msra.gmra.mrb[2].mxu1 %vm79_vm0, %v11270_v22 }
 0x158   :  { %8835 = vmatpush3.msk.msra.mxu1 %vm86_vm6, %v2862_v63  ;;  %8836 = vmatprep.mubr.msk.f32.mxu1 %vm79_vm0, %v11280_v26 }
 0x15d   :  { %8792 = vmatmul.mubr.msk.f32.vlgmr.msra.gmra.mrb[2].mxu0 %vm79_vm0, %v11299_v32 }
 0x15e   :  { %8796 = vmatprep.mubr.msk.f32.mxu0 %vm79_vm0, %v11307_v40 }
 0x15f   :  { %8837 = vmatmul.mubr.msk.f32.vlgmr.msra.gmra.mrb[2].mxu1 %vm79_vm0, %v11299_v32 }
 0x160   :  { %8841 = vmatprep.mubr.msk.f32.mxu1 %vm79_vm0, %v11307_v40 }
 0x18b   :  { %v2210_v7 = vpop.permute.xlu1 %2209 }
 0x18d   :  { %v2212_v8 = vpop.permute.xlu0 %2211 }
 0x18e   :  { %v2214_v9 = vsel %vm2213_vm15, %v2210_v7, %v2212_v8 }
 0x18f   :  { %v2377_v10 = vpop.permute.xlu1 %2376  ;;  %8794 = vmatprep.subr.msk.mxu0 %vm86_vm6, %v2214_v9 }
 0x190   :  { %8795 = vmatpush3.msk.msra.mxu0 %vm86_vm6, %v2214_v9 }
 0x191   :  { %v2379_v11 = vpop.permute.xlu0 %2378  ;;  %8797 = vmatmul.mubr.msk.f32.vlgmr.msra.gmra.mrb[2].mxu0 %vm79_vm0, %v11327_v43 }
 0x192   :  { %v2380_v12 = vsel %vm79_vm0, %v2377_v10, %v2379_v11  ;;  %8801 = vmatprep.mubr.msk.f32.mxu0 %vm79_vm0, %v11336_v46 }
 0x193   :  { %v3020_v13 = vpop.permute.xlu1 %3019  ;;  %8839 = vmatprep.subr.msk.mxu1 %vm86_vm6, %v2380_v12 }
 0x194   :  { %8840 = vmatpush3.msk.msra.mxu1 %vm86_vm6, %v2380_v12 }
 0x195   :  { %8842 = vmatmul.mubr.msk.f32.vlgmr.msra.gmra.mrb[2].mxu1 %vm79_vm0, %v11327_v43  ;;  %v3022_v14 = vpop.permute.xlu0 %3021 }
 0x196   :  { %v3024_v15 = vsel %vm3023_vm1, %v3020_v13, %v3022_v14  ;;  %8846 = vmatprep.mubr.msk.f32.mxu1 %vm79_vm0, %v11336_v46  ;;  %vm3228_vm1 = vcmask 556032  }
 0x197   :  { %v2295_v16 = vpop.permute.xlu1 %2294  ;;  %8844 = vmatprep.subr.msk.mxu1 %vm86_vm6, %v3024_v15 }
 0x198   :  { %8799 = vmatprep.subr.msk.mxu0 %vm86_vm6, %v2295_v16  ;;  %8845 = vmatpush3.msk.msra.mxu1 %vm86_vm6, %v3024_v15 }
 0x199   :  { %8800 = vmatpush3.msk.msra.mxu0 %vm86_vm6, %v2295_v16  ;;  %v3106_v17 = vpop.permute.xlu0 %3105 }
 0x19a   :  { %8802 = vmatmul.mubr.msk.f32.vlgmr.msra.gmra.mrb[2].mxu0 %vm79_vm0, %v11356_v49  ;;  %8804 = vmatprep.subr.msk.mxu0 %vm86_vm6, %v2380_v12 }
 0x19b   :  { %8805 = vmatpush3.msk.msra.mxu0 %vm86_vm6, %v2380_v12  ;;  %v3108_v18 = vpop.permute.xlu1 %3107  ;;  %8806 = vmatprep.mubr.msk.f32.mxu0 %vm79_vm0, %v11363_v3 }
 0x19c   :  { %v3110_v19 = vsel %vm3109_vm2, %v3106_v17, %v3108_v18 }
 0x19d   :  { %8847 = vmatmul.mubr.msk.f32.vlgmr.msra.gmra.mrb[2].mxu1 %vm79_vm0, %v11356_v49  ;;  %8849 = vmatprep.subr.msk.mxu1 %vm86_vm6, %v3110_v19 }
 0x19e   :  { %8850 = vmatpush3.msk.msra.mxu1 %vm86_vm6, %v3110_v19  ;;  %8851 = vmatprep.mubr.msk.f32.mxu1 %vm79_vm0, %v11363_v3 }
 0x1a2   :  { %8807 = vmatmul.mubr.msk.f32.vlgmr.msra.gmra.mrb[2].mxu0 %vm79_vm0, %v11387_v51 }
 0x1a3   :  { %8868 = vmatprep.mubr.msk.f32.mxu0 %vm271_vm8, %v3245_v61 }
 0x1a5   :  { %8852 = vmatmul.mubr.msk.f32.vlgmr.msra.gmra.mrb[2].mxu1 %vm79_vm0, %v11387_v51 }
 0x1ac   :  { %v946_v27 = vpop.permute.xlu1 %945 }
 0x1ad   :  { %v941_v29 = vpop.permute.xlu0 %940 }
 0x204   :  { %v8718_v21 = vpop.f32.mrb[0].mxu0 }
 0x205   :  { %v925_v22 = vpop.f32.mrb[1].mxu0  ;;  %v8763_v23 = vpop.f32.mrb[0].mxu1  ;;  %v949_v53 = vadd.f32 %v8718_v21, %v946_v27 }
 0x206   :  { %v1693_v24 = vpop.f32.mrb[1].mxu1  ;;  %v1705_v47 = vadd.f32 %v8763_v23, %v946_v27  ;;  %v948_v54 = vadd.f32 %v941_v29, %v925_v22 }
 0x207   :  { %v1704_v43 = vadd.f32 %v1693_v24, %v941_v29  ;;  %vm951_vm2 = vcmp.gt.f32.partialorder %v949_v53, 0.0  ;;  %v953_v63 = vmul.f32 0.01, %v949_v53 }
 0x208   :  { %v1709_v49 = vmul.f32 0.01, %v1705_v47  ;;  %vm1707_vm15 = vcmp.gt.f32.partialorder %v1705_v47, 0.0  ;;  %v952_v60 = vmul.f32 0.01, %v948_v54 }
 0x209   :  { %v1708_v46 = vmul.f32 0.01, %v1704_v43  ;;  %vm1706_vm14 = vcmp.gt.f32.partialorder %v1704_v43, 0.0  ;;  %v955_v18 = vsel %vm951_vm2, %v949_v53, %v953_v63  ;;  %v4341_v53 = vld [vmem:[%s13544_s4 + $0x8] sm:$0xff] }
 0x20a   :  { %v1711_v3 = vsel %vm1707_vm15, %v1705_v47, %v1709_v49  ;;  %v3246_v63 = vld [vmem:[%s13543_s3 + $0x8] sm:$0xff] }
 0x20b   :  { %v1710_v48 = vsel %vm1706_vm14, %v1704_v43, %v1708_v46  ;;  %vm3641_vm14 = vcmask 171008  }
 0x275   :  { %v8808_v25 = vpop.f32.mrb[2].mxu0 }
 0x276   :  { %v2449_v26 = vpop.f32.mrb[3].mxu0  ;;  %v2461_v30 = vadd.f32 %v8808_v25, %v946_v27 }
 0x277   :  { %v2460_v33 = vadd.f32 %v2449_v26, %v941_v29 }
 0x278   :  { %v8853_v28 = vpop.f32.mrb[2].mxu1  ;;  %v2465_v39 = vmul.f32 0.01, %v2461_v30  ;;  %vm2463_vm0 = vcmp.gt.f32.partialorder %v2461_v30, 0.0 }
 0x279   :  { %v3191_v31 = vadd.f32 %v8853_v28, %v946_v27  ;;  %v3179_v32 = vpop.f32.mrb[3].mxu1  ;;  %v2464_v41 = vmul.f32 0.01, %v2460_v33  ;;  %vm2462_vm9 = vcmp.gt.f32.partialorder %v2460_v33, 0.0 }
 0x27a   :  { %v3190_v34 = vadd.f32 %v3179_v32, %v941_v29  ;;  %v2467_v44 = vsel %vm2463_vm0, %v2461_v30, %v2465_v39  ;;  %vm3225_vm0 = vcmask 719872  }
 0x27b   :  { %v3195_v35 = vmul.f32 0.01, %v3191_v31  ;;  %vm3193_vm4 = vcmp.gt.f32.partialorder %v3191_v31, 0.0  ;;  %v2466_v45 = vsel %vm2462_vm9, %v2460_v33, %v2464_v41  ;;  %vm3386_vm9 = vcmask 596992  }
 0x27c   :  { %v3194_v38 = vmul.f32 0.01, %v3190_v34  ;;  %vm3192_vm5 = vcmp.gt.f32.partialorder %v3190_v34, 0.0 }
 0x27d   :  { %v3197_v40 = vsel %vm3193_vm4, %v3191_v31, %v3195_v35  ;;  %vm950_vm4 = vcmp.gt.f32.partialorder %v948_v54, 0.0 }
 0x27e   :  { %3218 = vrot.lane.b32.xlu0 %v3197_v40, %s11016_s1  ;;  %v3196_v42 = vsel %vm3192_vm5, %v3190_v34, %v3194_v38  ;;  %vm3222_vm5 = vcmask 883712   ;;  %v954_v14 = vsel %vm950_vm4, %v948_v54, %v952_v60  ;;  %v7466_v54 = vld [vmem:[%s13543_s3 + $0x20] sm:$0xff] }
 0x27f   :  { %3216 = vrot.lane.b32.xlu1 %v3196_v42, %s11016_s1  ;;  %8858 = vmatprep.mubr.msk.f32.mxu1 %vm271_vm8, %v7466_v54  ;;  %v7489_v54 = vld [vmem:[%s13543_s3 + $0x78] sm:$0xff] }
 0x282   :  { %3210 = vrot.lane.b32.xlu0 %v2467_v44, %s11017_s2 }
 0x283   :  { %3208 = vrot.lane.b32.xlu1 %v2466_v45, %s11017_s2 }
 0x286   :  { %3238 = vrot.lane.b32.xlu0 %v11082_v0, %s11018_s24 }
 0x287   :  { %3231 = vrot.lane.b32.xlu1 %v11087_v1, %s11018_s24 }
 0x28a   :  { %3200 = vrot.lane.b32.xlu0 %v1710_v48, %s11019_s25 }
 0x28b   :  { %3488 = vrot.lane.b32.xlu1 %v11087_v1, %s10997_s28 }
 0x28e   :  { %3617 = vrot.lane.b32.xlu0 %v11082_v0, %s11020_s26 }
 0x28f   :  { %3202 = vrot.lane.b32.xlu1 %v1711_v3, %s11019_s25 }
 0x293   :  { %3249 = vrot.lane.b32.xlu1 %v11087_v1, %s11021_s27 }
 0x2f0   :  { %v11515_v50 = vpop.permute.xlu0 %3218 }
 0x2f1   :  { %v11517_v2 = vpop.permute.xlu1 %3216  ;;  %v3979_v38 = vmul.f32 %v11515_v50, %v11121_v20 }
 0x2f2   :  { %v3977_v39 = vmul.f32 %v11517_v2, %v11121_v20 }
 0x2f4   :  { %v3211_v51 = vpop.permute.xlu0 %3210 }
 0x2f5   :  { %v3209_v52 = vpop.permute.xlu1 %3208  ;;  %v11520_v56 = vsel %vm3228_vm1, %v3211_v51, %v11515_v50 }
 0x2f6   :  { %v11523_v0 = vsel %vm3228_vm1, %v3209_v52, %v11517_v2  ;;  %v3978_v34 = vmul.f32 %v11520_v56, %v11121_v20  ;;  %v10952_v3 = vpack.i.bf16 %v11515_v50, %v11520_v56 }
 0x2f7   :  { %v3976_v35 = vmul.f32 %v11523_v0, %v11121_v20 }
 0x2f8   :  { %v3239_v4 = vpop.permute.xlu0 %3238  ;;  %v10922_v40 = vpack.i.bf16 %v3979_v38, %v3978_v34  ;;  %v7481_v34 = vld [vmem:[%s13543_s3 + $0x58] sm:$0xff] }
 0x2f9   :  { %v3232_v57 = vpop.permute.xlu1 %3231  ;;  %v10917_v41 = vpack.i.bf16 %v3977_v39, %v3976_v35  ;;  %v7486_v39 = vld [vmem:[%s13543_s3 + $0x60] sm:$0xff] }
 0x2fa   :  { %v3234_v36 = vmul.f32 %v3232_v57, %v11523_v0  ;;  %v3235_v1 = vmul.f32 %v3232_v57, %v11517_v2  ;;  %v3236_v59 = vmul.f32 %v3232_v57, %v11520_v56  ;;  %v3237_v37 = vmul.f32 %v3232_v57, %v11515_v50 }
 0x2fc   :  { %v3201_v62 = vpop.permute.xlu0 %3200  ;;  %v3243_v55 = vmul.f32 %v3239_v4, %v3236_v59  ;;  %v3244_v5 = vmul.f32 %v3239_v4, %v3237_v37  ;;  %v3241_v58 = vmul.f32 %v3239_v4, %v3234_v36  ;;  %v3242_v6 = vmul.f32 %v3239_v4, %v3235_v1 }
 0x2fd   :  { %v3489_v7 = vpop.permute.xlu1 %3488  ;;  %v3223_v16 = vsel %vm3222_vm5, %v954_v14, %v3201_v62  ;;  %v3226_v17 = vsel %vm3225_vm0, %v3201_v62, %v3209_v52  ;;  %v4342_v52 = vld [vmem:[%s13544_s4 + $0x10] sm:$0xff] }
 0x2fe   :  { %v3491_v8 = vmul.f32 %v3489_v7, %v11523_v0  ;;  %v3492_v9 = vmul.f32 %v3489_v7, %v11517_v2  ;;  %v3493_v10 = vmul.f32 %v3489_v7, %v11520_v56  ;;  %v3494_v11 = vmul.f32 %v3489_v7, %v11515_v50  ;;  %v4343_v50 = vld [vmem:[%s13544_s4 + $0x18] sm:$0xff] }
 0x2ff   :  { %v10882_v12 = vpack.i.bf16 %v3244_v5, %v3243_v55  ;;  %v10877_v13 = vpack.i.bf16 %v3242_v6, %v3241_v58  ;;  %v10907_v33 = vpack.i.bf16 %v3226_v17, %v3223_v16  ;;  %v10927_v44 = vpack.i.bf16 %v11523_v0, %v3226_v17 }
 0x300   :  { %v3618_v15 = vpop.permute.xlu0 %3617  ;;  %v10892_v23 = vpack.i.bf16 %v3494_v11, %v3493_v10  ;;  %v10887_v24 = vpack.i.bf16 %v3492_v9, %v3491_v8 }
 0x301   :  { %10883 = vrot.lane.b32.xlu1 %v10882_v12, %s11022_s30  ;;  %10878 = vrot.lane.b32.xlu0 %v10877_v13, %s11022_s30  ;;  %v3203_v19 = vpop.permute.xlu1 %3202  ;;  %v3620_v25 = vmul.f32 %v3618_v15, %v3223_v16  ;;  %v3621_v26 = vmul.f32 %v3618_v15, %v3226_v17  ;;  %v3247_v12 = vld [vmem:[%s13543_s3 + $0x10] sm:$0xff] }
 0x302   :  { %v3224_v21 = vsel %vm3222_vm5, %v955_v18, %v3203_v19  ;;  %v3227_v22 = vsel %vm3225_vm0, %v3203_v19, %v3211_v51  ;;  %v10947_v51 = vpack.i.bf16 %v11517_v2, %v11523_v0  ;;  %v4340_v2 = vld [vmem:[%s13544_s4] sm:$0xff] }
 0x303   :  { %v3622_v27 = vmul.f32 %v3618_v15, %v3224_v21  ;;  %v3623_v28 = vmul.f32 %v3618_v15, %v3227_v22  ;;  %v11542_v29 = vpack.c.bf16 %v3224_v21, %v3223_v16  ;;  %v10897_v31 = vpack.i.bf16 %v3621_v26, %v3620_v25  ;;  %v7479_v25 = vld [vmem:[%s13543_s3 + $0x48] sm:$0xff] }
 0x304   :  { %v10912_v32 = vpack.i.bf16 %v3227_v22, %v3224_v21  ;;  %v10932_v43 = vpack.i.bf16 %v11520_v56, %v3227_v22 }
 0x305   :  { %10893 = vrot.lane.b32.xlu1 %v10892_v23, %s10991_s8  ;;  %10888 = vrot.lane.b32.xlu0 %v10887_v24, %s10991_s8  ;;  %v10902_v30 = vpack.i.bf16 %v3623_v28, %v3622_v27  ;;  %v3250_v42 = vpop.permute.xlu1 %3249  ;;  %v7478_v24 = vld [vmem:[%s13543_s3 + $0x40] sm:$0xff]  ;;  %v7480_v28 = vld [vmem:[%s13543_s3 + $0x50] sm:$0xff]  ;;  %s11028_s8 = smov [#allocation2]  }
 0x306   :  { %v3252_v45 = vmul.f32 %v3250_v42, %v3226_v17  ;;  %v3253_v46 = vmul.f32 %v3250_v42, %v11523_v0  ;;  %v3254_v47 = vmul.f32 %v3250_v42, %v3227_v22  ;;  %v3255_v48 = vmul.f32 %v3250_v42, %v11520_v56  ;;  %v3248_v17 = vld [vmem:[%s13543_s3 + $0x18] sm:$0xff] }
 0x308   :  { %v10942_v20 = vpack.i.bf16 %v3255_v48, %v3254_v47  ;;  %v10937_v49 = vpack.i.bf16 %v3253_v46, %v3252_v45  ;;  %v7488_v45 = vld [vmem:[%s13543_s3 + $0x70] sm:$0xff] }
 0x309   :  { %10903 = vrot.lane.b32.xlu1 %v10902_v30, %s11023_s15  ;;  %10898 = vrot.lane.b32.xlu0 %v10897_v31, %s11023_s15 }
 0x30d   :  { %10913 = vrot.lane.b32.xlu1 %v10912_v32, %s10999_s16  ;;  %10908 = vrot.lane.b32.xlu0 %v10907_v33, %s10999_s16 }
 0x311   :  { %10923 = vrot.lane.b32.xlu1 %v10922_v40, %s10998_s12  ;;  %10918 = vrot.lane.b32.xlu0 %v10917_v41, %s10998_s12  ;;  %v7487_v40 = vld [vmem:[%s13543_s3 + $0x68] sm:$0xff]  ;;  %s7332_s12 = sshll.u32 %s11028_s8, 4  ;;  %s7333_s12 = int_to_ptr.vmem [resolvable:$true] %s7332_s12 }
 0x312   :  { %s10968_s16 = scalar_lea.vmem %s7333_s12, 32  ;;  %p10969_p1 = scmp.lt.s32.totalorder %s7333_s12, %s7333_s12 }
 0x315   :  { %10933 = vrot.lane.b32.xlu1 %v10932_v43, %s11000_s17  ;;  %10928 = vrot.lane.b32.xlu0 %v10927_v44, %s11000_s17 }
 0x319   :  { %10943 = vrot.lane.b32.xlu1 %v10942_v20, %s11009_s13  ;;  %10938 = vrot.lane.b32.xlu0 %v10937_v49, %s11009_s13 }
 0x31d   :  { %10953 = vrot.lane.b32.xlu1 %v10952_v3, %s11001_s18  ;;  %10948 = vrot.lane.b32.xlu0 %v10947_v51, %s11001_s18 }
 0x321   :  { %4356 = vperm.xlu1 %10876, %v4342_v52   ;;  %4351 = vperm.xlu0 %10875, %v4341_v53  }
 0x325   :  { %4361 = vperm.xlu1 %10876, %v4343_v50   ;;  %4346 = vperm.xlu0 %10875, %v4340_v2  }
 0x373   :  { %v10884_v4 = vpop.permute.xlu1 %10883  ;;  %v10879_v56 = vpop.permute.xlu0 %10878 }
 0x374   :  { %v10886_v0 = vunpack.i.h.bf16 %v10884_v4  ;;  %v10885_v57 = vunpack.i.l.bf16 %v10884_v4  ;;  %v10881_v36 = vunpack.i.h.bf16 %v10879_v56  ;;  %v10880_v1 = vunpack.i.l.bf16 %v10879_v56  ;;  %v7494_v56 = vld [vmem:[%s13543_s3 + $0x80] sm:$0xff] }
 0x376   :  { %v3387_v59 = vsel %vm3386_vm9, %v10880_v1, %v10881_v36  ;;  %v3388_v37 = vsel %vm3386_vm9, %v10885_v57, %v10886_v0  ;;  %v7761_v0 = vld [vmem:[%s13545_s5 + $0x698] sm:$0xff]  ;;  %v7495_v57 = vld [vmem:[%s13543_s3 + $0x88] sm:$0xff] }
 0x377   :  { %v10894_v60 = vpop.permute.xlu1 %10893  ;;  %v10889_v61 = vpop.permute.xlu0 %10888  ;;  %v9940_v62 = vpack.c.bf16 %v3388_v37, %v3387_v59  ;;  %v7467_v59 = vld [vmem:[%s13543_s3 + $0x28] sm:$0xff]  ;;  %v7496_v37 = vld [vmem:[%s13543_s3 + $0x90] sm:$0xff] }
 0x378   :  { %v10896_v55 = vunpack.i.h.bf16 %v10894_v60  ;;  %v10895_v5 = vunpack.i.l.bf16 %v10894_v60  ;;  %v10891_v58 = vunpack.i.h.bf16 %v10889_v61  ;;  %v10890_v6 = vunpack.i.l.bf16 %v10889_v61  ;;  %v7468_v61 = vld [vmem:[%s13543_s3 + $0x30] sm:$0xff] }
 0x379   :  { %9941 = vmatprep.subr.bf16.mxu0 %v9940_v62  ;;  %v11024_v60 = vmov 0.0|0.0  }
 0x37a   :  { %9943 = vmatpush3.bf16.msra.mxu0 %v9940_v62  ;;  %v3512_v7 = vsel %vm1123_vm3, %v10890_v6, %v10891_v58  ;;  %v3513_v8 = vsel %vm1123_vm3, %v10895_v5, %v10896_v55  ;;  %v7762_v5 = vld [vmem:[%s13545_s5 + $0x6a0] sm:$0xff]  ;;  %v7763_v58 = vld [vmem:[%s13545_s5 + $0x6a8] sm:$0xff]  ;;  %vm11025_vm3 = vmmov 1  }
 0x37b   :  { %v10904_v9 = vpop.permute.xlu1 %10903  ;;  %v10899_v10 = vpop.permute.xlu0 %10898  ;;  %v9944_v11 = vpack.c.bf16 %v3513_v8, %v3512_v7 }
 0x37c   :  { %v10906_v13 = vunpack.i.h.bf16 %v10904_v9  ;;  %v10905_v14 = vunpack.i.l.bf16 %v10904_v9  ;;  %v10901_v15 = vunpack.i.h.bf16 %v10899_v10  ;;  %v10900_v16 = vunpack.i.l.bf16 %v10899_v10  ;;  %v7497_v9 = vld [vmem:[%s13543_s3 + $0x98] sm:$0xff] }
 0x37d   :  { %8869 = vmatmul.mubr.msk.f32.vlgmr.msra.gmra.mrb[4].mxu0 %vm271_vm8, %v3246_v63  ;;  %9945 = vmatprep.subr.bf16.mxu0 %v9944_v11  ;;  %v7469_v10 = vld [vmem:[%s13543_s3 + $0x38] sm:$0xff] }
 0x37e   :  { %9947 = vmatpush3.bf16.msra.mxu0 %v9944_v11  ;;  %8871 = vmatprep.mubr.msk.f32.mxu0 %vm271_vm8, %v3247_v12  ;;  %v3642_v18 = vsel %vm3641_vm14, %v10900_v16, %v10901_v15  ;;  %v3643_v19 = vsel %vm3641_vm14, %v10905_v14, %v10906_v13  ;;  %v7502_v11 = vld [vmem:[%s13543_s3 + $0xa0] sm:$0xff]  ;;  %v10306_v12 = vpack.c.bf16 %v7763_v58, %v7762_v5  ;;  %v7764_v13 = vld [vmem:[%s13545_s5 + $0x6b0] sm:$0xff]  ;;  %v7765_v14 = vld [vmem:[%s13545_s5 + $0x6b8] sm:$0xff] }
 0x37f   :  { %v10914_v21 = vpop.permute.xlu1 %10913  ;;  %v10909_v22 = vpop.permute.xlu0 %10908  ;;  %v9948_v23 = vpack.c.bf16 %v3643_v19, %v3642_v18  ;;  %v7503_v15 = vld [vmem:[%s13543_s3 + $0xa8] sm:$0xff]  ;;  %v7770_v58 = vld [vmem:[%s13545_s5 + $0x6e0] sm:$0xff] }
 0x380   :  { %v10916_v30 = vunpack.i.h.bf16 %v10914_v21  ;;  %v10915_v31 = vunpack.i.l.bf16 %v10914_v21  ;;  %v10911_v32 = vunpack.i.h.bf16 %v10909_v22  ;;  %v10910_v33 = vunpack.i.l.bf16 %v10909_v22  ;;  %v7504_v21 = vld [vmem:[%s13543_s3 + $0xb0] sm:$0xff] }
 0x381   :  { %8872 = vmatmul.mubr.msk.f32.gmra.mrb[6].mxu0 %vm271_vm8, %v3248_v17  ;;  %9949 = vmatprep.subr.bf16.mxu0 %v9948_v23  ;;  %v10309_v22 = vpack.c.bf16 %v7765_v14, %v7764_v13  ;;  %v11027_v14 = vmov 0.0  }
 0x382   :  { %8878 = vmatprep.mubr.msk.f32.mxu0 %vm271_vm8, %v7478_v24  ;;  %v3870_v41 = vsel %vm558_vm11, %v10910_v33, %v10911_v32  ;;  %v3871_v42 = vsel %vm558_vm11, %v10915_v31, %v10916_v30  ;;  %v7766_v24 = vld [vmem:[%s13545_s5 + $0x6c0] sm:$0xff]  ;;  %v7505_v31 = vld [vmem:[%s13543_s3 + $0xb8] sm:$0xff] }
 0x383   :  { %v10924_v26 = vpop.permute.xlu1 %10923  ;;  %v10919_v27 = vpop.permute.xlu0 %10918  ;;  %v9956_v51 = vpack.c.bf16 %v3871_v42, %v3870_v41  ;;  %v7510_v32 = vld [vmem:[%s13543_s3 + $0xc0] sm:$0xff]  ;;  %v7512_v41 = vld [vmem:[%s13543_s3 + $0xd0] sm:$0xff] }
 0x384   :  { %v10926_v49 = vunpack.i.h.bf16 %v10924_v26  ;;  %v10925_v3 = vunpack.i.l.bf16 %v10924_v26  ;;  %v10921_v52 = vunpack.i.h.bf16 %v10919_v27  ;;  %v10920_v53 = vunpack.i.l.bf16 %v10919_v27 }
 0x385   :  { %8879 = vmatmul.mubr.msk.f32.vlgmr.msra.gmra.mrb[4].mxu0 %vm271_vm8, %v7479_v25  ;;  %v7767_v25 = vld [vmem:[%s13545_s5 + $0x6c8] sm:$0xff] }
 0x386   :  { %9951 = vmatpush3.bf16.msra.mxu0 %v9948_v23  ;;  %8881 = vmatprep.mubr.msk.f32.mxu0 %vm271_vm8, %v7480_v28  ;;  %v3997_v36 = vsel %vm374_vm10, %v10920_v53, %v10921_v52  ;;  %v3998_v1 = vsel %vm374_vm10, %v10925_v3, %v10926_v49  ;;  %v10312_v33 = vpack.c.bf16 %v7767_v25, %v7766_v24  ;;  %v4381_v49 = vld [vmem:[%s13545_s5] sm:$0xff]  ;;  %v4382_v3 = vld [vmem:[%s13545_s5 + $0x8] sm:$0xff]  ;;  %v7528_v53 = vld [vmem:[%s13543_s3 + $0x110] sm:$0xff]  ;;  %vm11026_vm10 = vmmov 0  }
 0x387   :  { %9953 = vmatprep.subr.bf16.mxu0 %v11542_v29  ;;  %v11618_v35 = vpop.permute.xlu1 %10933  ;;  %v11620_v38 = vpop.permute.xlu0 %10928  ;;  %v9960_v55 = vpack.c.bf16 %v3998_v1, %v3997_v36  ;;  %v9973_v52 = vpack.c.bf16 %v4382_v3, %v4381_v49  ;;  %v4388_v36 = vld [vmem:[%s13545_s5 + $0x38] sm:$0xff] }
 0x388   :  { %v10936_v6 = vunpack.i.h.bf16 %v11618_v35  ;;  %v10935_v63 = vunpack.i.l.bf16 %v11618_v35  ;;  %v10931_v7 = vunpack.i.h.bf16 %v11620_v38  ;;  %v10930_v8 = vunpack.i.l.bf16 %v11620_v38  ;;  %v7769_v35 = vld [vmem:[%s13545_s5 + $0x6d8] sm:$0xff]  ;;  %v7511_v38 = vld [vmem:[%s13543_s3 + $0xc8] sm:$0xff] }
 0x389   :  { %8882 = vmatmul.mubr.msk.f32.gmra.mrb[6].mxu0 %vm271_vm8, %v7481_v34  ;;  %v7768_v34 = vld [vmem:[%s13545_s5 + $0x6d0] sm:$0xff] }
 0x38a   :  { %8888 = vmatprep.mubr.msk.f32.mxu0 %vm271_vm8, %v7486_v39  ;;  %v4117_v16 = vsel %vm1295_vm12, %v10930_v8, %v10931_v7  ;;  %v4118_v17 = vsel %vm1295_vm12, %v10935_v63, %v10936_v6  ;;  %v10315_v42 = vpack.c.bf16 %v7769_v35, %v7768_v34  ;;  %v7771_v6 = vld [vmem:[%s13545_s5 + $0x6e8] sm:$0xff]  ;;  %v4393_v7 = vld [vmem:[%s13545_s5 + $0x60] sm:$0xff] }
 0x38b   :  { %v10944_v43 = vpop.permute.xlu1 %10943  ;;  %v10939_v44 = vpop.permute.xlu0 %10938  ;;  %v9964_v23 = vpack.c.bf16 %v4118_v17, %v4117_v16  ;;  %v10318_v63 = vpack.c.bf16 %v7771_v6, %v7770_v58  ;;  %v4394_v8 = vld [vmem:[%s13545_s5 + $0x68] sm:$0xf]  ;;  %v7786_v6 = vld [vmem:[%s13545_s5 + $0x750] sm:$0xff] }
 0x38c   :  { %v10946_v46 = vunpack.i.h.bf16 %v10944_v43  ;;  %v10945_v47 = vunpack.i.l.bf16 %v10944_v43  ;;  %v10941_v48 = vunpack.i.h.bf16 %v10939_v44  ;;  %v10940_v20 = vunpack.i.l.bf16 %v10939_v44  ;;  %v7513_v44 = vld [vmem:[%s13543_s3 + $0xd8] sm:$0xff]  ;;  %v7547_v58 = vld [vmem:[%s13545_s5 + $0xc8] sm:$0xff] }
 0x38d   :  { %8889 = vmatmul.mubr.msk.f32.vlgmr.msra.gmra.mrb[4].mxu0 %vm271_vm8, %v7487_v40 }
 0x38e   :  { %9955 = vmatpush3.bf16.msra.mxu0 %v11542_v29  ;;  %8891 = vmatprep.mubr.msk.f32.mxu0 %vm271_vm8, %v7488_v45  ;;  %v3273_v50 = vsel %vm2119_vm7, %v10940_v20, %v10941_v48  ;;  %v3274_v2 = vsel %vm2119_vm7, %v10945_v47, %v10946_v46  ;;  %v7760_v29 = vld [vmem:[%s13545_s5 + $0x690] sm:$0xff]  ;;  %v7518_v45 = vld [vmem:[%s13543_s3 + $0xe0] sm:$0xff]  ;;  %v7519_v46 = vld [vmem:[%s13543_s3 + $0xe8] sm:$0xff]  ;;  %vm7324_vm7 = vcmask 516096  }
 0x38f   :  { %9957 = vmatprep.subr.bf16.mxu0 %v9956_v51  ;;  %v9936_v4 = vpack.c.bf16 %v3274_v2, %v3273_v50  ;;  %v10303_v62 = vpack.c.bf16 %v7761_v0, %v7760_v29  ;;  %v10954_v18 = vpop.permute.xlu1 %10953  ;;  %v10949_v19 = vpop.permute.xlu0 %10948  ;;  %v7520_v47 = vld [vmem:[%s13543_s3 + $0xf0] sm:$0xff]  ;;  %v7521_v48 = vld [vmem:[%s13543_s3 + $0xf8] sm:$0xff]  ;;  %v7526_v20 = vld [vmem:[%s13543_s3 + $0x100] sm:$0xff] }
 0x390   :  { %v10956_v26 = vunpack.i.h.bf16 %v10954_v18  ;;  %v10955_v27 = vunpack.i.l.bf16 %v10954_v18  ;;  %v10951_v28 = vunpack.i.h.bf16 %v10949_v19  ;;  %v10950_v30 = vunpack.i.l.bf16 %v10949_v19  ;;  %v4383_v50 = vld [vmem:[%s13545_s5 + $0x10] sm:$0xff]  ;;  %v4384_v2 = vld [vmem:[%s13545_s5 + $0x18] sm:$0xff]  ;;  %v4386_v29 = vld [vmem:[%s13545_s5 + $0x28] sm:$0xff] }
 0x391   :  { %9937 = vmatprep.subr.bf16.mxu1 %v9936_v4  ;;  %8892 = vmatmul.mubr.msk.f32.gmra.mrb[6].mxu0 %vm271_vm8, %v7489_v54  ;;  %v7529_v54 = vld [vmem:[%s13543_s3 + $0x118] sm:$0xff] }
 0x392   :  { %9939 = vmatpush3.bf16.msra.mxu1 %v9936_v4  ;;  %8898 = vmatprep.mubr.msk.f32.mxu0 %vm271_vm8, %v7494_v56  ;;  %v4235_v39 = vsel %vm1380_vm13, %v10950_v30, %v10951_v28  ;;  %v4236_v40 = vsel %vm1380_vm13, %v10955_v27, %v10956_v26  ;;  %v9976_v4 = vpack.c.bf16 %v4384_v2, %v4383_v50  ;;  %v4385_v56 = vld [vmem:[%s13545_s5 + $0x20] sm:$0xff]  ;;  %v7536_v27 = vld [vmem:[%s13545_s5 + $0x70] sm:$0xff]  ;;  %v7537_v28 = vld [vmem:[%s13545_s5 + $0x78] sm:$0xff] }
 0x393   :  { %10302 = vmatprep.subr.bf16.mxu1 %v11024_v60  ;;  %v9968_v43 = vpack.c.bf16 %v4236_v40, %v4235_v39  ;;  %v9979_v0 = vpack.c.bf16 %v4386_v29, %v4385_v56  ;;  %v7781_v50 = vld [vmem:[%s13545_s5 + $0x728] sm:$0xff]  ;;  %v7782_v29 = vld [vmem:[%s13545_s5 + $0x730] sm:$0xff] }
 0x394   :  { %v7543_v56 = vld [vmem:[%s13545_s5 + $0xa8] sm:$0xff] }
 0x395   :  { %8899 = vmatmul.mubr.msk.f32.vlgmr.msra.gmra.mrb[4].mxu0 %vm271_vm8, %v7495_v57  ;;  %8859 = vmatmul.mubr.msk.f32.vlgmr.msra.gmra.mrb[4].mxu1 %vm271_vm8, %v7467_v59  ;;  %v4387_v57 = vld [vmem:[%s13545_s5 + $0x30] sm:$0xff]  ;;  %v4389_v59 = vld [vmem:[%s13545_s5 + $0x40] sm:$0xff] }
 0x396   :  { %9959 = vmatpush3.bf16.msra.mxu0 %v9956_v51  ;;  %8901 = vmatprep.mubr.msk.f32.mxu0 %vm271_vm8, %v7496_v37  ;;  %v7527_v51 = vld [vmem:[%s13543_s3 + $0x108] sm:$0xff]  ;;  %v9982_v1 = vpack.c.bf16 %v4388_v36, %v4387_v57 }
 0x397   :  { %9961 = vmatprep.subr.bf16.mxu0 %v9960_v55  ;;  %8861 = vmatprep.mubr.msk.f32.mxu1 %vm271_vm8, %v7468_v61  ;;  %v4390_v37 = vld [vmem:[%s13545_s5 + $0x48] sm:$0xff] }
 0x398   :  { %10304 = vmatpush3.bf16.msra.mxu1 %v10303_v62  ;;  %v9985_v61 = vpack.c.bf16 %v4390_v37, %v4389_v59  ;;  %v4391_v62 = vld [vmem:[%s13545_s5 + $0x50] sm:$0xff]  ;;  %v7545_v59 = vld [vmem:[%s13545_s5 + $0xb8] sm:$0xff]  ;;  %v7784_v37 = vld [vmem:[%s13545_s5 + $0x740] sm:$0xff] }
 0x399   :  { %8902 = vmatmul.mubr.msk.f32.gmra.mrb[6].mxu0 %vm271_vm8, %v7497_v9  ;;  %8862 = vmatmul.mubr.msk.f32.gmra.mrb[6].mxu1 %vm271_vm8, %v7469_v10  ;;  %v9991_v9 = vpack.c.bf16 %v4394_v8, %v4393_v7  ;;  %v7772_v10 = vld [vmem:[%s13545_s5 + $0x6f0] sm:$0xff] }
 0x39a   :  { %8908 = vmatprep.mubr.msk.f32.mxu0 %vm271_vm8, %v7502_v11  ;;  %10305 = vmatprep.subr.bf16.mxu1 %v11024_v60  ;;  %v7773_v11 = vld [vmem:[%s13545_s5 + $0x6f8] sm:$0xf] }
 0x39b   :  { %v10321_v13 = vpack.c.bf16 %v7773_v11, %v7772_v10  ;;  %9437 = vmatprep.mubr.msk.f32.mxu1 %vm11026_vm10, %v11027_v14  ;;  %v7549_v10 = vld [vmem:[%s13545_s5 + $0xd8] sm:$0xf] }
 0x39c   :  { %10307 = vmatpush3.bf16.msra.mxu1 %v10306_v12 }
 0x39d   :  { %8909 = vmatmul.mubr.msk.f32.vlgmr.msra.gmra.mrb[4].mxu0 %vm271_vm8, %v7503_v15  ;;  %10308 = vmatprep.subr.bf16.mxu1 %v11024_v60 }
 0x39e   :  { %9963 = vmatpush3.bf16.msra.mxu0 %v9960_v55  ;;  %8911 = vmatprep.mubr.msk.f32.mxu0 %vm271_vm8, %v7504_v21  ;;  %v4392_v55 = vld [vmem:[%s13545_s5 + $0x58] sm:$0xff] }
 0x39f   :  { %9965 = vmatprep.subr.bf16.mxu0 %v9964_v23  ;;  %v9988_v5 = vpack.c.bf16 %v4392_v55, %v4391_v62 }
 0x3a0   :  { %10310 = vmatpush3.bf16.msra.mxu1 %v10309_v22  ;;  %v4352_v19 = vpop.permute.xlu0 %4351  ;;  %v4357_v11 = vpop.permute.xlu1 %4356 }
 0x3a1   :  { %8912 = vmatmul.mubr.msk.f32.gmra.mrb[6].mxu0 %vm271_vm8, %v7505_v31  ;;  %10311 = vmatprep.subr.bf16.mxu1 %v11024_v60 }
 0x3a2   :  { %8918 = vmatprep.mubr.msk.f32.mxu0 %vm271_vm8, %v7510_v32  ;;  %v7776_v32 = vld [vmem:[%s13545_s5 + $0x700] sm:$0xff] }
 0x3a4   :  { %10313 = vmatpush3.bf16.msra.mxu1 %v10312_v33  ;;  %v4347_v25 = vpop.permute.xlu0 %4346  ;;  %v7777_v33 = vld [vmem:[%s13545_s5 + $0x708] sm:$0xff] }
 0x3a5   :  { %8919 = vmatmul.mubr.msk.f32.vlgmr.msra.gmra.mrb[4].mxu0 %vm271_vm8, %v7511_v38  ;;  %10314 = vmatprep.subr.bf16.mxu1 %v11024_v60 }
 0x3a6   :  { %9967 = vmatpush3.bf16.msra.mxu0 %v9964_v23  ;;  %8921 = vmatprep.mubr.msk.f32.mxu0 %vm271_vm8, %v7512_v41  ;;  %v9995_v41 = vpack.c.bf16 %v7537_v28, %v7536_v27  ;;  %v7554_v28 = vld [vmem:[%s13545_s5 + $0xf0] sm:$0xff] }
 0x3a7   :  { %9969 = vmatprep.subr.bf16.mxu0 %v9968_v43 }
 0x3a8   :  { %10316 = vmatpush3.bf16.msra.mxu1 %v10315_v42 }
 0x3a9   :  { %8922 = vmatmul.mubr.msk.f32.gmra.mrb[6].mxu0 %vm271_vm8, %v7513_v44  ;;  %10317 = vmatprep.subr.bf16.mxu1 %v11024_v60  ;;  %v7538_v44 = vld [vmem:[%s13545_s5 + $0x80] sm:$0xff] }
 0x3aa   :  { %8928 = vmatprep.mubr.msk.f32.mxu0 %vm271_vm8, %v7518_v45  ;;  %v7539_v45 = vld [vmem:[%s13545_s5 + $0x88] sm:$0xff] }
 0x3ab   :  { %v9998_v49 = vpack.c.bf16 %v7539_v45, %v7538_v44 }
 0x3ac   :  { %10319 = vmatpush3.bf16.msra.mxu1 %v10318_v63  ;;  %v7787_v63 = vld [vmem:[%s13545_s5 + $0x758] sm:$0xff] }
 0x3ad   :  { %8929 = vmatmul.mubr.msk.f32.vlgmr.msra.gmra.mrb[4].mxu0 %vm271_vm8, %v7519_v46  ;;  %10320 = vmatprep.subr.bf16.mxu1 %v11024_v60  ;;  %v10340_v8 = vpack.c.bf16 %v7787_v63, %v7786_v6  ;;  %v7569_v6 = vld [vmem:[%s13545_s5 + $0x158] sm:$0xff]  ;;  %v7808_v63 = vld [vmem:[%s13545_s5 + $0x7e0] sm:$0xff] }
 0x3ae   :  { %9971 = vmatpush3.bf16.msra.mxu0 %v9968_v43  ;;  %8931 = vmatprep.mubr.msk.f32.mxu0 %vm271_vm8, %v7520_v47  ;;  %v10325_v43 = vpack.c.bf16 %v7777_v33, %v7776_v32  ;;  %v7795_v32 = vld [vmem:[%s13545_s5 + $0x788] sm:$0xff] }
 0x3af   :  { %9972 = vmatprep.subr.bf16.mxu0 %v11024_v60 }
 0x3b1   :  { %8932 = vmatmul.mubr.msk.f32.gmra.mrb[6].mxu0 %vm271_vm8, %v7521_v48  ;;  %v7778_v48 = vld [vmem:[%s13545_s5 + $0x710] sm:$0xff] }
 0x3b2   :  { %8938 = vmatprep.mubr.msk.f32.mxu0 %vm271_vm8, %v7526_v20  ;;  %v7779_v20 = vld [vmem:[%s13545_s5 + $0x718] sm:$0xff] }
 0x3b3   :  { %v10328_v3 = vpack.c.bf16 %v7779_v20, %v7778_v48  ;;  %v7559_v48 = vld [vmem:[%s13545_s5 + $0x118] sm:$0xff]  ;;  %v7798_v20 = vld [vmem:[%s13545_s5 + $0x7a0] sm:$0xff] }
 0x3b5   :  { %8939 = vmatmul.mubr.msk.f32.vlgmr.msra.gmra.mrb[4].mxu0 %vm271_vm8, %v7527_v51  ;;  %v7540_v51 = vld [vmem:[%s13545_s5 + $0x90] sm:$0xff] }
 0x3b6   :  { %8941 = vmatprep.mubr.msk.f32.mxu0 %vm271_vm8, %v7528_v53  ;;  %9974 = vmatpush3.bf16.msra.mxu0 %v9973_v52  ;;  %v7541_v52 = vld [vmem:[%s13545_s5 + $0x98] sm:$0xff]  ;;  %v7780_v53 = vld [vmem:[%s13545_s5 + $0x720] sm:$0xff] }
 0x3b7   :  { %9975 = vmatprep.subr.bf16.mxu0 %v11024_v60  ;;  %v10001_v2 = vpack.c.bf16 %v7541_v52, %v7540_v51  ;;  %v7560_v52 = vld [vmem:[%s13545_s5 + $0x120] sm:$0xff] }
 0x3b9   :  { %8942 = vmatmul.mubr.msk.f32.gmra.mrb[6].mxu0 %vm271_vm8, %v7529_v54  ;;  %vm11845_vm8 = vmpackc.low %vm86_vm6, %vm11025_vm3  ;;  %v10331_v54 = vpack.c.bf16 %v7781_v50, %v7780_v53  ;;  %v7561_v53 = vld [vmem:[%s13545_s5 + $0x128] sm:$0xff]  ;;  %v7800_v50 = vld [vmem:[%s13545_s5 + $0x7b0] sm:$0xff] }
 0x3ba   :  { %9977 = vmatpush3.bf16.msra.mxu0 %v9976_v4  ;;  %10323 = vmatpush3.bf16.msk.msra.mxu1 %vm11845_vm8, %v10321_v13  ;;  %v7542_v4 = vld [vmem:[%s13545_s5 + $0xa0] sm:$0xff] }
 0x3bb   :  { %9978 = vmatprep.subr.bf16.mxu0 %v11024_v60  ;;  %10324 = vmatprep.subr.bf16.mxu1 %v11024_v60  ;;  %v10004_v57 = vpack.c.bf16 %v7543_v56, %v7542_v4  ;;  %v7788_v13 = vld [vmem:[%s13545_s5 + $0x760] sm:$0xff]  ;;  %v7562_v56 = vld [vmem:[%s13545_s5 + $0x130] sm:$0xff] }
 0x3bc   :  { %8972 = vmatprep.mubr.msk.f32.mxu0 %vm11026_vm10, %v11027_v14 }
 0x3be   :  { %9980 = vmatpush3.bf16.msra.mxu0 %v9979_v0  ;;  %v7783_v0 = vld [vmem:[%s13545_s5 + $0x738] sm:$0xff] }
 0x3bf   :  { %9981 = vmatprep.subr.bf16.mxu0 %v11024_v60  ;;  %v10334_v36 = vpack.c.bf16 %v7783_v0, %v7782_v29  ;;  %v7563_v29 = vld [vmem:[%s13545_s5 + $0x138] sm:$0xff]  ;;  %v7802_v0 = vld [vmem:[%s13545_s5 + $0x7c0] sm:$0xff] }
 0x3c2   :  { %9983 = vmatpush3.bf16.msra.mxu0 %v9982_v1  ;;  %v7544_v1 = vld [vmem:[%s13545_s5 + $0xb0] sm:$0xff] }
 0x3c3   :  { %9984 = vmatprep.subr.bf16.mxu0 %v11024_v60  ;;  %v10007_v62 = vpack.c.bf16 %v7545_v59, %v7544_v1  ;;  %v7564_v59 = vld [vmem:[%s13545_s5 + $0x140] sm:$0xff] }
 0x3c6   :  { %9986 = vmatpush3.bf16.msra.mxu0 %v9985_v61  ;;  %v7785_v61 = vld [vmem:[%s13545_s5 + $0x748] sm:$0xff] }
 0x3c7   :  { %9987 = vmatprep.subr.bf16.mxu0 %v11024_v60  ;;  %v10337_v55 = vpack.c.bf16 %v7785_v61, %v7784_v37  ;;  %v7565_v37 = vld [vmem:[%s13545_s5 + $0x148] sm:$0xf]  ;;  %v7804_v61 = vld [vmem:[%s13545_s5 + $0x7d0] sm:$0xff] }
 0x3ca   :  { %9989 = vmatpush3.bf16.msra.mxu0 %v9988_v5  ;;  %v7546_v5 = vld [vmem:[%s13545_s5 + $0xc0] sm:$0xff] }
 0x3cb   :  { %9990 = vmatprep.subr.bf16.mxu0 %v11024_v60  ;;  %v10010_v7 = vpack.c.bf16 %v7547_v58, %v7546_v5  ;;  %v7568_v58 = vld [vmem:[%s13545_s5 + $0x150] sm:$0xff] }
 0x3ce   :  { %9993 = vmatpush3.bf16.msk.msra.mxu0 %vm11845_vm8, %v9991_v9  ;;  %v7548_v9 = vld [vmem:[%s13545_s5 + $0xd0] sm:$0xff] }
 0x3cf   :  { %9994 = vmatprep.subr.bf16.mxu0 %v11024_v60 }
 0x468   :  { %v8860_v15 = vpop.f32.mrb[4].mxu1 }
 0x469   :  { %v3355_v16 = vpop.f32.mrb[5].mxu1 }
 0x46c   :  { %v8863_v17 = vpop.f32.mrb[6].mxu1 }
 0x46d   :  { %v3365_v18 = vpop.f32.mrb[7].mxu1 }
 0x488   :  { %v8940_v21 = vpop.f32.mrb[4].mxu0 }
 0x489   :  { %v10676_v22 = vadd.f32 %v8940_v21, %v8860_v15  ;;  %v4317_v23 = vpop.f32.mrb[5].mxu0  ;;  %v7789_v15 = vld [vmem:[%s13545_s5 + $0x768] sm:$0xf] }
 0x48a   :  { %v10677_v24 = vadd.f32 %v4317_v23, %v3355_v16  ;;  %v7553_v21 = vld [vmem:[%s13545_s5 + $0xe8] sm:$0xff]  ;;  %v7793_v23 = vld [vmem:[%s13545_s5 + $0x778] sm:$0xff] }
 0x48b   :  { %v4365_v26 = vadd.f32 %v10676_v22, %v4352_v19  ;;  %v7552_v19 = vld [vmem:[%s13545_s5 + $0xe0] sm:$0xff]  ;;  %v7792_v22 = vld [vmem:[%s13545_s5 + $0x770] sm:$0xff] }
 0x48c   :  { %v4364_v30 = vadd.f32 %v10677_v24, %v4347_v25  ;;  %v8943_v31 = vpop.f32.mrb[6].mxu0  ;;  %v10017_v25 = vpack.c.bf16 %v7553_v21, %v7552_v19  ;;  %v10347_v27 = vpack.c.bf16 %v7793_v23, %v7792_v22  ;;  %v7572_v21 = vld [vmem:[%s13545_s5 + $0x170] sm:$0xff]  ;;  %v7573_v22 = vld [vmem:[%s13545_s5 + $0x178] sm:$0xff]  ;;  %v7812_v23 = vld [vmem:[%s13545_s5 + $0x800] sm:$0xff] }
 0x48d   :  { %vm4369_vm6 = vcmp.gt.f32.partialorder %v4365_v26, 0.0  ;;  %v4373_v34 = vmul.f32 0.01, %v4365_v26  ;;  %v11871_v35 = vadd.f32 %v8943_v31, %v8863_v17  ;;  %v4327_v38 = vpop.f32.mrb[7].mxu0  ;;  %v10013_v17 = vpack.c.bf16 %v7549_v10, %v7548_v9  ;;  %v7794_v31 = vld [vmem:[%s13545_s5 + $0x780] sm:$0xff] }
 0x48e   :  { %vm4368_vm11 = vcmp.gt.f32.partialorder %v4364_v30, 0.0  ;;  %v4372_v39 = vmul.f32 0.01, %v4364_v30  ;;  %v11873_v40 = vadd.f32 %v4327_v38, %v3365_v18  ;;  %v10343_v18 = vpack.c.bf16 %v7789_v15, %v7788_v13  ;;  %v7571_v13 = vld [vmem:[%s13545_s5 + $0x168] sm:$0xff] }
 0x48f   :  { %v11875_v42 = vsel %vm4369_vm6, %v4365_v26, %v4373_v34  ;;  %v10350_v38 = vpack.c.bf16 %v7795_v32, %v7794_v31  ;;  %v7815_v31 = vld [vmem:[%s13545_s5 + $0x818] sm:$0xff] }
 0x490   :  { %v11883_v46 = vsel %vm4368_vm11, %v4364_v30, %v4372_v39  ;;  %v5775_v47 = vrot.slane %v11875_v42, 7  ;;  %v4366_v16 = vadd.f32 %v11873_v40, %v4357_v11  ;;  %v7555_v30 = vld [vmem:[%s13545_s5 + $0xf8] sm:$0xff]  ;;  %v7556_v39 = vld [vmem:[%s13545_s5 + $0x100] sm:$0xff]  ;;  %v7557_v40 = vld [vmem:[%s13545_s5 + $0x108] sm:$0xff] }
 0x491   :  { %8973 = vmatmul.mubr.msk.f32.vlgmr.msra.gmra.mrb[8].mxu0 %vm3222_vm5, %v11883_v46  ;;  %v4487_v26 = vrot.slane %v11883_v46, 1  ;;  %v10020_v34 = vpack.c.bf16 %v7555_v30, %v7554_v28  ;;  %v10023_v44 = vpack.c.bf16 %v7557_v40, %v7556_v39  ;;  %v4579_v9 = vrot.slane %v11883_v46, 2  ;;  %v7570_v11 = vld [vmem:[%s13545_s5 + $0x160] sm:$0xff]  ;;  %v7575_v28 = vld [vmem:[%s13545_s5 + $0x188] sm:$0xff]  ;;  %v7814_v30 = vld [vmem:[%s13545_s5 + $0x810] sm:$0xff] }
 0x492   :  { %9996 = vmatpush3.bf16.msra.mxu0 %v9995_v41  ;;  %9438 = vmatmul.mubr.msk.f32.vlgmr.msra.gmra.mrb[8].mxu1 %vm3222_vm5, %v5775_v47  ;;  %v4374_v24 = vmul.f32 0.01, %v4366_v16  ;;  %vm4370_vm12 = vcmp.gt.f32.partialorder %v4366_v16, 0.0  ;;  %v7796_v41 = vld [vmem:[%s13545_s5 + $0x790] sm:$0xff]  ;;  %v7577_v39 = vld [vmem:[%s13545_s5 + $0x198] sm:$0xff]  ;;  %v7816_v40 = vld [vmem:[%s13545_s5 + $0x820] sm:$0xff] }
 0x493   :  { %10326 = vmatpush3.bf16.msra.mxu1 %v10325_v43  ;;  %9997 = vmatprep.subr.bf16.mxu0 %v11024_v60  ;;  %v7797_v43 = vld [vmem:[%s13545_s5 + $0x798] sm:$0xff]  ;;  %v7558_v47 = vld [vmem:[%s13545_s5 + $0x110] sm:$0xff] }
 0x494   :  { %10327 = vmatprep.subr.bf16.mxu1 %v11024_v60  ;;  %9003 = vmatprep.mubr.msk.f32.mxu0 %vm11026_vm10, %v11027_v14  ;;  %v12003_v33 = vsel %vm4370_vm12, %v4366_v16, %v4374_v24  ;;  %v10353_v45 = vpack.c.bf16 %v7797_v43, %v7796_v41  ;;  %v7810_v16 = vld [vmem:[%s13545_s5 + $0x7f0] sm:$0xff]  ;;  %v7813_v24 = vld [vmem:[%s13545_s5 + $0x808] sm:$0xff] }
 0x495   :  { %9468 = vmatprep.mubr.msk.f32.mxu1 %vm11026_vm10, %v11027_v14  ;;  %v5959_v15 = vrot.slane %v12003_v33, 1  ;;  %v7817_v41 = vld [vmem:[%s13545_s5 + $0x828] sm:$0xff] }
 0x496   :  { %9999 = vmatpush3.bf16.msra.mxu0 %v9998_v49  ;;  %v7799_v49 = vld [vmem:[%s13545_s5 + $0x7a8] sm:$0xff] }
 0x497   :  { %10329 = vmatpush3.bf16.msra.mxu1 %v10328_v3  ;;  %10000 = vmatprep.subr.bf16.mxu0 %v11024_v60  ;;  %v10026_v3 = vpack.c.bf16 %v7559_v48, %v7558_v47  ;;  %v10356_v51 = vpack.c.bf16 %v7799_v49, %v7798_v20  ;;  %v7579_v47 = vld [vmem:[%s13545_s5 + $0x1a8] sm:$0xff]  ;;  %v7818_v48 = vld [vmem:[%s13545_s5 + $0x830] sm:$0xff]  ;;  %v7819_v20 = vld [vmem:[%s13545_s5 + $0x838] sm:$0xff] }
 0x498   :  { %10330 = vmatprep.subr.bf16.mxu1 %v11024_v60 }
 0x49a   :  { %10002 = vmatpush3.bf16.msra.mxu0 %v10001_v2  ;;  %v7801_v2 = vld [vmem:[%s13545_s5 + $0x7b8] sm:$0xff] }
 0x49b   :  { %10332 = vmatpush3.bf16.msra.mxu1 %v10331_v54  ;;  %10003 = vmatprep.subr.bf16.mxu0 %v11024_v60  ;;  %v10029_v54 = vpack.c.bf16 %v7561_v53, %v7560_v52  ;;  %v10359_v4 = vpack.c.bf16 %v7801_v2, %v7800_v50  ;;  %v7581_v52 = vld [vmem:[%s13545_s5 + $0x1b8] sm:$0xf]  ;;  %v7820_v53 = vld [vmem:[%s13545_s5 + $0x840] sm:$0xff]  ;;  %v7821_v50 = vld [vmem:[%s13545_s5 + $0x848] sm:$0xf] }
 0x49c   :  { %10333 = vmatprep.subr.bf16.mxu1 %v11024_v60 }
 0x49e   :  { %10005 = vmatpush3.bf16.msra.mxu0 %v10004_v57  ;;  %v7803_v57 = vld [vmem:[%s13545_s5 + $0x7c8] sm:$0xff] }
 0x49f   :  { %10335 = vmatpush3.bf16.msra.mxu1 %v10334_v36  ;;  %10006 = vmatprep.subr.bf16.mxu0 %v11024_v60  ;;  %v10032_v36 = vpack.c.bf16 %v7563_v29, %v7562_v56  ;;  %v10362_v1 = vpack.c.bf16 %v7803_v57, %v7802_v0  ;;  %v7585_v56 = vld [vmem:[%s13545_s5 + $0x1c8] sm:$0xff]  ;;  %v7824_v29 = vld [vmem:[%s13545_s5 + $0x850] sm:$0xff]  ;;  %v7825_v0 = vld [vmem:[%s13545_s5 + $0x858] sm:$0xff] }
 0x4a0   :  { %10336 = vmatprep.subr.bf16.mxu1 %v11024_v60 }
 0x4a2   :  { %10008 = vmatpush3.bf16.msra.mxu0 %v10007_v62  ;;  %v7805_v62 = vld [vmem:[%s13545_s5 + $0x7d8] sm:$0xf] }
 0x4a3   :  { %10338 = vmatpush3.bf16.msra.mxu1 %v10337_v55  ;;  %10009 = vmatprep.subr.bf16.mxu0 %v11024_v60  ;;  %v10035_v55 = vpack.c.bf16 %v7565_v37, %v7564_v59  ;;  %v10365_v5 = vpack.c.bf16 %v7805_v62, %v7804_v61  ;;  %v7586_v59 = vld [vmem:[%s13545_s5 + $0x1d0] sm:$0xff]  ;;  %v7587_v37 = vld [vmem:[%s13545_s5 + $0x1d8] sm:$0xff]  ;;  %v6051_v61 = vrot.slane %v12003_v33, 2  ;;  %v7826_v62 = vld [vmem:[%s13545_s5 + $0x860] sm:$0xff] }
 0x4a4   :  { %10339 = vmatprep.subr.bf16.mxu1 %v11024_v60 }
 0x4a6   :  { %10011 = vmatpush3.bf16.msra.mxu0 %v10010_v7  ;;  %v7809_v7 = vld [vmem:[%s13545_s5 + $0x7e8] sm:$0xff] }
 0x4a7   :  { %10341 = vmatpush3.bf16.msra.mxu1 %v10340_v8  ;;  %10012 = vmatprep.subr.bf16.mxu0 %v11024_v60  ;;  %v10039_v8 = vpack.c.bf16 %v7569_v6, %v7568_v58  ;;  %v10369_v10 = vpack.c.bf16 %v7809_v7, %v7808_v63  ;;  %v7588_v6 = vld [vmem:[%s13545_s5 + $0x1e0] sm:$0xff]  ;;  %v7589_v63 = vld [vmem:[%s13545_s5 + $0x1e8] sm:$0xff]  ;;  %v7828_v7 = vld [vmem:[%s13545_s5 + $0x870] sm:$0xff] }
 0x4a8   :  { %10342 = vmatprep.subr.bf16.mxu1 %v11024_v60 }
 0x4aa   :  { %10015 = vmatpush3.bf16.msk.msra.mxu0 %vm11845_vm8, %v10013_v17  ;;  %v7811_v17 = vld [vmem:[%s13545_s5 + $0x7f8] sm:$0xff] }
 0x4ab   :  { %10345 = vmatpush3.bf16.msk.msra.mxu1 %vm11845_vm8, %v10343_v18  ;;  %10016 = vmatprep.subr.bf16.mxu0 %v11024_v60  ;;  %v10042_v18 = vpack.c.bf16 %v7571_v13, %v7570_v11  ;;  %v10372_v19 = vpack.c.bf16 %v7811_v17, %v7810_v16  ;;  %v7590_v11 = vld [vmem:[%s13545_s5 + $0x1f0] sm:$0xff]  ;;  %v7591_v13 = vld [vmem:[%s13545_s5 + $0x1f8] sm:$0xff]  ;;  %v7831_v16 = vld [vmem:[%s13545_s5 + $0x888] sm:$0xff] }
 0x4ac   :  { %10346 = vmatprep.subr.bf16.mxu1 %v11024_v60  ;;  %v10070_v17 = vpack.c.bf16 %v7591_v13, %v7590_v11  ;;  %v7611_v11 = vld [vmem:[%s13545_s5 + $0x288] sm:$0xff]  ;;  %v7850_v13 = vld [vmem:[%s13545_s5 + $0x910] sm:$0xff] }
 0x4ad   :  { %9004 = vmatmul.mubr.msk.f32.vlgmr.msra.gmra.mrb[8].mxu0 %vm3222_vm5, %v4487_v26  ;;  %v10375_v26 = vpack.c.bf16 %v7813_v24, %v7812_v23  ;;  %v7833_v23 = vld [vmem:[%s13545_s5 + $0x898] sm:$0xff] }
 0x4ae   :  { %10018 = vmatpush3.bf16.msra.mxu0 %v10017_v25  ;;  %9469 = vmatmul.mubr.msk.f32.vlgmr.msra.gmra.mrb[8].mxu1 %vm3222_vm5, %v12003_v33  ;;  %v10045_v25 = vpack.c.bf16 %v7573_v22, %v7572_v21  ;;  %v7593_v21 = vld [vmem:[%s13545_s5 + $0x208] sm:$0xff]  ;;  %v7832_v22 = vld [vmem:[%s13545_s5 + $0x890] sm:$0xff] }
 0x4af   :  { %10348 = vmatpush3.bf16.msra.mxu1 %v10347_v27  ;;  %10019 = vmatprep.subr.bf16.mxu0 %v11024_v60  ;;  %v7574_v27 = vld [vmem:[%s13545_s5 + $0x180] sm:$0xff] }
 0x4b0   :  { %10349 = vmatprep.subr.bf16.mxu1 %v11024_v60  ;;  %9034 = vmatprep.mubr.msk.f32.mxu0 %vm11026_vm10, %v11027_v14  ;;  %v10048_v32 = vpack.c.bf16 %v7575_v28, %v7574_v27  ;;  %v7595_v27 = vld [vmem:[%s13545_s5 + $0x218] sm:$0xff]  ;;  %v7834_v28 = vld [vmem:[%s13545_s5 + $0x8a0] sm:$0xff] }
 0x4b1   :  { %9499 = vmatprep.mubr.msk.f32.mxu1 %vm11026_vm10, %v11027_v14 }
 0x4b2   :  { %10021 = vmatpush3.bf16.msra.mxu0 %v10020_v34  ;;  %v10378_v34 = vpack.c.bf16 %v7815_v31, %v7814_v30  ;;  %v7835_v30 = vld [vmem:[%s13545_s5 + $0x8a8] sm:$0xff] }
 0x4b3   :  { %10351 = vmatpush3.bf16.msra.mxu1 %v10350_v38  ;;  %10022 = vmatprep.subr.bf16.mxu0 %v11024_v60  ;;  %v7576_v38 = vld [vmem:[%s13545_s5 + $0x190] sm:$0xff] }
 0x4b4   :  { %10352 = vmatprep.subr.bf16.mxu1 %v11024_v60  ;;  %v10051_v43 = vpack.c.bf16 %v7577_v39, %v7576_v38  ;;  %v7597_v38 = vld [vmem:[%s13545_s5 + $0x228] sm:$0xf]  ;;  %v7836_v39 = vld [vmem:[%s13545_s5 + $0x8b0] sm:$0xff] }
 0x4b6   :  { %10024 = vmatpush3.bf16.msra.mxu0 %v10023_v44  ;;  %v10381_v44 = vpack.c.bf16 %v7817_v41, %v7816_v40  ;;  %v7837_v40 = vld [vmem:[%s13545_s5 + $0x8b8] sm:$0xf] }
 0x4b7   :  { %10354 = vmatpush3.bf16.msra.mxu1 %v10353_v45  ;;  %10025 = vmatprep.subr.bf16.mxu0 %v11024_v60  ;;  %v7578_v45 = vld [vmem:[%s13545_s5 + $0x1a0] sm:$0xff] }
 0x4b8   :  { %10355 = vmatprep.subr.bf16.mxu1 %v11024_v60  ;;  %v10054_v49 = vpack.c.bf16 %v7579_v47, %v7578_v45  ;;  %v7601_v45 = vld [vmem:[%s13545_s5 + $0x238] sm:$0xff]  ;;  %v7840_v47 = vld [vmem:[%s13545_s5 + $0x8c0] sm:$0xff] }
 0x4ba   :  { %10027 = vmatpush3.bf16.msra.mxu0 %v10026_v3  ;;  %v10384_v3 = vpack.c.bf16 %v7819_v20, %v7818_v48  ;;  %v7841_v48 = vld [vmem:[%s13545_s5 + $0x8c8] sm:$0xff] }
 0x4bb   :  { %10357 = vmatpush3.bf16.msra.mxu1 %v10356_v51  ;;  %10028 = vmatprep.subr.bf16.mxu0 %v11024_v60  ;;  %v7580_v51 = vld [vmem:[%s13545_s5 + $0x1b0] sm:$0xff] }
 0x4bc   :  { %10358 = vmatprep.subr.bf16.mxu1 %v11024_v60  ;;  %v10057_v2 = vpack.c.bf16 %v7581_v52, %v7580_v51  ;;  %v7602_v51 = vld [vmem:[%s13545_s5 + $0x240] sm:$0xff]  ;;  %v7603_v52 = vld [vmem:[%s13545_s5 + $0x248] sm:$0xff] }
 0x4be   :  { %10030 = vmatpush3.bf16.msra.mxu0 %v10029_v54  ;;  %v10387_v54 = vpack.c.bf16 %v7821_v50, %v7820_v53  ;;  %v6143_v53 = vrot.slane %v12003_v33, 3  ;;  %v7842_v50 = vld [vmem:[%s13545_s5 + $0x8d0] sm:$0xff] }
 0x4bf   :  { %10360 = vmatpush3.bf16.msra.mxu1 %v10359_v4  ;;  %10031 = vmatprep.subr.bf16.mxu0 %v11024_v60  ;;  %v7584_v4 = vld [vmem:[%s13545_s5 + $0x1c0] sm:$0xff] }
 0x4c0   :  { %10361 = vmatprep.subr.bf16.mxu1 %v11024_v60  ;;  %v10061_v57 = vpack.c.bf16 %v7585_v56, %v7584_v4  ;;  %v7604_v56 = vld [vmem:[%s13545_s5 + $0x250] sm:$0xff] }
 0x4c2   :  { %10033 = vmatpush3.bf16.msra.mxu0 %v10032_v36  ;;  %v4671_v36 = vrot.slane %v11883_v46, 3 }
 0x4c3   :  { %10363 = vmatpush3.bf16.msra.mxu1 %v10362_v1  ;;  %10034 = vmatprep.subr.bf16.mxu0 %v11024_v60  ;;  %v10391_v1 = vpack.c.bf16 %v7825_v0, %v7824_v29  ;;  %v7605_v29 = vld [vmem:[%s13545_s5 + $0x258] sm:$0xff]  ;;  %v7844_v0 = vld [vmem:[%s13545_s5 + $0x8e0] sm:$0xff] }
 0x4c4   :  { %10364 = vmatprep.subr.bf16.mxu1 %v11024_v60 }
 0x4c6   :  { %10037 = vmatpush3.bf16.msk.msra.mxu0 %vm11845_vm8, %v10035_v55  ;;  %v7827_v55 = vld [vmem:[%s13545_s5 + $0x868] sm:$0xff] }
 0x4c7   :  { %10367 = vmatpush3.bf16.msk.msra.mxu1 %vm11845_vm8, %v10365_v5  ;;  %10038 = vmatprep.subr.bf16.mxu0 %v11024_v60  ;;  %v10064_v5 = vpack.c.bf16 %v7587_v37, %v7586_v59  ;;  %v10394_v58 = vpack.c.bf16 %v7827_v55, %v7826_v62  ;;  %v7606_v59 = vld [vmem:[%s13545_s5 + $0x260] sm:$0xff]  ;;  %v7607_v37 = vld [vmem:[%s13545_s5 + $0x268] sm:$0xff]  ;;  %v7847_v62 = vld [vmem:[%s13545_s5 + $0x8f8] sm:$0xff] }
 0x4c8   :  { %10368 = vmatprep.subr.bf16.mxu1 %v11024_v60  ;;  %v10092_v55 = vpack.c.bf16 %v7607_v37, %v7606_v59  ;;  %v7627_v59 = vld [vmem:[%s13545_s5 + $0x2f8] sm:$0xff]  ;;  %v7866_v37 = vld [vmem:[%s13545_s5 + $0x980] sm:$0xff] }
 0x4c9   :  { %9035 = vmatmul.mubr.msk.f32.vlgmr.msra.gmra.mrb[8].mxu0 %vm3222_vm5, %v4579_v9  ;;  %v10067_v9 = vpack.c.bf16 %v7589_v63, %v7588_v6  ;;  %v7609_v6 = vld [vmem:[%s13545_s5 + $0x278] sm:$0xff]  ;;  %v7848_v63 = vld [vmem:[%s13545_s5 + $0x900] sm:$0xff] }
 0x4ca   :  { %10040 = vmatpush3.bf16.msra.mxu0 %v10039_v8  ;;  %9500 = vmatmul.mubr.msk.f32.vlgmr.msra.gmra.mrb[8].mxu1 %vm3222_vm5, %v5959_v15  ;;  %v7829_v8 = vld [vmem:[%s13545_s5 + $0x878] sm:$0xff]  ;;  %v7830_v15 = vld [vmem:[%s13545_s5 + $0x880] sm:$0xff] }
 0x4cb   :  { %10370 = vmatpush3.bf16.msra.mxu1 %v10369_v10  ;;  %10041 = vmatprep.subr.bf16.mxu0 %v11024_v60  ;;  %v10397_v10 = vpack.c.bf16 %v7829_v8, %v7828_v7  ;;  %v7849_v7 = vld [vmem:[%s13545_s5 + $0x908] sm:$0xff] }
 0x4cc   :  { %10371 = vmatprep.subr.bf16.mxu1 %v11024_v60  ;;  %9065 = vmatprep.mubr.msk.f32.mxu0 %vm11026_vm10, %v11027_v14 }
 0x4cd   :  { %9530 = vmatprep.mubr.msk.f32.mxu1 %vm11026_vm10, %v11027_v14 }
 0x4ce   :  { %10043 = vmatpush3.bf16.msra.mxu0 %v10042_v18  ;;  %v10400_v18 = vpack.c.bf16 %v7831_v16, %v7830_v15  ;;  %v7851_v15 = vld [vmem:[%s13545_s5 + $0x918] sm:$0xff] }
 0x4cf   :  { %10373 = vmatpush3.bf16.msra.mxu1 %v10372_v19  ;;  %10044 = vmatprep.subr.bf16.mxu0 %v11024_v60  ;;  %v7592_v19 = vld [vmem:[%s13545_s5 + $0x200] sm:$0xff] }
 0x4d0   :  { %10374 = vmatprep.subr.bf16.mxu1 %v11024_v60  ;;  %v10073_v24 = vpack.c.bf16 %v7593_v21, %v7592_v19  ;;  %v7613_v19 = vld [vmem:[%s13545_s5 + $0x298] sm:$0xf]  ;;  %v7852_v21 = vld [vmem:[%s13545_s5 + $0x920] sm:$0xff] }
 0x4d2   :  { %10046 = vmatpush3.bf16.msra.mxu0 %v10045_v25  ;;  %v10403_v25 = vpack.c.bf16 %v7833_v23, %v7832_v22  ;;  %v7853_v22 = vld [vmem:[%s13545_s5 + $0x928] sm:$0xf] }
 0x4d3   :  { %10376 = vmatpush3.bf16.msra.mxu1 %v10375_v26  ;;  %10047 = vmatprep.subr.bf16.mxu0 %v11024_v60  ;;  %v7594_v26 = vld [vmem:[%s13545_s5 + $0x210] sm:$0xff] }
 0x4d4   :  { %10377 = vmatprep.subr.bf16.mxu1 %v11024_v60  ;;  %v10076_v31 = vpack.c.bf16 %v7595_v27, %v7594_v26  ;;  %v7617_v26 = vld [vmem:[%s13545_s5 + $0x2a8] sm:$0xff]  ;;  %v7856_v27 = vld [vmem:[%s13545_s5 + $0x930] sm:$0xff] }
 0x4d6   :  { %10049 = vmatpush3.bf16.msra.mxu0 %v10048_v32  ;;  %v10406_v32 = vpack.c.bf16 %v7835_v30, %v7834_v28  ;;  %v7857_v28 = vld [vmem:[%s13545_s5 + $0x938] sm:$0xff] }
 0x4d7   :  { %10379 = vmatpush3.bf16.msra.mxu1 %v10378_v34  ;;  %10050 = vmatprep.subr.bf16.mxu0 %v11024_v60  ;;  %v7596_v34 = vld [vmem:[%s13545_s5 + $0x220] sm:$0xff] }
 0x4d8   :  { %10380 = vmatprep.subr.bf16.mxu1 %v11024_v60  ;;  %v10079_v41 = vpack.c.bf16 %v7597_v38, %v7596_v34  ;;  %v7618_v34 = vld [vmem:[%s13545_s5 + $0x2b0] sm:$0xff]  ;;  %v7619_v38 = vld [vmem:[%s13545_s5 + $0x2b8] sm:$0xff] }
 0x4da   :  { %10052 = vmatpush3.bf16.msra.mxu0 %v10051_v43  ;;  %v10409_v43 = vpack.c.bf16 %v7837_v40, %v7836_v39  ;;  %v6235_v39 = vrot.slane %v12003_v33, 4  ;;  %v7858_v40 = vld [vmem:[%s13545_s5 + $0x940] sm:$0xff] }
 0x4db   :  { %10382 = vmatpush3.bf16.msra.mxu1 %v10381_v44  ;;  %10053 = vmatprep.subr.bf16.mxu0 %v11024_v60  ;;  %v7600_v44 = vld [vmem:[%s13545_s5 + $0x230] sm:$0xff] }
 0x4dc   :  { %10383 = vmatprep.subr.bf16.mxu1 %v11024_v60  ;;  %v10083_v20 = vpack.c.bf16 %v7601_v45, %v7600_v44  ;;  %v7620_v45 = vld [vmem:[%s13545_s5 + $0x2c0] sm:$0xff] }
 0x4de   :  { %10055 = vmatpush3.bf16.msra.mxu0 %v10054_v49  ;;  %v4763_v49 = vrot.slane %v11883_v46, 4 }
 0x4df   :  { %10385 = vmatpush3.bf16.msra.mxu1 %v10384_v3  ;;  %10056 = vmatprep.subr.bf16.mxu0 %v11024_v60  ;;  %v10413_v3 = vpack.c.bf16 %v7841_v48, %v7840_v47  ;;  %v7621_v47 = vld [vmem:[%s13545_s5 + $0x2c8] sm:$0xff]  ;;  %v7860_v48 = vld [vmem:[%s13545_s5 + $0x950] sm:$0xff] }
 0x4e0   :  { %10386 = vmatprep.subr.bf16.mxu1 %v11024_v60 }
 0x4e2   :  { %10059 = vmatpush3.bf16.msk.msra.mxu0 %vm11845_vm8, %v10057_v2  ;;  %v7843_v2 = vld [vmem:[%s13545_s5 + $0x8d8] sm:$0xff] }
 0x4e3   :  { %10389 = vmatpush3.bf16.msk.msra.mxu1 %vm11845_vm8, %v10387_v54  ;;  %10060 = vmatprep.subr.bf16.mxu0 %v11024_v60  ;;  %v10086_v54 = vpack.c.bf16 %v7603_v52, %v7602_v51  ;;  %v10416_v4 = vpack.c.bf16 %v7843_v2, %v7842_v50  ;;  %v7622_v51 = vld [vmem:[%s13545_s5 + $0x2d0] sm:$0xff]  ;;  %v7623_v52 = vld [vmem:[%s13545_s5 + $0x2d8] sm:$0xff]  ;;  %v7863_v50 = vld [vmem:[%s13545_s5 + $0x968] sm:$0xff] }
 0x4e4   :  { %10390 = vmatprep.subr.bf16.mxu1 %v11024_v60  ;;  %v10114_v2 = vpack.c.bf16 %v7623_v52, %v7622_v51  ;;  %v7643_v51 = vld [vmem:[%s13545_s5 + $0x368] sm:$0xff]  ;;  %v7882_v52 = vld [vmem:[%s13545_s5 + $0x9f0] sm:$0xff] }
 0x4e5   :  { %9066 = vmatmul.mubr.msk.f32.vlgmr.msra.gmra.mrb[8].mxu0 %vm3222_vm5, %v4671_v36  ;;  %v10089_v36 = vpack.c.bf16 %v7605_v29, %v7604_v56  ;;  %v7625_v56 = vld [vmem:[%s13545_s5 + $0x2e8] sm:$0xff]  ;;  %v7864_v29 = vld [vmem:[%s13545_s5 + $0x970] sm:$0xff] }
 0x4e6   :  { %10062 = vmatpush3.bf16.msra.mxu0 %v10061_v57  ;;  %9531 = vmatmul.mubr.msk.f32.vlgmr.msra.gmra.mrb[8].mxu1 %vm3222_vm5, %v6051_v61  ;;  %v7845_v57 = vld [vmem:[%s13545_s5 + $0x8e8] sm:$0xff]  ;;  %v7846_v61 = vld [vmem:[%s13545_s5 + $0x8f0] sm:$0xff] }
 0x4e7   :  { %10392 = vmatpush3.bf16.msra.mxu1 %v10391_v1  ;;  %10063 = vmatprep.subr.bf16.mxu0 %v11024_v60  ;;  %v10419_v1 = vpack.c.bf16 %v7845_v57, %v7844_v0  ;;  %v7865_v0 = vld [vmem:[%s13545_s5 + $0x978] sm:$0xff] }
 0x4e8   :  { %10393 = vmatprep.subr.bf16.mxu1 %v11024_v60  ;;  %9096 = vmatprep.mubr.msk.f32.mxu0 %vm11026_vm10, %v11027_v14 }
 0x4e9   :  { %9561 = vmatprep.mubr.msk.f32.mxu1 %vm11026_vm10, %v11027_v14 }
 0x4ea   :  { %10065 = vmatpush3.bf16.msra.mxu0 %v10064_v5  ;;  %v10422_v5 = vpack.c.bf16 %v7847_v62, %v7846_v61  ;;  %v7867_v61 = vld [vmem:[%s13545_s5 + $0x988] sm:$0xff] }
 0x4eb   :  { %10395 = vmatpush3.bf16.msra.mxu1 %v10394_v58  ;;  %10066 = vmatprep.subr.bf16.mxu0 %v11024_v60  ;;  %v7608_v58 = vld [vmem:[%s13545_s5 + $0x270] sm:$0xff] }
 0x4ec   :  { %10396 = vmatprep.subr.bf16.mxu1 %v11024_v60  ;;  %v10095_v8 = vpack.c.bf16 %v7609_v6, %v7608_v58  ;;  %v7629_v58 = vld [vmem:[%s13545_s5 + $0x308] sm:$0xf]  ;;  %v7868_v6 = vld [vmem:[%s13545_s5 + $0x990] sm:$0xff] }
 0x4ee   :  { %10068 = vmatpush3.bf16.msra.mxu0 %v10067_v9  ;;  %v10425_v9 = vpack.c.bf16 %v7849_v7, %v7848_v63  ;;  %v7869_v63 = vld [vmem:[%s13545_s5 + $0x998] sm:$0xf] }
 0x4ef   :  { %10398 = vmatpush3.bf16.msra.mxu1 %v10397_v10  ;;  %10069 = vmatprep.subr.bf16.mxu0 %v11024_v60  ;;  %v7610_v10 = vld [vmem:[%s13545_s5 + $0x280] sm:$0xff] }
 0x4f0   :  { %10399 = vmatprep.subr.bf16.mxu1 %v11024_v60  ;;  %v10098_v16 = vpack.c.bf16 %v7611_v11, %v7610_v10  ;;  %v7633_v10 = vld [vmem:[%s13545_s5 + $0x318] sm:$0xff]  ;;  %v7872_v11 = vld [vmem:[%s13545_s5 + $0x9a0] sm:$0xff] }
 0x4f2   :  { %10071 = vmatpush3.bf16.msra.mxu0 %v10070_v17  ;;  %v10428_v17 = vpack.c.bf16 %v7851_v15, %v7850_v13  ;;  %v7873_v13 = vld [vmem:[%s13545_s5 + $0x9a8] sm:$0xff] }
 0x4f3   :  { %10401 = vmatpush3.bf16.msra.mxu1 %v10400_v18  ;;  %10072 = vmatprep.subr.bf16.mxu0 %v11024_v60  ;;  %v7612_v18 = vld [vmem:[%s13545_s5 + $0x290] sm:$0xff] }
 0x4f4   :  { %10402 = vmatprep.subr.bf16.mxu1 %v11024_v60  ;;  %v10101_v23 = vpack.c.bf16 %v7613_v19, %v7612_v18  ;;  %v7634_v18 = vld [vmem:[%s13545_s5 + $0x320] sm:$0xff]  ;;  %v7635_v19 = vld [vmem:[%s13545_s5 + $0x328] sm:$0xff] }
 0x4f6   :  { %10074 = vmatpush3.bf16.msra.mxu0 %v10073_v24  ;;  %v10431_v24 = vpack.c.bf16 %v7853_v22, %v7852_v21  ;;  %v6327_v21 = vrot.slane %v12003_v33, 5  ;;  %v7874_v22 = vld [vmem:[%s13545_s5 + $0x9b0] sm:$0xff] }
 0x4f7   :  { %10404 = vmatpush3.bf16.msra.mxu1 %v10403_v25  ;;  %10075 = vmatprep.subr.bf16.mxu0 %v11024_v60  ;;  %v7616_v25 = vld [vmem:[%s13545_s5 + $0x2a0] sm:$0xff] }
 0x4f8   :  { %10405 = vmatprep.subr.bf16.mxu1 %v11024_v60  ;;  %v10105_v30 = vpack.c.bf16 %v7617_v26, %v7616_v25  ;;  %v7636_v26 = vld [vmem:[%s13545_s5 + $0x330] sm:$0xff] }
 0x4fa   :  { %10077 = vmatpush3.bf16.msra.mxu0 %v10076_v31  ;;  %v4855_v31 = vrot.slane %v11883_v46, 5 }
 0x4fb   :  { %10407 = vmatpush3.bf16.msra.mxu1 %v10406_v32  ;;  %10078 = vmatprep.subr.bf16.mxu0 %v11024_v60  ;;  %v10435_v32 = vpack.c.bf16 %v7857_v28, %v7856_v27  ;;  %v7637_v27 = vld [vmem:[%s13545_s5 + $0x338] sm:$0xff]  ;;  %v7876_v28 = vld [vmem:[%s13545_s5 + $0x9c0] sm:$0xff] }
 0x4fc   :  { %10408 = vmatprep.subr.bf16.mxu1 %v11024_v60 }
 0x4fe   :  { %10081 = vmatpush3.bf16.msk.msra.mxu0 %vm11845_vm8, %v10079_v41  ;;  %v7859_v41 = vld [vmem:[%s13545_s5 + $0x948] sm:$0xff] }
 0x4ff   :  { %10411 = vmatpush3.bf16.msk.msra.mxu1 %vm11845_vm8, %v10409_v43  ;;  %10082 = vmatprep.subr.bf16.mxu0 %v11024_v60  ;;  %v10108_v43 = vpack.c.bf16 %v7619_v38, %v7618_v34  ;;  %v10438_v44 = vpack.c.bf16 %v7859_v41, %v7858_v40  ;;  %v7638_v34 = vld [vmem:[%s13545_s5 + $0x340] sm:$0xff]  ;;  %v7639_v38 = vld [vmem:[%s13545_s5 + $0x348] sm:$0xff]  ;;  %v7879_v40 = vld [vmem:[%s13545_s5 + $0x9d8] sm:$0xff] }
 0x500   :  { %10412 = vmatprep.subr.bf16.mxu1 %v11024_v60  ;;  %v10136_v41 = vpack.c.bf16 %v7639_v38, %v7638_v34  ;;  %v7898_v34 = vld [vmem:[%s13545_s5 + $0xa60] sm:$0xff]  ;;  %v7899_v38 = vld [vmem:[%s13545_s5 + $0xa68] sm:$0xff] }
 0x501   :  { %9097 = vmatmul.mubr.msk.f32.vlgmr.msra.gmra.mrb[8].mxu0 %vm3222_vm5, %v4763_v49  ;;  %v10111_v49 = vpack.c.bf16 %v7621_v47, %v7620_v45  ;;  %v7641_v45 = vld [vmem:[%s13545_s5 + $0x358] sm:$0xff]  ;;  %v7880_v47 = vld [vmem:[%s13545_s5 + $0x9e0] sm:$0xff] }
 0x502   :  { %10084 = vmatpush3.bf16.msra.mxu0 %v10083_v20  ;;  %9562 = vmatmul.mubr.msk.f32.vlgmr.msra.gmra.mrb[8].mxu1 %vm3222_vm5, %v6143_v53  ;;  %v7861_v20 = vld [vmem:[%s13545_s5 + $0x958] sm:$0xff]  ;;  %v7862_v53 = vld [vmem:[%s13545_s5 + $0x960] sm:$0xff] }
 0x503   :  { %10414 = vmatpush3.bf16.msra.mxu1 %v10413_v3  ;;  %10085 = vmatprep.subr.bf16.mxu0 %v11024_v60  ;;  %v10441_v3 = vpack.c.bf16 %v7861_v20, %v7860_v48  ;;  %v7881_v48 = vld [vmem:[%s13545_s5 + $0x9e8] sm:$0xff] }
 0x504   :  { %10415 = vmatprep.subr.bf16.mxu1 %v11024_v60  ;;  %9127 = vmatprep.mubr.msk.f32.mxu0 %vm11026_vm10, %v11027_v14 }
 0x505   :  { %9592 = vmatprep.mubr.msk.f32.mxu1 %vm11026_vm10, %v11027_v14 }
 0x506   :  { %10087 = vmatpush3.bf16.msra.mxu0 %v10086_v54  ;;  %v10444_v54 = vpack.c.bf16 %v7863_v50, %v7862_v53  ;;  %v7883_v53 = vld [vmem:[%s13545_s5 + $0x9f8] sm:$0xff] }
 0x507   :  { %10417 = vmatpush3.bf16.msra.mxu1 %v10416_v4  ;;  %10088 = vmatprep.subr.bf16.mxu0 %v11024_v60  ;;  %v7624_v4 = vld [vmem:[%s13545_s5 + $0x2e0] sm:$0xff] }
 0x508   :  { %10418 = vmatprep.subr.bf16.mxu1 %v11024_v60  ;;  %v10117_v57 = vpack.c.bf16 %v7625_v56, %v7624_v4  ;;  %v7645_v4 = vld [vmem:[%s13545_s5 + $0x378] sm:$0xf]  ;;  %v7884_v56 = vld [vmem:[%s13545_s5 + $0xa00] sm:$0xff] }
 0x50a   :  { %10090 = vmatpush3.bf16.msra.mxu0 %v10089_v36  ;;  %v10447_v36 = vpack.c.bf16 %v7865_v0, %v7864_v29  ;;  %v7885_v29 = vld [vmem:[%s13545_s5 + $0xa08] sm:$0xf] }
 0x50b   :  { %10420 = vmatpush3.bf16.msra.mxu1 %v10419_v1  ;;  %10091 = vmatprep.subr.bf16.mxu0 %v11024_v60  ;;  %v7626_v1 = vld [vmem:[%s13545_s5 + $0x2f0] sm:$0xff] }
 0x50c   :  { %10421 = vmatprep.subr.bf16.mxu1 %v11024_v60  ;;  %v10120_v62 = vpack.c.bf16 %v7627_v59, %v7626_v1  ;;  %v7649_v1 = vld [vmem:[%s13545_s5 + $0x388] sm:$0xff]  ;;  %v7888_v59 = vld [vmem:[%s13545_s5 + $0xa10] sm:$0xff] }
 0x50e   :  { %10093 = vmatpush3.bf16.msra.mxu0 %v10092_v55  ;;  %v10450_v55 = vpack.c.bf16 %v7867_v61, %v7866_v37  ;;  %v7889_v37 = vld [vmem:[%s13545_s5 + $0xa18] sm:$0xff] }
 0x50f   :  { %10423 = vmatpush3.bf16.msra.mxu1 %v10422_v5  ;;  %10094 = vmatprep.subr.bf16.mxu0 %v11024_v60  ;;  %v7628_v5 = vld [vmem:[%s13545_s5 + $0x300] sm:$0xff] }
 0x510   :  { %10424 = vmatprep.subr.bf16.mxu1 %v11024_v60  ;;  %v10123_v7 = vpack.c.bf16 %v7629_v58, %v7628_v5  ;;  %v7650_v5 = vld [vmem:[%s13545_s5 + $0x390] sm:$0xff]  ;;  %v7651_v58 = vld [vmem:[%s13545_s5 + $0x398] sm:$0xff] }
 0x512   :  { %10096 = vmatpush3.bf16.msra.mxu0 %v10095_v8  ;;  %v10453_v8 = vpack.c.bf16 %v7869_v63, %v7868_v6  ;;  %v6419_v6 = vrot.slane %v12003_v33, 6  ;;  %v7890_v63 = vld [vmem:[%s13545_s5 + $0xa20] sm:$0xff] }
 0x513   :  { %10426 = vmatpush3.bf16.msra.mxu1 %v10425_v9  ;;  %10097 = vmatprep.subr.bf16.mxu0 %v11024_v60  ;;  %v7632_v9 = vld [vmem:[%s13545_s5 + $0x310] sm:$0xff] }
 0x514   :  { %10427 = vmatprep.subr.bf16.mxu1 %v11024_v60  ;;  %v10127_v15 = vpack.c.bf16 %v7633_v10, %v7632_v9  ;;  %v7652_v9 = vld [vmem:[%s13545_s5 + $0x3a0] sm:$0xff]  ;;  %v7653_v10 = vld [vmem:[%s13545_s5 + $0x3a8] sm:$0xff] }
 0x516   :  { %10099 = vmatpush3.bf16.msra.mxu0 %v10098_v16  ;;  %v4947_v16 = vrot.slane %v11883_v46, 6 }
 0x517   :  { %10429 = vmatpush3.bf16.msra.mxu1 %v10428_v17  ;;  %10100 = vmatprep.subr.bf16.mxu0 %v11024_v60  ;;  %v10457_v17 = vpack.c.bf16 %v7873_v13, %v7872_v11  ;;  %v7892_v11 = vld [vmem:[%s13545_s5 + $0xa30] sm:$0xff]  ;;  %v7893_v13 = vld [vmem:[%s13545_s5 + $0xa38] sm:$0xff] }
 0x518   :  { %10430 = vmatprep.subr.bf16.mxu1 %v11024_v60 }
 0x51a   :  { %10103 = vmatpush3.bf16.msk.msra.mxu0 %vm11845_vm8, %v10101_v23  ;;  %v7875_v23 = vld [vmem:[%s13545_s5 + $0x9b8] sm:$0xff] }
 0x51b   :  { %10433 = vmatpush3.bf16.msk.msra.mxu1 %vm11845_vm8, %v10431_v24  ;;  %10104 = vmatprep.subr.bf16.mxu0 %v11024_v60  ;;  %v10130_v24 = vpack.c.bf16 %v7635_v19, %v7634_v18  ;;  %v10460_v25 = vpack.c.bf16 %v7875_v23, %v7874_v22  ;;  %v7655_v18 = vld [vmem:[%s13545_s5 + $0x3b8] sm:$0xff]  ;;  %v7894_v19 = vld [vmem:[%s13545_s5 + $0xa40] sm:$0xff] }
 0x51c   :  { %10434 = vmatprep.subr.bf16.mxu1 %v11024_v60 }
 0x51d   :  { %9128 = vmatmul.mubr.msk.f32.vlgmr.msra.gmra.mrb[8].mxu0 %vm3222_vm5, %v4855_v31  ;;  %v10133_v31 = vpack.c.bf16 %v7637_v27, %v7636_v26  ;;  %v7896_v26 = vld [vmem:[%s13545_s5 + $0xa50] sm:$0xff]  ;;  %v7897_v27 = vld [vmem:[%s13545_s5 + $0xa58] sm:$0xff] }
 0x51e   :  { %10106 = vmatpush3.bf16.msra.mxu0 %v10105_v30  ;;  %9593 = vmatmul.mubr.msk.f32.vlgmr.msra.gmra.mrb[8].mxu1 %vm3222_vm5, %v6235_v39  ;;  %v7877_v30 = vld [vmem:[%s13545_s5 + $0x9c8] sm:$0xff]  ;;  %v7878_v39 = vld [vmem:[%s13545_s5 + $0x9d0] sm:$0xff] }
 0x51f   :  { %10436 = vmatpush3.bf16.msra.mxu1 %v10435_v32  ;;  %10107 = vmatprep.subr.bf16.mxu0 %v11024_v60  ;;  %v10463_v32 = vpack.c.bf16 %v7877_v30, %v7876_v28  ;;  %v10491_v30 = vpack.c.bf16 %v7897_v27, %v7896_v26 }
 0x520   :  { %10437 = vmatprep.subr.bf16.mxu1 %v11024_v60  ;;  %9158 = vmatprep.mubr.msk.f32.mxu0 %vm11026_vm10, %v11027_v14 }
 0x521   :  { %9623 = vmatprep.mubr.msk.f32.mxu1 %vm11026_vm10, %v11027_v14 }
 0x522   :  { %10109 = vmatpush3.bf16.msra.mxu0 %v10108_v43  ;;  %v10466_v43 = vpack.c.bf16 %v7879_v40, %v7878_v39  ;;  %v10494_v40 = vpack.c.bf16 %v7899_v38, %v7898_v34  ;;  %v5223_v38 = vrot.slane %v11875_v42, 1 }
 0x523   :  { %10439 = vmatpush3.bf16.msra.mxu1 %v10438_v44  ;;  %10110 = vmatprep.subr.bf16.mxu0 %v11024_v60  ;;  %v7640_v44 = vld [vmem:[%s13545_s5 + $0x350] sm:$0xff] }
 0x524   :  { %10440 = vmatprep.subr.bf16.mxu1 %v11024_v60  ;;  %v10139_v20 = vpack.c.bf16 %v7641_v45, %v7640_v44  ;;  %v7900_v44 = vld [vmem:[%s13545_s5 + $0xa70] sm:$0xff]  ;;  %v7901_v45 = vld [vmem:[%s13545_s5 + $0xa78] sm:$0xf] }
 0x526   :  { %10112 = vmatpush3.bf16.msra.mxu0 %v10111_v49  ;;  %v10469_v49 = vpack.c.bf16 %v7881_v48, %v7880_v47  ;;  %v10497_v48 = vpack.c.bf16 %v7901_v45, %v7900_v44  ;;  %v7923_v44 = vld [vmem:[%s13545_s5 + $0xb08] sm:$0xff] }
 0x527   :  { %10442 = vmatpush3.bf16.msra.mxu1 %v10441_v3  ;;  %10113 = vmatprep.subr.bf16.mxu0 %v11024_v60  ;;  %v7642_v3 = vld [vmem:[%s13545_s5 + $0x360] sm:$0xff] }
 0x528   :  { %10443 = vmatprep.subr.bf16.mxu1 %v11024_v60  ;;  %v10142_v50 = vpack.c.bf16 %v7643_v51, %v7642_v3  ;;  %v7904_v3 = vld [vmem:[%s13545_s5 + $0xa80] sm:$0xff]  ;;  %v7905_v51 = vld [vmem:[%s13545_s5 + $0xa88] sm:$0xff] }
 0x52a   :  { %10115 = vmatpush3.bf16.msra.mxu0 %v10114_v2  ;;  %v10472_v2 = vpack.c.bf16 %v7883_v53, %v7882_v52  ;;  %v10501_v53 = vpack.c.bf16 %v7905_v51, %v7904_v3  ;;  %v7924_v3 = vld [vmem:[%s13545_s5 + $0xb10] sm:$0xff]  ;;  %v7925_v51 = vld [vmem:[%s13545_s5 + $0xb18] sm:$0xff] }
 0x52b   :  { %10445 = vmatpush3.bf16.msra.mxu1 %v10444_v54  ;;  %10116 = vmatprep.subr.bf16.mxu0 %v11024_v60  ;;  %v7644_v54 = vld [vmem:[%s13545_s5 + $0x370] sm:$0xff] }
 0x52c   :  { %10446 = vmatprep.subr.bf16.mxu1 %v11024_v60  ;;  %v10145_v0 = vpack.c.bf16 %v7645_v4, %v7644_v54  ;;  %v6511_v54 = vrot.slane %v12003_v33, 7  ;;  %v7906_v4 = vld [vmem:[%s13545_s5 + $0xa90] sm:$0xff] }
 0x52e   :  { %10118 = vmatpush3.bf16.msra.mxu0 %v10117_v57  ;;  %v10475_v57 = vpack.c.bf16 %v7885_v29, %v7884_v56  ;;  %v7907_v56 = vld [vmem:[%s13545_s5 + $0xa98] sm:$0xff] }
 0x52f   :  { %10448 = vmatpush3.bf16.msra.mxu1 %v10447_v36  ;;  %10119 = vmatprep.subr.bf16.mxu0 %v11024_v60  ;;  %v7648_v36 = vld [vmem:[%s13545_s5 + $0x380] sm:$0xff]  ;;  %v10504_v33 = vpack.c.bf16 %v7907_v56, %v7906_v4  ;;  %v7927_v4 = vld [vmem:[%s13545_s5 + $0xb28] sm:$0xff] }
 0x530   :  { %10449 = vmatprep.subr.bf16.mxu1 %v11024_v60  ;;  %v10149_v61 = vpack.c.bf16 %v7649_v1, %v7648_v36  ;;  %v7908_v36 = vld [vmem:[%s13545_s5 + $0xaa0] sm:$0xff]  ;;  %v7909_v1 = vld [vmem:[%s13545_s5 + $0xaa8] sm:$0xff] }
 0x532   :  { %10121 = vmatpush3.bf16.msra.mxu0 %v10120_v62  ;;  %v5039_v62 = vrot.slane %v11883_v46, 7  ;;  %v7891_v46 = vld [vmem:[%s13545_s5 + $0xa28] sm:$0xff] }
 0x533   :  { %10451 = vmatpush3.bf16.msra.mxu1 %v10450_v55  ;;  %10122 = vmatprep.subr.bf16.mxu0 %v11024_v60  ;;  %v10479_v55 = vpack.c.bf16 %v7889_v37, %v7888_v59  ;;  %v10507_v37 = vpack.c.bf16 %v7909_v1, %v7908_v36  ;;  %v7929_v36 = vld [vmem:[%s13545_s5 + $0xb38] sm:$0xff] }
 0x534   :  { %10452 = vmatprep.subr.bf16.mxu1 %v11024_v60 }
 0x536   :  { %10125 = vmatpush3.bf16.msk.msra.mxu0 %vm11845_vm8, %v10123_v7  ;;  %v10152_v7 = vpack.c.bf16 %v7651_v58, %v7650_v5  ;;  %v7911_v5 = vld [vmem:[%s13545_s5 + $0xab8] sm:$0xff] }
 0x537   :  { %10455 = vmatpush3.bf16.msk.msra.mxu1 %vm11845_vm8, %v10453_v8  ;;  %10126 = vmatprep.subr.bf16.mxu0 %v11024_v60  ;;  %v10482_v8 = vpack.c.bf16 %v7891_v46, %v7890_v63  ;;  %v7672_v63 = vld [vmem:[%s13545_s5 + $0x430] sm:$0xff]  ;;  %v7673_v46 = vld [vmem:[%s13545_s5 + $0x438] sm:$0xff] }
 0x538   :  { %10456 = vmatprep.subr.bf16.mxu1 %v11024_v60 }
 0x539   :  { %9159 = vmatmul.mubr.msk.f32.vlgmr.msra.gmra.mrb[8].mxu0 %vm3222_vm5, %v4947_v16  ;;  %v10485_v16 = vpack.c.bf16 %v7893_v13, %v7892_v11  ;;  %v7674_v11 = vld [vmem:[%s13545_s5 + $0x440] sm:$0xff]  ;;  %v7675_v13 = vld [vmem:[%s13545_s5 + $0x448] sm:$0xff] }
 0x53a   :  { %10128 = vmatpush3.bf16.msra.mxu0 %v10127_v15  ;;  %9624 = vmatmul.mubr.msk.f32.vlgmr.msra.gmra.mrb[8].mxu1 %vm3222_vm5, %v6327_v21  ;;  %v10155_v15 = vpack.c.bf16 %v7653_v10, %v7652_v9  ;;  %v7895_v21 = vld [vmem:[%s13545_s5 + $0xa48] sm:$0xff]  ;;  %v10183_v9 = vpack.c.bf16 %v7673_v46, %v7672_v63  ;;  %v7932_v46 = vld [vmem:[%s13545_s5 + $0xb50] sm:$0xff] }
 0x53b   :  { %10458 = vmatpush3.bf16.msra.mxu1 %v10457_v17  ;;  %10129 = vmatprep.subr.bf16.mxu0 %v11024_v60  ;;  %v7654_v17 = vld [vmem:[%s13545_s5 + $0x3b0] sm:$0xff]  ;;  %v10488_v23 = vpack.c.bf16 %v7895_v21, %v7894_v19  ;;  %v7677_v21 = vld [vmem:[%s13545_s5 + $0x458] sm:$0xf]  ;;  %v7693_v63 = vld [vmem:[%s13545_s5 + $0x4c8] sm:$0xf] }
 0x53c   :  { %10459 = vmatprep.subr.bf16.mxu1 %v11024_v60  ;;  %9189 = vmatprep.mubr.msk.f32.mxu0 %vm11026_vm10, %v11027_v14  ;;  %v10158_v22 = vpack.c.bf16 %v7655_v18, %v7654_v17  ;;  %v10186_v17 = vpack.c.bf16 %v7675_v13, %v7674_v11  ;;  %v7676_v19 = vld [vmem:[%s13545_s5 + $0x450] sm:$0xff]  ;;  %v7697_v11 = vld [vmem:[%s13545_s5 + $0x4d8] sm:$0xff]  ;;  %v7936_v13 = vld [vmem:[%s13545_s5 + $0xb60] sm:$0xff] }
 0x53d   :  { %9654 = vmatprep.mubr.msk.f32.mxu1 %vm11026_vm10, %v11027_v14  ;;  %v10189_v26 = vpack.c.bf16 %v7677_v21, %v7676_v19  ;;  %v7698_v19 = vld [vmem:[%s13545_s5 + $0x4e0] sm:$0xff]  ;;  %v7699_v21 = vld [vmem:[%s13545_s5 + $0x4e8] sm:$0xff] }
 0x53e   :  { %10131 = vmatpush3.bf16.msra.mxu0 %v10130_v24  ;;  %v7656_v24 = vld [vmem:[%s13545_s5 + $0x3c0] sm:$0xff] }
 0x53f   :  { %10461 = vmatpush3.bf16.msra.mxu1 %v10460_v25  ;;  %10132 = vmatprep.subr.bf16.mxu0 %v11024_v60  ;;  %v7657_v25 = vld [vmem:[%s13545_s5 + $0x3c8] sm:$0xff] }
 0x540   :  { %10462 = vmatprep.subr.bf16.mxu1 %v11024_v60  ;;  %v10161_v28 = vpack.c.bf16 %v7657_v25, %v7656_v24  ;;  %v7917_v24 = vld [vmem:[%s13545_s5 + $0xae8] sm:$0xf] }
 0x542   :  { %10134 = vmatpush3.bf16.msra.mxu0 %v10133_v31  ;;  %v7658_v31 = vld [vmem:[%s13545_s5 + $0x3d0] sm:$0xff] }
 0x543   :  { %10464 = vmatpush3.bf16.msra.mxu1 %v10463_v32  ;;  %10135 = vmatprep.subr.bf16.mxu0 %v11024_v60  ;;  %v7659_v32 = vld [vmem:[%s13545_s5 + $0x3d8] sm:$0xff] }
 0x544   :  { %10465 = vmatprep.subr.bf16.mxu1 %v11024_v60  ;;  %v10164_v39 = vpack.c.bf16 %v7659_v32, %v7658_v31  ;;  %v7921_v31 = vld [vmem:[%s13545_s5 + $0xaf8] sm:$0xff] }
 0x546   :  { %10137 = vmatpush3.bf16.msra.mxu0 %v10136_v41  ;;  %v7660_v41 = vld [vmem:[%s13545_s5 + $0x3e0] sm:$0xff] }
 0x547   :  { %10467 = vmatpush3.bf16.msra.mxu1 %v10466_v43  ;;  %10138 = vmatprep.subr.bf16.mxu0 %v11024_v60  ;;  %v7661_v43 = vld [vmem:[%s13545_s5 + $0x3e8] sm:$0xf] }
 0x548   :  { %10468 = vmatprep.subr.bf16.mxu1 %v11024_v60  ;;  %v10167_v47 = vpack.c.bf16 %v7661_v43, %v7660_v41  ;;  %v7683_v41 = vld [vmem:[%s13545_s5 + $0x478] sm:$0xff]  ;;  %v7922_v43 = vld [vmem:[%s13545_s5 + $0xb00] sm:$0xff] }
 0x54a   :  { %10140 = vmatpush3.bf16.msra.mxu0 %v10139_v20  ;;  %v7664_v20 = vld [vmem:[%s13545_s5 + $0x3f0] sm:$0xff] }
 0x54b   :  { %10470 = vmatpush3.bf16.msra.mxu1 %v10469_v49  ;;  %10141 = vmatprep.subr.bf16.mxu0 %v11024_v60  ;;  %v7665_v49 = vld [vmem:[%s13545_s5 + $0x3f8] sm:$0xff] }
 0x54c   :  { %10471 = vmatprep.subr.bf16.mxu1 %v11024_v60  ;;  %v10171_v52 = vpack.c.bf16 %v7665_v49, %v7664_v20  ;;  %v7684_v20 = vld [vmem:[%s13545_s5 + $0x480] sm:$0xff]  ;;  %v7685_v49 = vld [vmem:[%s13545_s5 + $0x488] sm:$0xff] }
 0x54e   :  { %10143 = vmatpush3.bf16.msra.mxu0 %v10142_v50  ;;  %v7666_v50 = vld [vmem:[%s13545_s5 + $0x400] sm:$0xff] }
 0x54f   :  { %10473 = vmatpush3.bf16.msra.mxu1 %v10472_v2  ;;  %10144 = vmatprep.subr.bf16.mxu0 %v11024_v60  ;;  %v7667_v2 = vld [vmem:[%s13545_s5 + $0x408] sm:$0xff] }
 0x550   :  { %10474 = vmatprep.subr.bf16.mxu1 %v11024_v60  ;;  %v10174_v29 = vpack.c.bf16 %v7667_v2, %v7666_v50  ;;  %v7686_v50 = vld [vmem:[%s13545_s5 + $0x490] sm:$0xff]  ;;  %v7687_v2 = vld [vmem:[%s13545_s5 + $0x498] sm:$0xff] }
 0x551   :  { %v10202_v56 = vpack.c.bf16 %v7687_v2, %v7686_v50  ;;  %v7947_v50 = vld [vmem:[%s13545_s5 + $0xbb8] sm:$0xff] }
 0x552   :  { %10147 = vmatpush3.bf16.msk.msra.mxu0 %vm11845_vm8, %v10145_v0  ;;  %v7668_v0 = vld [vmem:[%s13545_s5 + $0x410] sm:$0xff] }
 0x553   :  { %10477 = vmatpush3.bf16.msk.msra.mxu1 %vm11845_vm8, %v10475_v57  ;;  %10148 = vmatprep.subr.bf16.mxu0 %v11024_v60  ;;  %v7669_v57 = vld [vmem:[%s13545_s5 + $0x418] sm:$0xff] }
 0x554   :  { %10478 = vmatprep.subr.bf16.mxu1 %v11024_v60  ;;  %v10177_v59 = vpack.c.bf16 %v7669_v57, %v7668_v0  ;;  %v7689_v0 = vld [vmem:[%s13545_s5 + $0x4a8] sm:$0xff]  ;;  %v7928_v57 = vld [vmem:[%s13545_s5 + $0xb30] sm:$0xff] }
 0x555   :  { %9190 = vmatmul.mubr.msk.f32.vlgmr.msra.gmra.mrb[8].mxu0 %vm3222_vm5, %v5039_v62  ;;  %v7671_v62 = vld [vmem:[%s13545_s5 + $0x428] sm:$0xff] }
 0x556   :  { %10150 = vmatpush3.bf16.msra.mxu0 %v10149_v61  ;;  %9655 = vmatmul.mubr.msk.f32.vlgmr.msra.gmra.mrb[8].mxu1 %vm3222_vm5, %v6419_v6  ;;  %v7670_v61 = vld [vmem:[%s13545_s5 + $0x420] sm:$0xff] }
 0x557   :  { %10480 = vmatpush3.bf16.msra.mxu1 %v10479_v55  ;;  %10151 = vmatprep.subr.bf16.mxu0 %v11024_v60  ;;  %v7910_v55 = vld [vmem:[%s13545_s5 + $0xab0] sm:$0xff]  ;;  %v10180_v58 = vpack.c.bf16 %v7671_v62, %v7670_v61  ;;  %v7691_v61 = vld [vmem:[%s13545_s5 + $0x4b8] sm:$0xff]  ;;  %v7930_v62 = vld [vmem:[%s13545_s5 + $0xb40] sm:$0xff] }
 0x558   :  { %10481 = vmatprep.subr.bf16.mxu1 %v11024_v60  ;;  %9220 = vmatprep.mubr.msk.f32.mxu0 %vm11026_vm10, %v11027_v14  ;;  %v10510_v6 = vpack.c.bf16 %v7911_v5, %v7910_v55  ;;  %v7931_v55 = vld [vmem:[%s13545_s5 + $0xb48] sm:$0xff] }
 0x559   :  { %9685 = vmatprep.mubr.msk.f32.mxu1 %vm11026_vm10, %v11027_v14 }
 0x55a   :  { %10153 = vmatpush3.bf16.msra.mxu0 %v10152_v7  ;;  %v7912_v7 = vld [vmem:[%s13545_s5 + $0xac0] sm:$0xff] }
 0x55b   :  { %10483 = vmatpush3.bf16.msra.mxu1 %v10482_v8  ;;  %10154 = vmatprep.subr.bf16.mxu0 %v11024_v60  ;;  %v7913_v8 = vld [vmem:[%s13545_s5 + $0xac8] sm:$0xff] }
 0x55c   :  { %10484 = vmatprep.subr.bf16.mxu1 %v11024_v60  ;;  %v10513_v10 = vpack.c.bf16 %v7913_v8, %v7912_v7  ;;  %v7933_v7 = vld [vmem:[%s13545_s5 + $0xb58] sm:$0xf] }
 0x55e   :  { %10156 = vmatpush3.bf16.msra.mxu0 %v10155_v15  ;;  %v7914_v15 = vld [vmem:[%s13545_s5 + $0xad0] sm:$0xff] }
 0x55f   :  { %10486 = vmatpush3.bf16.msra.mxu1 %v10485_v16  ;;  %10157 = vmatprep.subr.bf16.mxu0 %v11024_v60  ;;  %v7915_v16 = vld [vmem:[%s13545_s5 + $0xad8] sm:$0xff] }
 0x560   :  { %10487 = vmatprep.subr.bf16.mxu1 %v11024_v60  ;;  %v10516_v18 = vpack.c.bf16 %v7915_v16, %v7914_v15  ;;  %v7937_v15 = vld [vmem:[%s13545_s5 + $0xb68] sm:$0xff] }
 0x562   :  { %10159 = vmatpush3.bf16.msra.mxu0 %v10158_v22  ;;  %v4362_v22 = vpop.permute.xlu1 %4361 }
 0x563   :  { %10489 = vmatpush3.bf16.msra.mxu1 %v10488_v23  ;;  %10160 = vmatprep.subr.bf16.mxu0 %v11024_v60  ;;  %v7916_v23 = vld [vmem:[%s13545_s5 + $0xae0] sm:$0xff]  ;;  %v4367_v25 = vadd.f32 %v11871_v35, %v4362_v22  ;;  %v7920_v35 = vld [vmem:[%s13545_s5 + $0xaf0] sm:$0xff] }
 0x564   :  { %10490 = vmatprep.subr.bf16.mxu1 %v11024_v60  ;;  %v10519_v27 = vpack.c.bf16 %v7917_v24, %v7916_v23  ;;  %v7938_v23 = vld [vmem:[%s13545_s5 + $0xb70] sm:$0xff]  ;;  %v7939_v24 = vld [vmem:[%s13545_s5 + $0xb78] sm:$0xff] }
 0x565   :  { %v4375_v32 = vmul.f32 0.01, %v4367_v25  ;;  %vm4371_vm13 = vcmp.gt.f32.partialorder %v4367_v25, 0.0 }
 0x566   :  { %10162 = vmatpush3.bf16.msra.mxu0 %v10161_v28  ;;  %v7680_v28 = vld [vmem:[%s13545_s5 + $0x460] sm:$0xff] }
 0x567   :  { %10492 = vmatpush3.bf16.msra.mxu1 %v10491_v30  ;;  %10163 = vmatprep.subr.bf16.mxu0 %v11024_v60  ;;  %v7681_v30 = vld [vmem:[%s13545_s5 + $0x468] sm:$0xff]  ;;  %v12886_v45 = vsel %vm4371_vm13, %v4367_v25, %v4375_v32  ;;  %v10218_v25 = vpack.c.bf16 %v7699_v21, %v7698_v19  ;;  %v7958_v19 = vld [vmem:[%s13545_s5 + $0xc00] sm:$0xff] }
 0x568   :  { %10493 = vmatprep.subr.bf16.mxu1 %v11024_v60  ;;  %v10193_v34 = vpack.c.bf16 %v7681_v30, %v7680_v28  ;;  %v6695_v22 = vrot.slane %v12886_v45, 1  ;;  %v7701_v28 = vld [vmem:[%s13545_s5 + $0x4f8] sm:$0xff]  ;;  %v7940_v30 = vld [vmem:[%s13545_s5 + $0xb80] sm:$0xff]  ;;  %v7959_v21 = vld [vmem:[%s13545_s5 + $0xc08] sm:$0xff] }
 0x56a   :  { %10165 = vmatpush3.bf16.msra.mxu0 %v10164_v39  ;;  %v10523_v39 = vpack.c.bf16 %v7921_v31, %v7920_v35  ;;  %v7941_v35 = vld [vmem:[%s13545_s5 + $0xb88] sm:$0xff] }
 0x56b   :  { %10495 = vmatpush3.bf16.msra.mxu1 %v10494_v40  ;;  %10166 = vmatprep.subr.bf16.mxu0 %v11024_v60  ;;  %v7682_v40 = vld [vmem:[%s13545_s5 + $0x470] sm:$0xff]  ;;  %v10551_v32 = vpack.c.bf16 %v7941_v35, %v7940_v30 }
 0x56c   :  { %10496 = vmatprep.subr.bf16.mxu1 %v11024_v60  ;;  %v7722_v35 = vld [vmem:[%s13545_s5 + $0x590] sm:$0xff] }
 0x56e   :  { %10169 = vmatpush3.bf16.msk.msra.mxu0 %vm11845_vm8, %v10167_v47  ;;  %v10196_v47 = vpack.c.bf16 %v7683_v41, %v7682_v40  ;;  %v7943_v40 = vld [vmem:[%s13545_s5 + $0xb98] sm:$0xff] }
 0x56f   :  { %10499 = vmatpush3.bf16.msk.msra.mxu1 %vm11845_vm8, %v10497_v48  ;;  %10170 = vmatprep.subr.bf16.mxu0 %v11024_v60  ;;  %v10526_v48 = vpack.c.bf16 %v7923_v44, %v7922_v43  ;;  %v7704_v44 = vld [vmem:[%s13545_s5 + $0x510] sm:$0xff] }
 0x570   :  { %10500 = vmatprep.subr.bf16.mxu1 %v11024_v60 }
 0x571   :  { %9221 = vmatmul.mubr.msk.f32.vlgmr.msra.gmra.mrb[8].mxu0 %vm3222_vm5, %v11875_v42 }
 0x572   :  { %10172 = vmatpush3.bf16.msra.mxu0 %v10171_v52  ;;  %9686 = vmatmul.mubr.msk.f32.vlgmr.msra.gmra.mrb[8].mxu1 %vm3222_vm5, %v6511_v54  ;;  %v10199_v52 = vpack.c.bf16 %v7685_v49, %v7684_v20  ;;  %v7926_v54 = vld [vmem:[%s13545_s5 + $0xb20] sm:$0xff]  ;;  %v7945_v20 = vld [vmem:[%s13545_s5 + $0xba8] sm:$0xff] }
 0x573   :  { %10502 = vmatpush3.bf16.msra.mxu1 %v10501_v53  ;;  %10173 = vmatprep.subr.bf16.mxu0 %v11024_v60  ;;  %v10529_v53 = vpack.c.bf16 %v7925_v51, %v7924_v3  ;;  %v7706_v51 = vld [vmem:[%s13545_s5 + $0x520] sm:$0xff] }
 0x574   :  { %10503 = vmatprep.subr.bf16.mxu1 %v11024_v60  ;;  %9251 = vmatprep.mubr.msk.f32.mxu0 %vm11026_vm10, %v11027_v14 }
 0x575   :  { %9716 = vmatprep.mubr.msk.f32.mxu1 %vm11026_vm10, %v11027_v14 }
 0x576   :  { %10175 = vmatpush3.bf16.msra.mxu0 %v10174_v29  ;;  %v10532_v29 = vpack.c.bf16 %v7927_v4, %v7926_v54  ;;  %v7708_v4 = vld [vmem:[%s13545_s5 + $0x530] sm:$0xff] }
 0x577   :  { %10505 = vmatpush3.bf16.msra.mxu1 %v10504_v33  ;;  %10176 = vmatprep.subr.bf16.mxu0 %v11024_v60  ;;  %v7688_v33 = vld [vmem:[%s13545_s5 + $0x4a0] sm:$0xff] }
 0x578   :  { %10506 = vmatprep.subr.bf16.mxu1 %v11024_v60  ;;  %v10205_v1 = vpack.c.bf16 %v7689_v0, %v7688_v33  ;;  %v7949_v33 = vld [vmem:[%s13545_s5 + $0xbc8] sm:$0xf] }
 0x57a   :  { %10178 = vmatpush3.bf16.msra.mxu0 %v10177_v59  ;;  %v10535_v59 = vpack.c.bf16 %v7929_v36, %v7928_v57  ;;  %v7712_v36 = vld [vmem:[%s13545_s5 + $0x540] sm:$0xff] }
 0x57b   :  { %10508 = vmatpush3.bf16.msra.mxu1 %v10507_v37  ;;  %10179 = vmatprep.subr.bf16.mxu0 %v11024_v60  ;;  %v7690_v37 = vld [vmem:[%s13545_s5 + $0x4b0] sm:$0xff] }
 0x57c   :  { %10509 = vmatprep.subr.bf16.mxu1 %v11024_v60  ;;  %v10208_v5 = vpack.c.bf16 %v7691_v61, %v7690_v37  ;;  %v7953_v37 = vld [vmem:[%s13545_s5 + $0xbd8] sm:$0xff] }
 0x57e   :  { %10181 = vmatpush3.bf16.msra.mxu0 %v10180_v58  ;;  %v10538_v58 = vpack.c.bf16 %v7931_v55, %v7930_v62  ;;  %v5407_v62 = vrot.slane %v11875_v42, 3 }
 0x57f   :  { %10511 = vmatpush3.bf16.msra.mxu1 %v10510_v6  ;;  %10182 = vmatprep.subr.bf16.mxu0 %v11024_v60  ;;  %v7692_v6 = vld [vmem:[%s13545_s5 + $0x4c0] sm:$0xff] }
 0x580   :  { %10512 = vmatprep.subr.bf16.mxu1 %v11024_v60  ;;  %v10211_v8 = vpack.c.bf16 %v7693_v63, %v7692_v6  ;;  %v6787_v6 = vrot.slane %v12886_v45, 2  ;;  %v7954_v63 = vld [vmem:[%s13545_s5 + $0xbe0] sm:$0xff] }
 0x582   :  { %10184 = vmatpush3.bf16.msra.mxu0 %v10183_v9  ;;  %v10541_v9 = vpack.c.bf16 %v7933_v7, %v7932_v46  ;;  %v7955_v46 = vld [vmem:[%s13545_s5 + $0xbe8] sm:$0xff] }
 0x583   :  { %10514 = vmatpush3.bf16.msra.mxu1 %v10513_v10  ;;  %10185 = vmatprep.subr.bf16.mxu0 %v11024_v60  ;;  %v7696_v10 = vld [vmem:[%s13545_s5 + $0x4d0] sm:$0xff] }
 0x584   :  { %10515 = vmatprep.subr.bf16.mxu1 %v11024_v60  ;;  %v10215_v16 = vpack.c.bf16 %v7697_v11, %v7696_v10  ;;  %v7717_v10 = vld [vmem:[%s13545_s5 + $0x568] sm:$0xff]  ;;  %v7956_v11 = vld [vmem:[%s13545_s5 + $0xbf0] sm:$0xff] }
 0x586   :  { %10187 = vmatpush3.bf16.msra.mxu0 %v10186_v17  ;;  %v5315_v17 = vrot.slane %v11875_v42, 2 }
 0x587   :  { %10517 = vmatpush3.bf16.msra.mxu1 %v10516_v18  ;;  %10188 = vmatprep.subr.bf16.mxu0 %v11024_v60  ;;  %v10545_v18 = vpack.c.bf16 %v7937_v15, %v7936_v13  ;;  %v7957_v13 = vld [vmem:[%s13545_s5 + $0xbf8] sm:$0xff] }
 0x588   :  { %10518 = vmatprep.subr.bf16.mxu1 %v11024_v60 }
 0x58a   :  { %10191 = vmatpush3.bf16.msk.msra.mxu0 %vm11845_vm8, %v10189_v26  ;;  %v10548_v26 = vpack.c.bf16 %v7939_v24, %v7938_v23  ;;  %v10576_v23 = vpack.c.bf16 %v7959_v21, %v7958_v19  ;;  %v7720_v24 = vld [vmem:[%s13545_s5 + $0x580] sm:$0xff]  ;;  %v7740_v21 = vld [vmem:[%s13545_s5 + $0x610] sm:$0xff] }
 0x58b   :  { %10521 = vmatpush3.bf16.msk.msra.mxu1 %vm11845_vm8, %v10519_v27  ;;  %10192 = vmatprep.subr.bf16.mxu0 %v11024_v60  ;;  %v7700_v27 = vld [vmem:[%s13545_s5 + $0x4f0] sm:$0xff] }
 0x58c   :  { %10522 = vmatprep.subr.bf16.mxu1 %v11024_v60  ;;  %v10221_v31 = vpack.c.bf16 %v7701_v28, %v7700_v27  ;;  %v7961_v27 = vld [vmem:[%s13545_s5 + $0xc18] sm:$0xff] }
 0x58d   :  { %9252 = vmatmul.mubr.msk.f32.vlgmr.msra.gmra.mrb[8].mxu0 %vm3222_vm5, %v5223_v38  ;;  %v7703_v38 = vld [vmem:[%s13545_s5 + $0x508] sm:$0xff] }
 0x58e   :  { %10194 = vmatpush3.bf16.msra.mxu0 %v10193_v34  ;;  %9717 = vmatmul.mubr.msk.f32.vlgmr.msra.gmra.mrb[8].mxu1 %vm3222_vm5, %v12886_v45  ;;  %v7702_v34 = vld [vmem:[%s13545_s5 + $0x500] sm:$0xff] }
 0x58f   :  { %10524 = vmatpush3.bf16.msra.mxu1 %v10523_v39  ;;  %10195 = vmatprep.subr.bf16.mxu0 %v11024_v60  ;;  %v7942_v39 = vld [vmem:[%s13545_s5 + $0xb90] sm:$0xff]  ;;  %v10224_v41 = vpack.c.bf16 %v7703_v38, %v7702_v34  ;;  %v7963_v34 = vld [vmem:[%s13545_s5 + $0xc28] sm:$0xff] }
 0x590   :  { %10525 = vmatprep.subr.bf16.mxu1 %v11024_v60  ;;  %9282 = vmatprep.mubr.msk.f32.mxu0 %vm11026_vm10, %v11027_v14  ;;  %v10554_v43 = vpack.c.bf16 %v7943_v40, %v7942_v39  ;;  %v7724_v40 = vld [vmem:[%s13545_s5 + $0x5a0] sm:$0xff] }
 0x591   :  { %9747 = vmatprep.mubr.msk.f32.mxu1 %vm11026_vm10, %v11027_v14 }
 0x592   :  { %10197 = vmatpush3.bf16.msra.mxu0 %v10196_v47  ;;  %v7705_v47 = vld [vmem:[%s13545_s5 + $0x518] sm:$0xff] }
 0x593   :  { %10527 = vmatpush3.bf16.msra.mxu1 %v10526_v48  ;;  %10198 = vmatprep.subr.bf16.mxu0 %v11024_v60  ;;  %v7944_v48 = vld [vmem:[%s13545_s5 + $0xba0] sm:$0xff]  ;;  %v10227_v49 = vpack.c.bf16 %v7705_v47, %v7704_v44  ;;  %v7965_v44 = vld [vmem:[%s13545_s5 + $0xc38] sm:$0xf] }
 0x594   :  { %10528 = vmatprep.subr.bf16.mxu1 %v11024_v60  ;;  %v10557_v3 = vpack.c.bf16 %v7945_v20, %v7944_v48  ;;  %v7728_v20 = vld [vmem:[%s13545_s5 + $0x5b0] sm:$0xff] }
 0x596   :  { %10200 = vmatpush3.bf16.msra.mxu0 %v10199_v52  ;;  %v7707_v52 = vld [vmem:[%s13545_s5 + $0x528] sm:$0xff] }
 0x597   :  { %10530 = vmatpush3.bf16.msra.mxu1 %v10529_v53  ;;  %10201 = vmatprep.subr.bf16.mxu0 %v11024_v60  ;;  %v7946_v53 = vld [vmem:[%s13545_s5 + $0xbb0] sm:$0xff]  ;;  %v10230_v2 = vpack.c.bf16 %v7707_v52, %v7706_v51  ;;  %v7969_v51 = vld [vmem:[%s13545_s5 + $0xc48] sm:$0xff] }
 0x598   :  { %10531 = vmatprep.subr.bf16.mxu1 %v11024_v60  ;;  %v10560_v54 = vpack.c.bf16 %v7947_v50, %v7946_v53  ;;  %v5499_v53 = vrot.slane %v11875_v42, 4 }
 0x59a   :  { %10203 = vmatpush3.bf16.msra.mxu0 %v10202_v56  ;;  %v7709_v56 = vld [vmem:[%s13545_s5 + $0x538] sm:$0xf] }
 0x59b   :  { %10533 = vmatpush3.bf16.msra.mxu1 %v10532_v29  ;;  %10204 = vmatprep.subr.bf16.mxu0 %v11024_v60  ;;  %v7948_v29 = vld [vmem:[%s13545_s5 + $0xbc0] sm:$0xff]  ;;  %v10233_v0 = vpack.c.bf16 %v7709_v56, %v7708_v4  ;;  %v6879_v4 = vrot.slane %v12886_v45, 3  ;;  %v7970_v56 = vld [vmem:[%s13545_s5 + $0xc50] sm:$0xff] }
 0x59c   :  { %10534 = vmatprep.subr.bf16.mxu1 %v11024_v60  ;;  %v10563_v57 = vpack.c.bf16 %v7949_v33, %v7948_v29  ;;  %v7971_v29 = vld [vmem:[%s13545_s5 + $0xc58] sm:$0xff] }
 0x59e   :  { %10206 = vmatpush3.bf16.msra.mxu0 %v10205_v1  ;;  %v7713_v1 = vld [vmem:[%s13545_s5 + $0x548] sm:$0xff] }
 0x59f   :  { %10536 = vmatpush3.bf16.msra.mxu1 %v10535_v59  ;;  %10207 = vmatprep.subr.bf16.mxu0 %v11024_v60  ;;  %v7952_v59 = vld [vmem:[%s13545_s5 + $0xbd0] sm:$0xff]  ;;  %v10237_v61 = vpack.c.bf16 %v7713_v1, %v7712_v36  ;;  %v7733_v36 = vld [vmem:[%s13545_s5 + $0x5d8] sm:$0xff]  ;;  %v7972_v1 = vld [vmem:[%s13545_s5 + $0xc60] sm:$0xff] }
 0x5a0   :  { %10537 = vmatprep.subr.bf16.mxu1 %v11024_v60  ;;  %v10567_v55 = vpack.c.bf16 %v7953_v37, %v7952_v59  ;;  %v7973_v59 = vld [vmem:[%s13545_s5 + $0xc68] sm:$0xff] }
 0x5a2   :  { %10209 = vmatpush3.bf16.msra.mxu0 %v10208_v5  ;;  %v7714_v5 = vld [vmem:[%s13545_s5 + $0x550] sm:$0xff] }
 0x5a3   :  { %10539 = vmatpush3.bf16.msra.mxu1 %v10538_v58  ;;  %10210 = vmatprep.subr.bf16.mxu0 %v11024_v60  ;;  %v7715_v58 = vld [vmem:[%s13545_s5 + $0x558] sm:$0xff] }
 0x5a4   :  { %10540 = vmatprep.subr.bf16.mxu1 %v11024_v60  ;;  %v10240_v7 = vpack.c.bf16 %v7715_v58, %v7714_v5  ;;  %v7974_v5 = vld [vmem:[%s13545_s5 + $0xc70] sm:$0xff]  ;;  %v7975_v58 = vld [vmem:[%s13545_s5 + $0xc78] sm:$0xff] }
 0x5a6   :  { %10213 = vmatpush3.bf16.msk.msra.mxu0 %vm11845_vm8, %v10211_v8  ;;  %v10570_v8 = vpack.c.bf16 %v7955_v46, %v7954_v63  ;;  %v10598_v63 = vpack.c.bf16 %v7975_v58, %v7974_v5  ;;  %v7736_v46 = vld [vmem:[%s13545_s5 + $0x5f0] sm:$0xff]  ;;  %v7756_v58 = vld [vmem:[%s13545_s5 + $0x680] sm:$0xff] }
 0x5a7   :  { %10543 = vmatpush3.bf16.msk.msra.mxu1 %vm11845_vm8, %v10541_v9  ;;  %10214 = vmatprep.subr.bf16.mxu0 %v11024_v60  ;;  %v7716_v9 = vld [vmem:[%s13545_s5 + $0x560] sm:$0xff] }
 0x5a8   :  { %10544 = vmatprep.subr.bf16.mxu1 %v11024_v60  ;;  %v10243_v15 = vpack.c.bf16 %v7717_v10, %v7716_v9  ;;  %v7977_v9 = vld [vmem:[%s13545_s5 + $0xc88] sm:$0xff] }
 0x5a9   :  { %9283 = vmatmul.mubr.msk.f32.vlgmr.msra.gmra.mrb[8].mxu0 %vm3222_vm5, %v5315_v17  ;;  %v7718_v17 = vld [vmem:[%s13545_s5 + $0x570] sm:$0xff] }
 0x5aa   :  { %10216 = vmatpush3.bf16.msra.mxu0 %v10215_v16  ;;  %9748 = vmatmul.mubr.msk.f32.vlgmr.msra.gmra.mrb[8].mxu1 %vm3222_vm5, %v6695_v22  ;;  %v10573_v16 = vpack.c.bf16 %v7957_v13, %v7956_v11  ;;  %v7738_v13 = vld [vmem:[%s13545_s5 + $0x600] sm:$0xff] }
 0x5ab   :  { %10546 = vmatpush3.bf16.msra.mxu1 %v10545_v18  ;;  %10217 = vmatprep.subr.bf16.mxu0 %v11024_v60  ;;  %v7719_v18 = vld [vmem:[%s13545_s5 + $0x578] sm:$0xff] }
 0x5ac   :  { %10547 = vmatprep.subr.bf16.mxu1 %v11024_v60  ;;  %9313 = vmatprep.mubr.msk.f32.mxu0 %vm11026_vm10, %v11027_v14  ;;  %v10246_v22 = vpack.c.bf16 %v7719_v18, %v7718_v17  ;;  %v7979_v17 = vld [vmem:[%s13545_s5 + $0xc98] sm:$0xff] }
 0x5ad   :  { %9778 = vmatprep.mubr.msk.f32.mxu1 %vm11026_vm10, %v11027_v14 }
 0x5ae   :  { %10219 = vmatpush3.bf16.msra.mxu0 %v10218_v25  ;;  %v7721_v25 = vld [vmem:[%s13545_s5 + $0x588] sm:$0xff] }
 0x5af   :  { %10549 = vmatpush3.bf16.msra.mxu1 %v10548_v26  ;;  %10220 = vmatprep.subr.bf16.mxu0 %v11024_v60  ;;  %v7960_v26 = vld [vmem:[%s13545_s5 + $0xc10] sm:$0xff]  ;;  %v10249_v28 = vpack.c.bf16 %v7721_v25, %v7720_v24  ;;  %v7981_v24 = vld [vmem:[%s13545_s5 + $0xca8] sm:$0xf] }
 0x5b0   :  { %10550 = vmatprep.subr.bf16.mxu1 %v11024_v60  ;;  %v10579_v30 = vpack.c.bf16 %v7961_v27, %v7960_v26  ;;  %v7744_v27 = vld [vmem:[%s13545_s5 + $0x620] sm:$0xff] }
 0x5b2   :  { %10222 = vmatpush3.bf16.msra.mxu0 %v10221_v31  ;;  %v7723_v31 = vld [vmem:[%s13545_s5 + $0x598] sm:$0xff] }
 0x5b3   :  { %10552 = vmatpush3.bf16.msra.mxu1 %v10551_v32  ;;  %10223 = vmatprep.subr.bf16.mxu0 %v11024_v60  ;;  %v7962_v32 = vld [vmem:[%s13545_s5 + $0xc20] sm:$0xff]  ;;  %v10252_v38 = vpack.c.bf16 %v7723_v31, %v7722_v35  ;;  %v7985_v35 = vld [vmem:[%s13545_s5 + $0xcb8] sm:$0xff] }
 0x5b4   :  { %10553 = vmatprep.subr.bf16.mxu1 %v11024_v60  ;;  %v10582_v39 = vpack.c.bf16 %v7963_v34, %v7962_v32  ;;  %v5591_v32 = vrot.slane %v11875_v42, 5 }
 0x5b6   :  { %10225 = vmatpush3.bf16.msra.mxu0 %v10224_v41  ;;  %v7725_v41 = vld [vmem:[%s13545_s5 + $0x5a8] sm:$0xf] }
 0x5b7   :  { %10555 = vmatpush3.bf16.msra.mxu1 %v10554_v43  ;;  %10226 = vmatprep.subr.bf16.mxu0 %v11024_v60  ;;  %v7964_v43 = vld [vmem:[%s13545_s5 + $0xc30] sm:$0xff]  ;;  %v10255_v47 = vpack.c.bf16 %v7725_v41, %v7724_v40  ;;  %v6971_v40 = vrot.slane %v12886_v45, 4  ;;  %v7986_v41 = vld [vmem:[%s13545_s5 + $0xcc0] sm:$0xff] }
 0x5b8   :  { %10556 = vmatprep.subr.bf16.mxu1 %v11024_v60  ;;  %v10585_v48 = vpack.c.bf16 %v7965_v44, %v7964_v43  ;;  %v7987_v43 = vld [vmem:[%s13545_s5 + $0xcc8] sm:$0xff] }
 0x5ba   :  { %10228 = vmatpush3.bf16.msra.mxu0 %v10227_v49  ;;  %v7729_v49 = vld [vmem:[%s13545_s5 + $0x5b8] sm:$0xff] }
 0x5bb   :  { %10558 = vmatpush3.bf16.msra.mxu1 %v10557_v3  ;;  %10229 = vmatprep.subr.bf16.mxu0 %v11024_v60  ;;  %v7968_v3 = vld [vmem:[%s13545_s5 + $0xc40] sm:$0xff]  ;;  %v10259_v52 = vpack.c.bf16 %v7729_v49, %v7728_v20  ;;  %v7749_v20 = vld [vmem:[%s13545_s5 + $0x648] sm:$0xff]  ;;  %v7988_v49 = vld [vmem:[%s13545_s5 + $0xcd0] sm:$0xff] }
 0x5bc   :  { %10559 = vmatprep.subr.bf16.mxu1 %v11024_v60  ;;  %v10589_v50 = vpack.c.bf16 %v7969_v51, %v7968_v3  ;;  %v7989_v3 = vld [vmem:[%s13545_s5 + $0xcd8] sm:$0xff] }
 0x5be   :  { %10231 = vmatpush3.bf16.msra.mxu0 %v10230_v2  ;;  %v7730_v2 = vld [vmem:[%s13545_s5 + $0x5c0] sm:$0xff] }
 0x5bf   :  { %10561 = vmatpush3.bf16.msra.mxu1 %v10560_v54  ;;  %10232 = vmatprep.subr.bf16.mxu0 %v11024_v60  ;;  %v7731_v54 = vld [vmem:[%s13545_s5 + $0x5c8] sm:$0xff] }
 0x5c0   :  { %10562 = vmatprep.subr.bf16.mxu1 %v11024_v60  ;;  %v10262_v33 = vpack.c.bf16 %v7731_v54, %v7730_v2  ;;  %v7990_v2 = vld [vmem:[%s13545_s5 + $0xce0] sm:$0xff]  ;;  %v7991_v54 = vld [vmem:[%s13545_s5 + $0xce8] sm:$0xff] }
 0x5c2   :  { %10235 = vmatpush3.bf16.msk.msra.mxu0 %vm11845_vm8, %v10233_v0  ;;  %v10592_v0 = vpack.c.bf16 %v7971_v29, %v7970_v56  ;;  %v10620_v56 = vpack.c.bf16 %v7991_v54, %v7990_v2  ;;  %v7752_v29 = vld [vmem:[%s13545_s5 + $0x660] sm:$0xff]  ;;  %v8027_v54 = vld [vmem:[%s13545_s5 + $0xde8] sm:$0xff] }
 0x5c3   :  { %10565 = vmatpush3.bf16.msk.msra.mxu1 %vm11845_vm8, %v10563_v57  ;;  %10236 = vmatprep.subr.bf16.mxu0 %v11024_v60  ;;  %v7732_v57 = vld [vmem:[%s13545_s5 + $0x5d0] sm:$0xff]  ;;  %v8026_v2 = vld [vmem:[%s13545_s5 + $0xde0] sm:$0xff] }
 0x5c4   :  { %10566 = vmatprep.subr.bf16.mxu1 %v11024_v60  ;;  %v10265_v37 = vpack.c.bf16 %v7733_v36, %v7732_v57  ;;  %v7993_v57 = vld [vmem:[%s13545_s5 + $0xcf8] sm:$0xff] }
 0x5c5   :  { %9314 = vmatmul.mubr.msk.f32.vlgmr.msra.gmra.mrb[8].mxu0 %vm3222_vm5, %v5407_v62  ;;  %v7734_v62 = vld [vmem:[%s13545_s5 + $0x5e0] sm:$0xff] }
 0x5c6   :  { %10238 = vmatpush3.bf16.msra.mxu0 %v10237_v61  ;;  %9779 = vmatmul.mubr.msk.f32.vlgmr.msra.gmra.mrb[8].mxu1 %vm3222_vm5, %v6787_v6  ;;  %v10595_v61 = vpack.c.bf16 %v7973_v59, %v7972_v1  ;;  %v7754_v59 = vld [vmem:[%s13545_s5 + $0x670] sm:$0xff] }
 0x5c7   :  { %10568 = vmatpush3.bf16.msra.mxu1 %v10567_v55  ;;  %10239 = vmatprep.subr.bf16.mxu0 %v11024_v60  ;;  %v7735_v55 = vld [vmem:[%s13545_s5 + $0x5e8] sm:$0xff] }
 0x5c8   :  { %10569 = vmatprep.subr.bf16.mxu1 %v11024_v60  ;;  %9344 = vmatprep.mubr.msk.f32.mxu0 %vm11026_vm10, %v11027_v14  ;;  %v10268_v6 = vpack.c.bf16 %v7735_v55, %v7734_v62  ;;  %v7995_v62 = vld [vmem:[%s13545_s5 + $0xd08] sm:$0xff] }
 0x5c9   :  { %9809 = vmatprep.mubr.msk.f32.mxu1 %vm11026_vm10, %v11027_v14 }
 0x5ca   :  { %10241 = vmatpush3.bf16.msra.mxu0 %v10240_v7  ;;  %v7737_v7 = vld [vmem:[%s13545_s5 + $0x5f8] sm:$0xff] }
 0x5cb   :  { %10571 = vmatpush3.bf16.msra.mxu1 %v10570_v8  ;;  %10242 = vmatprep.subr.bf16.mxu0 %v11024_v60  ;;  %v7976_v8 = vld [vmem:[%s13545_s5 + $0xc80] sm:$0xff]  ;;  %v10271_v10 = vpack.c.bf16 %v7737_v7, %v7736_v46  ;;  %v7997_v46 = vld [vmem:[%s13545_s5 + $0xd18] sm:$0xf] }
 0x5cc   :  { %10572 = vmatprep.subr.bf16.mxu1 %v11024_v60  ;;  %v10601_v11 = vpack.c.bf16 %v7977_v9, %v7976_v8  ;;  %v8000_v9 = vld [vmem:[%s13545_s5 + $0xd20] sm:$0xff] }
 0x5ce   :  { %10244 = vmatpush3.bf16.msra.mxu0 %v10243_v15  ;;  %v7739_v15 = vld [vmem:[%s13545_s5 + $0x608] sm:$0xff] }
 0x5cf   :  { %10574 = vmatpush3.bf16.msra.mxu1 %v10573_v16  ;;  %10245 = vmatprep.subr.bf16.mxu0 %v11024_v60  ;;  %v7978_v16 = vld [vmem:[%s13545_s5 + $0xc90] sm:$0xff]  ;;  %v10274_v18 = vpack.c.bf16 %v7739_v15, %v7738_v13  ;;  %v7063_v15 = vrot.slane %v12886_v45, 5 }
 0x5d0   :  { %10575 = vmatprep.subr.bf16.mxu1 %v11024_v60  ;;  %v10604_v19 = vpack.c.bf16 %v7979_v17, %v7978_v16  ;;  %v8002_v16 = vld [vmem:[%s13545_s5 + $0xd30] sm:$0xff]  ;;  %v8003_v17 = vld [vmem:[%s13545_s5 + $0xd38] sm:$0xff] }
 0x5d2   :  { %10247 = vmatpush3.bf16.msra.mxu0 %v10246_v22  ;;  %v7741_v22 = vld [vmem:[%s13545_s5 + $0x618] sm:$0xf] }
 0x5d3   :  { %10577 = vmatpush3.bf16.msra.mxu1 %v10576_v23  ;;  %10248 = vmatprep.subr.bf16.mxu0 %v11024_v60  ;;  %v7980_v23 = vld [vmem:[%s13545_s5 + $0xca0] sm:$0xff]  ;;  %v10277_v25 = vpack.c.bf16 %v7741_v22, %v7740_v21  ;;  %v8006_v22 = vld [vmem:[%s13545_s5 + $0xd50] sm:$0xff] }
 0x5d4   :  { %10578 = vmatprep.subr.bf16.mxu1 %v11024_v60  ;;  %v10607_v26 = vpack.c.bf16 %v7981_v24, %v7980_v23  ;;  %v8007_v23 = vld [vmem:[%s13545_s5 + $0xd58] sm:$0xff] }
 0x5d5   :  { %v10642_v24 = vpack.c.bf16 %v8007_v23, %v8006_v22 }
 0x5d6   :  { %10250 = vmatpush3.bf16.msra.mxu0 %v10249_v28  ;;  %v7745_v28 = vld [vmem:[%s13545_s5 + $0x628] sm:$0xff] }
 0x5d7   :  { %10580 = vmatpush3.bf16.msra.mxu1 %v10579_v30  ;;  %10251 = vmatprep.subr.bf16.mxu0 %v11024_v60  ;;  %v7984_v30 = vld [vmem:[%s13545_s5 + $0xcb0] sm:$0xff]  ;;  %v10281_v31 = vpack.c.bf16 %v7745_v28, %v7744_v27 }
 0x5d8   :  { %10581 = vmatprep.subr.bf16.mxu1 %v11024_v60  ;;  %v10611_v34 = vpack.c.bf16 %v7985_v35, %v7984_v30  ;;  %v8010_v28 = vld [vmem:[%s13545_s5 + $0xd70] sm:$0xff]  ;;  %v8011_v30 = vld [vmem:[%s13545_s5 + $0xd78] sm:$0xff] }
 0x5d9   :  { %v10648_v35 = vpack.c.bf16 %v8011_v30, %v8010_v28 }
 0x5da   :  { %10253 = vmatpush3.bf16.msra.mxu0 %v10252_v38  ;;  %v7746_v38 = vld [vmem:[%s13545_s5 + $0x630] sm:$0xff] }
 0x5db   :  { %10583 = vmatpush3.bf16.msra.mxu1 %v10582_v39  ;;  %10254 = vmatprep.subr.bf16.mxu0 %v11024_v60  ;;  %v7747_v39 = vld [vmem:[%s13545_s5 + $0x638] sm:$0xff] }
 0x5dc   :  { %10584 = vmatprep.subr.bf16.mxu1 %v11024_v60  ;;  %v10284_v44 = vpack.c.bf16 %v7747_v39, %v7746_v38  ;;  %v8016_v38 = vld [vmem:[%s13545_s5 + $0xd90] sm:$0xff]  ;;  %v8017_v39 = vld [vmem:[%s13545_s5 + $0xd98] sm:$0xff] }
 0x5de   :  { %10257 = vmatpush3.bf16.msk.msra.mxu0 %vm11845_vm8, %v10255_v47  ;;  %v10614_v47 = vpack.c.bf16 %v7987_v43, %v7986_v41  ;;  %v7155_v41 = vrot.slane %v12886_v45, 6  ;;  %v8018_v43 = vld [vmem:[%s13545_s5 + $0xda0] sm:$0xff] }
 0x5df   :  { %10587 = vmatpush3.bf16.msk.msra.mxu1 %vm11845_vm8, %v10585_v48  ;;  %10258 = vmatprep.subr.bf16.mxu0 %v11024_v60  ;;  %v7748_v48 = vld [vmem:[%s13545_s5 + $0x640] sm:$0xff] }
 0x5e0   :  { %10588 = vmatprep.subr.bf16.mxu1 %v11024_v60  ;;  %v10287_v51 = vpack.c.bf16 %v7749_v20, %v7748_v48  ;;  %v8020_v48 = vld [vmem:[%s13545_s5 + $0xdb0] sm:$0xff]  ;;  %v8021_v20 = vld [vmem:[%s13545_s5 + $0xdb8] sm:$0xff] }
 0x5e1   :  { %9345 = vmatmul.mubr.msk.f32.vlgmr.msra.gmra.mrb[8].mxu0 %vm3222_vm5, %v5499_v53  ;;  %v7750_v53 = vld [vmem:[%s13545_s5 + $0x650] sm:$0xff] }
 0x5e2   :  { %10260 = vmatpush3.bf16.msra.mxu0 %v10259_v52  ;;  %9810 = vmatmul.mubr.msk.f32.vlgmr.msra.gmra.mrb[8].mxu1 %vm3222_vm5, %v6879_v4  ;;  %v10617_v52 = vpack.c.bf16 %v7989_v3, %v7988_v49  ;;  %v10661_v49 = vpack.c.bf16 %v8021_v20, %v8020_v48  ;;  %v8022_v3 = vld [vmem:[%s13545_s5 + $0xdc0] sm:$0xff] }
 0x5e3   :  { %10590 = vmatpush3.bf16.msra.mxu1 %v10589_v50  ;;  %10261 = vmatprep.subr.bf16.mxu0 %v11024_v60  ;;  %v7751_v50 = vld [vmem:[%s13545_s5 + $0x658] sm:$0xff] }
 0x5e4   :  { %10591 = vmatprep.subr.bf16.mxu1 %v11024_v60  ;;  %9375 = vmatprep.mubr.msk.f32.mxu0 %vm11026_vm10, %v11027_v14  ;;  %v10290_v4 = vpack.c.bf16 %v7751_v50, %v7750_v53  ;;  %v8025_v53 = vld [vmem:[%s13545_s5 + $0xdd8] sm:$0xff] }
 0x5e5   :  { %9840 = vmatprep.mubr.msk.f32.mxu1 %vm11026_vm10, %v11027_v14 }
 0x5e6   :  { %10263 = vmatpush3.bf16.msra.mxu0 %v10262_v33  ;;  %v7753_v33 = vld [vmem:[%s13545_s5 + $0x668] sm:$0xff] }
 0x5e7   :  { %10593 = vmatpush3.bf16.msra.mxu1 %v10592_v0  ;;  %10264 = vmatprep.subr.bf16.mxu0 %v11024_v60  ;;  %v7992_v0 = vld [vmem:[%s13545_s5 + $0xcf0] sm:$0xff]  ;;  %v10293_v36 = vpack.c.bf16 %v7753_v33, %v7752_v29  ;;  %v8029_v29 = vld [vmem:[%s13545_s5 + $0xdf8] sm:$0xf] }
 0x5e8   :  { %10594 = vmatprep.subr.bf16.mxu1 %v11024_v60  ;;  %v10623_v1 = vpack.c.bf16 %v7993_v57, %v7992_v0  ;;  %v7247_v0 = vrot.slane %v12886_v45, 7 }
 0x5ea   :  { %10266 = vmatpush3.bf16.msra.mxu0 %v10265_v37  ;;  %v7755_v37 = vld [vmem:[%s13545_s5 + $0x678] sm:$0xff] }
 0x5eb   :  { %10596 = vmatpush3.bf16.msra.mxu1 %v10595_v61  ;;  %10267 = vmatprep.subr.bf16.mxu0 %v11024_v60  ;;  %v7994_v61 = vld [vmem:[%s13545_s5 + $0xd00] sm:$0xff]  ;;  %v10296_v55 = vpack.c.bf16 %v7755_v37, %v7754_v59 }
 0x5ec   :  { %10597 = vmatprep.subr.bf16.mxu1 %v11024_v60  ;;  %v10626_v5 = vpack.c.bf16 %v7995_v62, %v7994_v61 }
 0x5ee   :  { %10269 = vmatpush3.bf16.msra.mxu0 %v10268_v6  ;;  %v7757_v6 = vld [vmem:[%s13545_s5 + $0x688] sm:$0xf] }
 0x5ef   :  { %10599 = vmatpush3.bf16.msra.mxu1 %v10598_v63  ;;  %10270 = vmatprep.subr.bf16.mxu0 %v11024_v60  ;;  %v7996_v63 = vld [vmem:[%s13545_s5 + $0xd10] sm:$0xff]  ;;  %v10299_v7 = vpack.c.bf16 %v7757_v6, %v7756_v58 }
 0x5f0   :  { %10600 = vmatprep.subr.bf16.mxu1 %v11024_v60  ;;  %v10629_v8 = vpack.c.bf16 %v7997_v46, %v7996_v63 }
 0x5f2   :  { %10272 = vmatpush3.bf16.msra.mxu0 %v10271_v10  ;;  %v8001_v10 = vld [vmem:[%s13545_s5 + $0xd28] sm:$0xff] }
 0x5f3   :  { %10602 = vmatpush3.bf16.msra.mxu1 %v10601_v11  ;;  %10273 = vmatprep.subr.bf16.mxu0 %v11024_v60  ;;  %v5683_v11 = vrot.slane %v11875_v42, 6  ;;  %v10633_v13 = vpack.c.bf16 %v8001_v10, %v8000_v9  ;;  %v8004_v42 = vld [vmem:[%s13545_s5 + $0xd40] sm:$0xff] }
 0x5f4   :  { %10603 = vmatprep.subr.bf16.mxu1 %v11024_v60 }
 0x5f6   :  { %10275 = vmatpush3.bf16.msra.mxu0 %v10274_v18  ;;  %v10636_v18 = vpack.c.bf16 %v8003_v17, %v8002_v16 }
 0x5f7   :  { %10605 = vmatpush3.bf16.msra.mxu1 %v10604_v19  ;;  %10276 = vmatprep.subr.bf16.mxu0 %v11024_v60  ;;  %v8005_v19 = vld [vmem:[%s13545_s5 + $0xd48] sm:$0xff] }
 0x5f8   :  { %10606 = vmatprep.subr.bf16.mxu1 %v11024_v60  ;;  %v10639_v21 = vpack.c.bf16 %v8005_v19, %v8004_v42 }
 0x5fa   :  { %10279 = vmatpush3.bf16.msk.msra.mxu0 %vm11845_vm8, %v10277_v25  ;;  %v8008_v25 = vld [vmem:[%s13545_s5 + $0xd60] sm:$0xff] }
 0x5fb   :  { %10609 = vmatpush3.bf16.msk.msra.mxu1 %vm11845_vm8, %v10607_v26  ;;  %10280 = vmatprep.subr.bf16.mxu0 %v11024_v60  ;;  %v8009_v26 = vld [vmem:[%s13545_s5 + $0xd68] sm:$0xff] }
 0x5fc   :  { %10610 = vmatprep.subr.bf16.mxu1 %v11024_v60  ;;  %v10645_v27 = vpack.c.bf16 %v8009_v26, %v8008_v25 }
 0x5fd   :  { %9376 = vmatmul.mubr.msk.f32.vlgmr.msra.gmra.mrb[8].mxu0 %vm3222_vm5, %v5591_v32  ;;  %v8013_v32 = vld [vmem:[%s13545_s5 + $0xd88] sm:$0xf] }
 0x5fe   :  { %10282 = vmatpush3.bf16.msra.mxu0 %v10281_v31  ;;  %9841 = vmatmul.mubr.msk.f32.vlgmr.msra.gmra.mrb[8].mxu1 %vm3222_vm5, %v6971_v40  ;;  %v8012_v31 = vld [vmem:[%s13545_s5 + $0xd80] sm:$0xff]  ;;  %v10655_v40 = vpack.c.bf16 %v8017_v39, %v8016_v38 }
 0x5ff   :  { %10612 = vmatpush3.bf16.msra.mxu1 %v10611_v34  ;;  %10283 = vmatprep.subr.bf16.mxu0 %v11024_v60  ;;  %v10651_v34 = vpack.c.bf16 %v8013_v32, %v8012_v31 }
 0x600   :  { %10613 = vmatprep.subr.bf16.mxu1 %v11024_v60  ;;  %9406 = vmatprep.mubr.msk.f32.mxu0 %vm11026_vm10, %v11027_v14 }
 0x601   :  { %9871 = vmatprep.mubr.msk.f32.mxu1 %vm11026_vm10, %v11027_v14 }
 0x602   :  { %10285 = vmatpush3.bf16.msra.mxu0 %v10284_v44  ;;  %v8019_v44 = vld [vmem:[%s13545_s5 + $0xda8] sm:$0xff] }
 0x603   :  { %10615 = vmatpush3.bf16.msra.mxu1 %v10614_v47  ;;  %10286 = vmatprep.subr.bf16.mxu0 %v11024_v60  ;;  %v10658_v47 = vpack.c.bf16 %v8019_v44, %v8018_v43 }
 0x604   :  { %10616 = vmatprep.subr.bf16.mxu1 %v11024_v60 }
 0x606   :  { %10288 = vmatpush3.bf16.msra.mxu0 %v10287_v51 }
 0x607   :  { %10618 = vmatpush3.bf16.msra.mxu1 %v10617_v52  ;;  %10289 = vmatprep.subr.bf16.mxu0 %v11024_v60  ;;  %v8024_v52 = vld [vmem:[%s13545_s5 + $0xdd0] sm:$0xff] }
 0x608   :  { %10619 = vmatprep.subr.bf16.mxu1 %v11024_v60  ;;  %v10667_v50 = vpack.c.bf16 %v8025_v53, %v8024_v52 }
 0x60a   :  { %10291 = vmatpush3.bf16.msra.mxu0 %v10290_v4  ;;  %v10670_v4 = vpack.c.bf16 %v8027_v54, %v8026_v2 }
 0x60b   :  { %10621 = vmatpush3.bf16.msra.mxu1 %v10620_v56  ;;  %10292 = vmatprep.subr.bf16.mxu0 %v11024_v60  ;;  %v8028_v56 = vld [vmem:[%s13545_s5 + $0xdf0] sm:$0xff] }
 0x60c   :  { %10622 = vmatprep.subr.bf16.mxu1 %v11024_v60  ;;  %v10673_v33 = vpack.c.bf16 %v8029_v29, %v8028_v56 }
 0x60e   :  { %10294 = vmatpush3.bf16.msra.mxu0 %v10293_v36 }
 0x60f   :  { %10624 = vmatpush3.bf16.msra.mxu1 %v10623_v1  ;;  %10295 = vmatprep.subr.bf16.mxu0 %v11024_v60  ;;  %v4380_v1 = vld [vmem:[%s13546_s6] sm:$0x1] }
 0x610   :  { %10625 = vmatprep.subr.bf16.mxu1 %v11024_v60 }
 0x612   :  { %10297 = vmatpush3.bf16.msra.mxu0 %v10296_v55 }
 0x613   :  { %10627 = vmatpush3.bf16.msra.mxu1 %v10626_v5  ;;  %10298 = vmatprep.subr.bf16.mxu0 %v11024_v60 }
 0x614   :  { %10628 = vmatprep.subr.bf16.mxu1 %v11024_v60 }
 0x616   :  { %10301 = vmatpush3.bf16.msk.msra.mxu0 %vm11845_vm8, %v10299_v7 }
 0x617   :  { %10631 = vmatpush3.bf16.msk.msra.mxu1 %vm11845_vm8, %v10629_v8 }
 0x618   :  { %10632 = vmatprep.subr.bf16.mxu1 %v11024_v60 }
 0x619   :  { %9407 = vmatmul.mubr.msk.f32.vlgmr.msra.gmra.mrb[8].mxu0 %vm3222_vm5, %v5683_v11 }
 0x61a   :  { %9872 = vmatmul.mubr.msk.f32.vlgmr.msra.gmra.mrb[8].mxu1 %vm3222_vm5, %v7063_v15 }
 0x61b   :  { %10634 = vmatpush3.bf16.msra.mxu1 %v10633_v13  ;;  %9902 = vmatprep.mubr.msk.f32.mxu1 %vm11026_vm10, %v11027_v14 }
 0x61c   :  { %10635 = vmatprep.subr.bf16.mxu1 %v11024_v60 }
 0x61f   :  { %10637 = vmatpush3.bf16.msra.mxu1 %v10636_v18 }
 0x620   :  { %10638 = vmatprep.subr.bf16.mxu1 %v11024_v60 }
 0x623   :  { %10640 = vmatpush3.bf16.msra.mxu1 %v10639_v21 }
 0x624   :  { %10641 = vmatprep.subr.bf16.mxu1 %v11024_v60 }
 0x627   :  { %10643 = vmatpush3.bf16.msra.mxu1 %v10642_v24 }
 0x628   :  { %10644 = vmatprep.subr.bf16.mxu1 %v11024_v60 }
 0x62b   :  { %10646 = vmatpush3.bf16.msra.mxu1 %v10645_v27 }
 0x62c   :  { %10647 = vmatprep.subr.bf16.mxu1 %v11024_v60 }
 0x62f   :  { %10649 = vmatpush3.bf16.msra.mxu1 %v10648_v35 }
 0x630   :  { %10650 = vmatprep.subr.bf16.mxu1 %v11024_v60 }
 0x633   :  { %10653 = vmatpush3.bf16.msk.msra.mxu1 %vm11845_vm8, %v10651_v34 }
 0x634   :  { %10654 = vmatprep.subr.bf16.mxu1 %v11024_v60 }
 0x636   :  { %9903 = vmatmul.mubr.msk.f32.vlgmr.msra.gmra.mrb[8].mxu1 %vm3222_vm5, %v7155_v41 }
 0x637   :  { %10656 = vmatpush3.bf16.msra.mxu1 %v10655_v40  ;;  %9933 = vmatprep.mubr.msk.f32.mxu1 %vm11026_vm10, %v11027_v14  ;;  %v8023_v14 = vld [vmem:[%s13545_s5 + $0xdc8] sm:$0xff]  ;;  %s10964_s5 = scalar_lea.vmem %s7333_s12, 16 }
 0x638   :  { %10657 = vmatprep.subr.bf16.mxu1 %v11024_v60  ;;  %v10664_v51 = vpack.c.bf16 %v8023_v14, %v8022_v3  ;;  %p10965_p0 = scmp.ne.s32.totalorder %s7333_s12, %s10964_s5  ;;  %p10970_p2 = scmp.lt.s32.totalorder %s10968_s16, %s10964_s5 }
 0x63a   :  { %p10971_p3 = por %p10970_p2, %p10969_p1 }
 0x63b   :  { %10659 = vmatpush3.bf16.msra.mxu1 %v10658_v47 }
 0x63c   :  { %10660 = vmatprep.subr.bf16.mxu1 %v11024_v60  ;;  %p10972_p4 = pnand %p10971_p3, %p10965_p0 }
 0x63f   :  { %10662 = vmatpush3.bf16.msra.mxu1 %v10661_v49 }
 0x640   :  { %10663 = vmatprep.subr.bf16.mxu1 %v11024_v60 }
 0x643   :  { %10665 = vmatpush3.bf16.msra.mxu1 %v10664_v51 }
 0x644   :  { %10666 = vmatprep.subr.bf16.mxu1 %v11024_v60 }
 0x647   :  { %10668 = vmatpush3.bf16.msra.mxu1 %v10667_v50 }
 0x648   :  { %10669 = vmatprep.subr.bf16.mxu1 %v11024_v60 }
 0x64b   :  { %10671 = vmatpush3.bf16.msra.mxu1 %v10670_v4 }
 0x64c   :  { %10672 = vmatprep.subr.bf16.mxu1 %v11024_v60 }
 0x64f   :  { %10675 = vmatpush3.bf16.msk.msra.mxu1 %vm11845_vm8, %v10673_v33 }
 0x652   :  { %9934 = vmatmul.mubr.msk.f32.vlgmr.msra.gmra.mrb[8].mxu1 %vm3222_vm5, %v7247_v0 }
 0x6ec   :  { %v5755_v57 = vpop.f32.mrb[8].mxu0 }
 0x6ed   :  { %v9408_v36 = vpop.f32.mrb[9].mxu0  ;;  %v10680_v59 = vadd.f32 %v5755_v57, %v4380_v1 }
 0x725   :  { %v7319_v37 = vpop.f32.mrb[8].mxu1 }
 0x726   :  { %v10681_v61 = vadd.f32 %v10680_v59, %v7319_v37  ;;  %v9935_v60 = vpop.f32.mrb[9].mxu1 }
 0x728   :  { %7325 = vst.msk [vmem:[#allocation2] sm:$0x1] %vm7324_vm7, %v10681_v61 }
 0x729   :  { %10975 = shalt.err (!%p10972_p4)
}
 0x72a   :  { %s10976_s6 = scalar_lea.hbm %s13549_s9, 16 }
 0x72b   :  { %p10977_p5 = scmp.ne.s32.totalorder %s13549_s9, %s10976_s6  ;;  %p10980_p6 = scmp.lt.u32.totalorder %s10976_s6, %s13549_s9 }
 0x72d   :  { %p10982_p7 = pnand %p10980_p6, %p10977_p5 }
 0x72f   :  { %10985 = shalt.err (!%p10982_p7)
}
 0x730   :  { %7335 = dma.vmem_to_hbm [thread:$0]  %s7333_s12, 16, %s13549_s9, [#allocation3]  }
 0x731   :  { %10986 = dma.done.wait [#allocation3], 16  }
 0x732   :  { %10987 = vsyncadd [#allocation3], 4294967280 }
 0x733   :  { %7339 = vsyncpa [#allocation3], 1 }

</bundles_post_ra>
